<compile_context>
chip_gen: v6e
topology: v6e:2x2x1
jax: 0.10.0
libtpu: 0.0.40
codegen_flags: <defaults>
</compile_context>

<pallas_src>
import math

import jax
import jax.numpy as jnp
from jax.experimental import pallas as pl
from jax.experimental.pallas import tpu as pltpu  # noqa: F401  (kept for parity)

# ----------------------------- configuration --------------------------------
IMAGE_SIZE = 16
PATCH_SIZE = 4
NUM_CLASSES = 10
NUM_LAYERS = 2
NUM_HEADS = 4
HIDDEN_DIM = 32
MLP_DIM = 64
BATCH = 2
IN_CHANNELS = 4               # forward slices to the first 3 channels

NUM_PATCHES = (IMAGE_SIZE // PATCH_SIZE) ** 2          # 16
SEQ_LEN = NUM_PATCHES + 1                              # 17 (cls + patches)
S_PAD = 24                                             # padded to multiple of 8
T_PAD = BATCH * S_PAD                                  # 48 flattened tokens
PATCH_DIM = PATCH_SIZE * PATCH_SIZE * 3                # 48
HEAD_DIM = HIDDEN_DIM // NUM_HEADS                     # 8
LN_EPS = 1e-6
NEG_INF = -1e30


# ------------------------------- kernel --------------------------------------
def _layernorm(v, gamma, beta):
    # Single-pass LN: one reduction pass (mean and mean-of-squares together).
    mu = jnp.mean(v, axis=-1, keepdims=True)
    ms = jnp.mean(v * v, axis=-1, keepdims=True)
    var = ms - mu * mu
    return (v - mu) * jax.lax.rsqrt(var + LN_EPS) * gamma + beta


def vit_kernel(
    patches_ref,                 # [T_PAD, P]     padded patches (cls/pad rows zero)
    addb_ref,                    # [T_PAD, D]     cls+pos / patch_bias+pos additive term
    amask_ref,                   # [T_PAD, T_PAD] block-diagonal additive mask
    clssel_ref,                  # [B, T_PAD]     one-hot rows selecting the cls tokens
    pw_ref,                      # [P, D]         patch projection weight (pre-transposed)
    ln1g_ref, ln1b_ref,          # [L, 1, D]
    wqkv_ref, bqkv_ref,          # [L, D, 3D], [L, 1, 3D]  (Q part pre-scaled by 1/sqrt(hd))
    wo_ref, bo_ref,              # [L, D, D],  [L, 1, D]
    ln2g_ref, ln2b_ref,          # [L, 1, D]
    w1_ref, b1_ref,              # [L, D, M],  [L, 1, M]
    w2_ref, b2_ref,              # [L, M, D],  [L, 1, D]
    fing_ref, finb_ref,          # [1, D]         encoder final LayerNorm
    hw_ref, hb_ref,              # [D, C], [1, C] classification head
    o_ref,                       # [B, C]
):
    D = HIDDEN_DIM

    # Patch embedding + cls token + (both) positional embeddings: one matmul + add.
    x = (
        jnp.dot(patches_ref[...], pw_ref[...], preferred_element_type=jnp.float32)
        + addb_ref[...]
    )                                                       # [T_PAD, D]
    amask = amask_ref[...]                                  # [T_PAD, T_PAD] (loaded once)

    for l in range(NUM_LAYERS):                             # static unroll (L=2)
        # ---- multi-head self-attention (pre-LN), both batches merged ----
        h1 = _layernorm(x, ln1g_ref[l], ln1b_ref[l])
        qkv = (
            jnp.dot(h1, wqkv_ref[l], preferred_element_type=jnp.float32)
            + bqkv_ref[l]
        )                                                   # [T_PAD, 3D]
        wo_l = wo_ref[l]                                    # [D, D]

        attn = jnp.zeros((T_PAD, D), jnp.float32)
        for hd in range(NUM_HEADS):
            lo = hd * HEAD_DIM
            q_h = qkv[:, lo:lo + HEAD_DIM]                  # [T_PAD, 8] (scale folded)
            k_h = qkv[:, D + lo:D + lo + HEAD_DIM]          # [T_PAD, 8]
            v_h = qkv[:, 2 * D + lo:2 * D + lo + HEAD_DIM]  # [T_PAD, 8]

            # Q @ K^T without an explicit transpose: contract the last dim of both.
            s = jax.lax.dot_general(
                q_h, k_h,
                dimension_numbers=(((1,), (1,)), ((), ())),
                preferred_element_type=jnp.float32,
            )                                               # [T_PAD, T_PAD]
            s = s + amask                                   # cross-batch / pad keys -> -inf
            s = s - jnp.max(s, axis=-1, keepdims=True)
            p = jnp.exp(s)
            p = p * pl.reciprocal(jnp.sum(p, axis=-1, keepdims=True), approx=False)

            ctx_h = jnp.dot(p, v_h, preferred_element_type=jnp.float32)  # [T_PAD, 8]
            # Project this head straight through its Wo slice and accumulate:
            # avoids the masked 8-lane scratch stores and the scratch round trip.
            attn = attn + jnp.dot(
                ctx_h, wo_l[lo:lo + HEAD_DIM, :], preferred_element_type=jnp.float32
            )

        x = x + attn + bo_ref[l]

        # ---- MLP (pre-LN) ----
        h2 = _layernorm(x, ln2g_ref[l], ln2b_ref[l])
        m = jnp.dot(h2, w1_ref[l], preferred_element_type=jnp.float32) + b1_ref[l]
        m = 0.5 * m * (1.0 + jax.lax.erf(m * (1.0 / math.sqrt(2.0))))  # exact GELU
        m = jnp.dot(m, w2_ref[l], preferred_element_type=jnp.float32) + b2_ref[l]
        x = x + m

    # ---- vectorized epilogue: gather cls rows with one tiny matmul ----
    cls = jnp.dot(clssel_ref[...], x, preferred_element_type=jnp.float32)   # [B, D]
    cls = _layernorm(cls, fing_ref[...], finb_ref[...])
    o_ref[...] = (
        jnp.dot(cls, hw_ref[...], preferred_element_type=jnp.float32) + hb_ref[...]
    )


# ----------------------------- glue (plain JAX) -------------------------------
def unfold_patches(images):
    # Reproduces nn.Unfold(kernel=patch, stride=patch).transpose(1, 2):
    # features ordered (c, kh, kw), patches ordered row-major over the grid.
    B, C, H, W = images.shape
    p = PATCH_SIZE
    x = images.reshape(B, C, H // p, p, W // p, p)
    x = x.transpose(0, 2, 4, 1, 3, 5)                     # [B, oh, ow, C, kh, kw]
    return x.reshape(B, (H // p) * (W // p), C * p * p)   # [B, N, C*p*p]


def init_params(key):
    keys = iter(jax.random.split(key, 64))

    def nrm(shape, scale=0.02):
        return (scale * jax.random.normal(next(keys), shape)).astype(jnp.float32)

    D, P, M, C = HIDDEN_DIM, PATCH_DIM, MLP_DIM, NUM_CLASSES
    params = {
        "patch_w": nrm((D, P)),                 # nn.Linear(P, D) weight [out, in]
        "patch_b": nrm((D,)),
        "cls": nrm((1, 1, D), 1.0),             # torch.randn -> scale 1.0
        "pos": nrm((1, SEQ_LEN, D), 1.0),       # wrapper positional_encoding
        "enc_pos": nrm((1, SEQ_LEN, D)),        # torchvision Encoder.pos_embedding
        "final_g": jnp.ones((D,), jnp.float32),
        "final_b": jnp.zeros((D,), jnp.float32),
        "head_w": nrm((C, D)),                  # nn.Linear(D, C) weight [out, in]
        "head_b": nrm((C,)),
        "layers": [],
    }
    for _ in range(NUM_LAYERS):
        params["layers"].append({
            "ln1_g": jnp.ones((D,), jnp.float32), "ln1_b": jnp.zeros((D,), jnp.float32),
            "in_proj_w": nrm((3 * D, D)), "in_proj_b": nrm((3 * D,)),
            "out_proj_w": nrm((D, D)), "out_proj_b": nrm((D,)),
            "ln2_g": jnp.ones((D,), jnp.float32), "ln2_b": jnp.zeros((D,), jnp.float32),
            "mlp_w1": nrm((M, D)), "mlp_b1": nrm((M,)),
            "mlp_w2": nrm((D, M)), "mlp_b2": nrm((D,)),
        })
    return params


def pack_params(p):
    """One-time packing of torch-style params into kernel-ready tensors."""
    D = HIDDEN_DIM
    scale = 1.0 / math.sqrt(HEAD_DIM)

    # Combined positional embedding (wrapper pos + Encoder pos) folded with the
    # cls token / patch-projection bias into a single per-row additive tensor.
    pos_total = (p["pos"] + p["enc_pos"])[0]                          # [S, D]
    add_seq = jnp.concatenate([
        p["cls"][0, 0][None, :] + pos_total[0:1],                     # cls row
        p["patch_b"][None, :] + pos_total[1:],                        # patch rows
        jnp.zeros((S_PAD - SEQ_LEN, D), jnp.float32),                 # pad rows
    ], axis=0)                                                        # [S_PAD, D]
    addb = jnp.tile(add_seq, (BATCH, 1))                              # [T_PAD, D]

    # Block-diagonal additive attention mask over the flattened [T_PAD] tokens:
    # a query may only attend to keys of its own batch item AND within SEQ_LEN.
    tok = jnp.arange(T_PAD)
    same_batch = (tok[:, None] // S_PAD) == (tok[None, :] // S_PAD)
    valid_key = (tok[None, :] % S_PAD) < SEQ_LEN
    amask = jnp.where(same_batch & valid_key, 0.0, NEG_INF).astype(jnp.float32)

    # One-hot selector picking the cls row of each batch item (rows b*S_PAD).
    clssel = jnp.zeros((BATCH, T_PAD), jnp.float32)
    clssel = clssel.at[jnp.arange(BATCH), jnp.arange(BATCH) * S_PAD].set(1.0)

    def stack(fn):
        return jnp.stack([fn(layer) for layer in p["layers"]], axis=0)

    packed = {
        "patch_w": p["patch_w"].T,                                    # [P, D]
        "addb": addb,
        "amask": amask,
        "clssel": clssel,
        "ln1g": stack(lambda l: l["ln1_g"][None, :]),
        "ln1b": stack(lambda l: l["ln1_b"][None, :]),
        # Fused QKV weight; attention scale folded into the Q columns.
        "wqkv": stack(lambda l: jnp.concatenate([
            l["in_proj_w"][0:D].T * scale,
            l["in_proj_w"][D:2 * D].T,
            l["in_proj_w"][2 * D:3 * D].T], axis=1)),                  # [L, D, 3D]
        "bqkv": stack(lambda l: jnp.concatenate([
            l["in_proj_b"][0:D] * scale,
            l["in_proj_b"][D:2 * D],
            l["in_proj_b"][2 * D:3 * D]], axis=0)[None, :]),           # [L, 1, 3D]
        "wo": stack(lambda l: l["out_proj_w"].T),
        "bo": stack(lambda l: l["out_proj_b"][None, :]),
        "ln2g": stack(lambda l: l["ln2_g"][None, :]),
        "ln2b": stack(lambda l: l["ln2_b"][None, :]),
        "w1": stack(lambda l: l["mlp_w1"].T),
        "b1": stack(lambda l: l["mlp_b1"][None, :]),
        "w2": stack(lambda l: l["mlp_w2"].T),
        "b2": stack(lambda l: l["mlp_b2"][None, :]),
        "fing": p["final_g"][None, :],
        "finb": p["final_b"][None, :],
        "hw": p["head_w"].T,                                           # [D, C]
        "hb": p["head_b"][None, :],                                    # [1, C]
    }
    return packed


def _vit_forward(images, kp):
    images = images[:, :3, :, :]
    patches = unfold_patches(images)                                   # [B, N, P]
    # Pad to [B, S_PAD, P]: zero row for the cls slot + zero pad rows.
    patches = jnp.pad(patches, ((0, 0), (1, S_PAD - SEQ_LEN), (0, 0)))
    patches_flat = patches.reshape(T_PAD, PATCH_DIM)
    # TODO(synk): dropout / attention_dropout are identity in eval mode (no RNG applied).

    return pl.pallas_call(
        vit_kernel,
        out_shape=jax.ShapeDtypeStruct((BATCH, NUM_CLASSES), jnp.float32),
    )(
        patches_flat, kp["addb"], kp["amask"], kp["clssel"], kp["patch_w"],
        kp["ln1g"], kp["ln1b"], kp["wqkv"], kp["bqkv"], kp["wo"], kp["bo"],
        kp["ln2g"], kp["ln2b"], kp["w1"], kp["b1"], kp["w2"], kp["b2"],
        kp["fing"], kp["finb"], kp["hw"], kp["hb"],
    )


vit_forward = jax.jit(_vit_forward)


# --------------------------------- main ---------------------------------------
if __name__ == "__main__":
    key = jax.random.PRNGKey(0)
    k_img, k_par = jax.random.split(key)

    images = jax.random.normal(
        k_img, (BATCH, IN_CHANNELS, IMAGE_SIZE, IMAGE_SIZE), dtype=jnp.float32
    )
    params = init_params(k_par)
    packed = pack_params(params)

    logits = vit_forward(images, packed)
    jax.block_until_ready(logits)
    assert logits.shape == (BATCH, NUM_CLASSES), logits.shape
    assert bool(jnp.all(jnp.isfinite(logits)))
    print("KERNEL_OK")
</pallas_src>

<mosaic_0001>
module attributes {stable_mosaic.version = 11 : i64} {
  func.func @vit_kernel(%arg0: memref<48x48xf32, #tpu.memory_space<vmem>>, %arg1: memref<48x32xf32, #tpu.memory_space<vmem>>, %arg2: memref<48x48xf32, #tpu.memory_space<vmem>>, %arg3: memref<2x48xf32, #tpu.memory_space<vmem>>, %arg4: memref<48x32xf32, #tpu.memory_space<vmem>>, %arg5: memref<2x1x32xf32, #tpu.memory_space<vmem>>, %arg6: memref<2x1x32xf32, #tpu.memory_space<vmem>>, %arg7: memref<2x32x96xf32, #tpu.memory_space<vmem>>, %arg8: memref<2x1x96xf32, #tpu.memory_space<vmem>>, %arg9: memref<2x32x32xf32, #tpu.memory_space<vmem>>, %arg10: memref<2x1x32xf32, #tpu.memory_space<vmem>>, %arg11: memref<2x1x32xf32, #tpu.memory_space<vmem>>, %arg12: memref<2x1x32xf32, #tpu.memory_space<vmem>>, %arg13: memref<2x32x64xf32, #tpu.memory_space<vmem>>, %arg14: memref<2x1x64xf32, #tpu.memory_space<vmem>>, %arg15: memref<2x64x32xf32, #tpu.memory_space<vmem>>, %arg16: memref<2x1x32xf32, #tpu.memory_space<vmem>>, %arg17: memref<1x32xf32, #tpu.memory_space<vmem>>, %arg18: memref<1x32xf32, #tpu.memory_space<vmem>>, %arg19: memref<32x10xf32, #tpu.memory_space<vmem>>, %arg20: memref<1x10xf32, #tpu.memory_space<vmem>>, %arg21: memref<2x10xf32, #tpu.memory_space<vmem>>) attributes {dimension_semantics = [], scalar_prefetch = 0 : i64, scratch_operands = 0 : i64, tpu.core_type = #tpu.core_type<tc>} {
    %c0 = arith.constant 0 : index
    %c0_0 = arith.constant 0 : index
    %0 = vector.load %arg0[%c0, %c0_0] : memref<48x48xf32, #tpu.memory_space<vmem>>, vector<48x48xf32>
    %c0_1 = arith.constant 0 : index
    %c0_2 = arith.constant 0 : index
    %1 = vector.load %arg4[%c0_1, %c0_2] : memref<48x32xf32, #tpu.memory_space<vmem>>, vector<48x32xf32>
    %cst = arith.constant dense<0.000000e+00> : vector<48x32xf32>
    %2 = tpu.matmul %0, %1, %cst {dimension_numbers = #tpu.dot_dimension_numbers<[1], [0], [0], [1], [0, 0, 1, 1], [], []>} : vector<48x48xf32>, vector<48x32xf32>, vector<48x32xf32> -> vector<48x32xf32>
    %c0_3 = arith.constant 0 : index
    %c0_4 = arith.constant 0 : index
    %3 = vector.load %arg1[%c0_3, %c0_4] : memref<48x32xf32, #tpu.memory_space<vmem>>, vector<48x32xf32>
    %4 = arith.addf %2, %3 : vector<48x32xf32>
    %c0_5 = arith.constant 0 : index
    %c0_6 = arith.constant 0 : index
    %5 = vector.load %arg2[%c0_5, %c0_6] : memref<48x48xf32, #tpu.memory_space<vmem>>, vector<48x48xf32>
    %c0_7 = arith.constant 0 : index
    %c0_8 = arith.constant 0 : index
    %c0_9 = arith.constant 0 : index
    %6 = vector.load %arg5[%c0_7, %c0_8, %c0_9] : memref<2x1x32xf32, #tpu.memory_space<vmem>>, vector<1x1x32xf32>
    %7 = vector.shape_cast %6 : vector<1x1x32xf32> to vector<1x32xf32>
    %c0_10 = arith.constant 0 : index
    %c0_11 = arith.constant 0 : index
    %c0_12 = arith.constant 0 : index
    %8 = vector.load %arg6[%c0_10, %c0_11, %c0_12] : memref<2x1x32xf32, #tpu.memory_space<vmem>>, vector<1x1x32xf32>
    %9 = vector.shape_cast %8 : vector<1x1x32xf32> to vector<1x32xf32>
    %cst_13 = arith.constant dense<0.000000e+00> : vector<48xf32>
    %10 = vector.multi_reduction <add>, %4, %cst_13 [1] : vector<48x32xf32> to vector<48xf32>
    %11 = vector.shape_cast %10 : vector<48xf32> to vector<48x1xf32>
    %cst_14 = arith.constant 3.200000e+01 : f32
    %12 = vector.broadcast %cst_14 : f32 to vector<48x1xf32>
    %13 = arith.divf %11, %12 : vector<48x1xf32>
    %14 = arith.mulf %4, %4 : vector<48x32xf32>
    %cst_15 = arith.constant dense<0.000000e+00> : vector<48xf32>
    %15 = vector.multi_reduction <add>, %14, %cst_15 [1] : vector<48x32xf32> to vector<48xf32>
    %16 = vector.shape_cast %15 : vector<48xf32> to vector<48x1xf32>
    %cst_16 = arith.constant 3.200000e+01 : f32
    %17 = vector.broadcast %cst_16 : f32 to vector<48x1xf32>
    %18 = arith.divf %16, %17 : vector<48x1xf32>
    %19 = arith.mulf %13, %13 : vector<48x1xf32>
    %20 = arith.subf %18, %19 : vector<48x1xf32>
    %21 = vector.broadcast %13 : vector<48x1xf32> to vector<48x32xf32>
    %22 = arith.subf %4, %21 : vector<48x32xf32>
    %cst_17 = arith.constant 9.99999997E-7 : f32
    %23 = vector.broadcast %cst_17 : f32 to vector<48x1xf32>
    %24 = arith.addf %20, %23 : vector<48x1xf32>
    %25 = math.rsqrt %24 : vector<48x1xf32>
    %26 = vector.broadcast %25 : vector<48x1xf32> to vector<48x32xf32>
    %27 = arith.mulf %22, %26 : vector<48x32xf32>
    %28 = vector.broadcast %7 : vector<1x32xf32> to vector<48x32xf32>
    %29 = arith.mulf %27, %28 : vector<48x32xf32>
    %30 = vector.broadcast %9 : vector<1x32xf32> to vector<48x32xf32>
    %31 = arith.addf %29, %30 : vector<48x32xf32>
    %c0_18 = arith.constant 0 : index
    %c0_19 = arith.constant 0 : index
    %c0_20 = arith.constant 0 : index
    %32 = vector.load %arg7[%c0_18, %c0_19, %c0_20] : memref<2x32x96xf32, #tpu.memory_space<vmem>>, vector<1x32x96xf32>
    %33 = vector.shape_cast %32 : vector<1x32x96xf32> to vector<32x96xf32>
    %cst_21 = arith.constant dense<0.000000e+00> : vector<48x96xf32>
    %34 = tpu.matmul %31, %33, %cst_21 {dimension_numbers = #tpu.dot_dimension_numbers<[1], [0], [0], [1], [0, 0, 1, 1], [], []>} : vector<48x32xf32>, vector<32x96xf32>, vector<48x96xf32> -> vector<48x96xf32>
    %c0_22 = arith.constant 0 : index
    %c0_23 = arith.constant 0 : index
    %c0_24 = arith.constant 0 : index
    %35 = vector.load %arg8[%c0_22, %c0_23, %c0_24] : memref<2x1x96xf32, #tpu.memory_space<vmem>>, vector<1x1x96xf32>
    %36 = vector.shape_cast %35 : vector<1x1x96xf32> to vector<1x96xf32>
    %37 = vector.broadcast %36 : vector<1x96xf32> to vector<48x96xf32>
    %38 = arith.addf %34, %37 : vector<48x96xf32>
    %c0_25 = arith.constant 0 : index
    %c0_26 = arith.constant 0 : index
    %c0_27 = arith.constant 0 : index
    %39 = vector.load %arg9[%c0_25, %c0_26, %c0_27] : memref<2x32x32xf32, #tpu.memory_space<vmem>>, vector<1x32x32xf32>
    %40 = vector.shape_cast %39 : vector<1x32x32xf32> to vector<32x32xf32>
    %cst_28 = arith.constant 0.000000e+00 : f32
    %41 = vector.broadcast %cst_28 : f32 to vector<48x32xf32>
    %42 = vector.extract_strided_slice %38 {offsets = [0, 0], sizes = [48, 8], strides = [1, 1]} : vector<48x96xf32> to vector<48x8xf32>
    %43 = vector.extract_strided_slice %38 {offsets = [0, 32], sizes = [48, 8], strides = [1, 1]} : vector<48x96xf32> to vector<48x8xf32>
    %44 = vector.extract_strided_slice %38 {offsets = [0, 64], sizes = [48, 8], strides = [1, 1]} : vector<48x96xf32> to vector<48x8xf32>
    %cst_29 = arith.constant dense<0.000000e+00> : vector<48x48xf32>
    %45 = tpu.matmul %42, %43, %cst_29 {dimension_numbers = #tpu.dot_dimension_numbers<[1], [1], [0], [0], [0, 0, 1, 0], [], []>} : vector<48x8xf32>, vector<48x8xf32>, vector<48x48xf32> -> vector<48x48xf32>
    %46 = arith.addf %45, %5 : vector<48x48xf32>
    %cst_30 = arith.constant dense<0xFF800000> : vector<48xf32>
    %47 = vector.multi_reduction <maximumf>, %46, %cst_30 [1] : vector<48x48xf32> to vector<48xf32>
    %48 = vector.shape_cast %47 : vector<48xf32> to vector<48x1xf32>
    %49 = vector.broadcast %48 : vector<48x1xf32> to vector<48x48xf32>
    %50 = arith.subf %46, %49 : vector<48x48xf32>
    %51 = math.exp %50 : vector<48x48xf32>
    %cst_31 = arith.constant dense<0.000000e+00> : vector<48xf32>
    %52 = vector.multi_reduction <add>, %51, %cst_31 [1] : vector<48x48xf32> to vector<48xf32>
    %53 = vector.shape_cast %52 : vector<48xf32> to vector<48x1xf32>
    %54 = tpu.reciprocal %53 : vector<48x1xf32> -> vector<48x1xf32>
    %55 = vector.broadcast %54 : vector<48x1xf32> to vector<48x48xf32>
    %56 = arith.mulf %51, %55 : vector<48x48xf32>
    %cst_32 = arith.constant dense<0.000000e+00> : vector<48x8xf32>
    %57 = tpu.matmul %56, %44, %cst_32 {dimension_numbers = #tpu.dot_dimension_numbers<[1], [0], [0], [1], [0, 0, 1, 1], [], []>} : vector<48x48xf32>, vector<48x8xf32>, vector<48x8xf32> -> vector<48x8xf32>
    %58 = vector.extract_strided_slice %40 {offsets = [0, 0], sizes = [8, 32], strides = [1, 1]} : vector<32x32xf32> to vector<8x32xf32>
    %cst_33 = arith.constant dense<0.000000e+00> : vector<48x32xf32>
    %59 = tpu.matmul %57, %58, %cst_33 {dimension_numbers = #tpu.dot_dimension_numbers<[1], [0], [0], [1], [0, 0, 1, 1], [], []>} : vector<48x8xf32>, vector<8x32xf32>, vector<48x32xf32> -> vector<48x32xf32>
    %60 = arith.addf %41, %59 : vector<48x32xf32>
    %61 = vector.extract_strided_slice %38 {offsets = [0, 8], sizes = [48, 8], strides = [1, 1]} : vector<48x96xf32> to vector<48x8xf32>
    %62 = vector.extract_strided_slice %38 {offsets = [0, 40], sizes = [48, 8], strides = [1, 1]} : vector<48x96xf32> to vector<48x8xf32>
    %63 = vector.extract_strided_slice %38 {offsets = [0, 72], sizes = [48, 8], strides = [1, 1]} : vector<48x96xf32> to vector<48x8xf32>
    %cst_34 = arith.constant dense<0.000000e+00> : vector<48x48xf32>
    %64 = tpu.matmul %61, %62, %cst_34 {dimension_numbers = #tpu.dot_dimension_numbers<[1], [1], [0], [0], [0, 0, 1, 0], [], []>} : vector<48x8xf32>, vector<48x8xf32>, vector<48x48xf32> -> vector<48x48xf32>
    %65 = arith.addf %64, %5 : vector<48x48xf32>
    %cst_35 = arith.constant dense<0xFF800000> : vector<48xf32>
    %66 = vector.multi_reduction <maximumf>, %65, %cst_35 [1] : vector<48x48xf32> to vector<48xf32>
    %67 = vector.shape_cast %66 : vector<48xf32> to vector<48x1xf32>
    %68 = vector.broadcast %67 : vector<48x1xf32> to vector<48x48xf32>
    %69 = arith.subf %65, %68 : vector<48x48xf32>
    %70 = math.exp %69 : vector<48x48xf32>
    %cst_36 = arith.constant dense<0.000000e+00> : vector<48xf32>
    %71 = vector.multi_reduction <add>, %70, %cst_36 [1] : vector<48x48xf32> to vector<48xf32>
    %72 = vector.shape_cast %71 : vector<48xf32> to vector<48x1xf32>
    %73 = tpu.reciprocal %72 : vector<48x1xf32> -> vector<48x1xf32>
    %74 = vector.broadcast %73 : vector<48x1xf32> to vector<48x48xf32>
    %75 = arith.mulf %70, %74 : vector<48x48xf32>
    %cst_37 = arith.constant dense<0.000000e+00> : vector<48x8xf32>
    %76 = tpu.matmul %75, %63, %cst_37 {dimension_numbers = #tpu.dot_dimension_numbers<[1], [0], [0], [1], [0, 0, 1, 1], [], []>} : vector<48x48xf32>, vector<48x8xf32>, vector<48x8xf32> -> vector<48x8xf32>
    %77 = vector.extract_strided_slice %40 {offsets = [8, 0], sizes = [8, 32], strides = [1, 1]} : vector<32x32xf32> to vector<8x32xf32>
    %cst_38 = arith.constant dense<0.000000e+00> : vector<48x32xf32>
    %78 = tpu.matmul %76, %77, %cst_38 {dimension_numbers = #tpu.dot_dimension_numbers<[1], [0], [0], [1], [0, 0, 1, 1], [], []>} : vector<48x8xf32>, vector<8x32xf32>, vector<48x32xf32> -> vector<48x32xf32>
    %79 = arith.addf %60, %78 : vector<48x32xf32>
    %80 = vector.extract_strided_slice %38 {offsets = [0, 16], sizes = [48, 8], strides = [1, 1]} : vector<48x96xf32> to vector<48x8xf32>
    %81 = vector.extract_strided_slice %38 {offsets = [0, 48], sizes = [48, 8], strides = [1, 1]} : vector<48x96xf32> to vector<48x8xf32>
    %82 = vector.extract_strided_slice %38 {offsets = [0, 80], sizes = [48, 8], strides = [1, 1]} : vector<48x96xf32> to vector<48x8xf32>
    %cst_39 = arith.constant dense<0.000000e+00> : vector<48x48xf32>
    %83 = tpu.matmul %80, %81, %cst_39 {dimension_numbers = #tpu.dot_dimension_numbers<[1], [1], [0], [0], [0, 0, 1, 0], [], []>} : vector<48x8xf32>, vector<48x8xf32>, vector<48x48xf32> -> vector<48x48xf32>
    %84 = arith.addf %83, %5 : vector<48x48xf32>
    %cst_40 = arith.constant dense<0xFF800000> : vector<48xf32>
    %85 = vector.multi_reduction <maximumf>, %84, %cst_40 [1] : vector<48x48xf32> to vector<48xf32>
    %86 = vector.shape_cast %85 : vector<48xf32> to vector<48x1xf32>
    %87 = vector.broadcast %86 : vector<48x1xf32> to vector<48x48xf32>
    %88 = arith.subf %84, %87 : vector<48x48xf32>
    %89 = math.exp %88 : vector<48x48xf32>
    %cst_41 = arith.constant dense<0.000000e+00> : vector<48xf32>
    %90 = vector.multi_reduction <add>, %89, %cst_41 [1] : vector<48x48xf32> to vector<48xf32>
    %91 = vector.shape_cast %90 : vector<48xf32> to vector<48x1xf32>
    %92 = tpu.reciprocal %91 : vector<48x1xf32> -> vector<48x1xf32>
    %93 = vector.broadcast %92 : vector<48x1xf32> to vector<48x48xf32>
    %94 = arith.mulf %89, %93 : vector<48x48xf32>
    %cst_42 = arith.constant dense<0.000000e+00> : vector<48x8xf32>
    %95 = tpu.matmul %94, %82, %cst_42 {dimension_numbers = #tpu.dot_dimension_numbers<[1], [0], [0], [1], [0, 0, 1, 1], [], []>} : vector<48x48xf32>, vector<48x8xf32>, vector<48x8xf32> -> vector<48x8xf32>
    %96 = vector.extract_strided_slice %40 {offsets = [16, 0], sizes = [8, 32], strides = [1, 1]} : vector<32x32xf32> to vector<8x32xf32>
    %cst_43 = arith.constant dense<0.000000e+00> : vector<48x32xf32>
    %97 = tpu.matmul %95, %96, %cst_43 {dimension_numbers = #tpu.dot_dimension_numbers<[1], [0], [0], [1], [0, 0, 1, 1], [], []>} : vector<48x8xf32>, vector<8x32xf32>, vector<48x32xf32> -> vector<48x32xf32>
    %98 = arith.addf %79, %97 : vector<48x32xf32>
    %99 = vector.extract_strided_slice %38 {offsets = [0, 24], sizes = [48, 8], strides = [1, 1]} : vector<48x96xf32> to vector<48x8xf32>
    %100 = vector.extract_strided_slice %38 {offsets = [0, 56], sizes = [48, 8], strides = [1, 1]} : vector<48x96xf32> to vector<48x8xf32>
    %101 = vector.extract_strided_slice %38 {offsets = [0, 88], sizes = [48, 8], strides = [1, 1]} : vector<48x96xf32> to vector<48x8xf32>
    %cst_44 = arith.constant dense<0.000000e+00> : vector<48x48xf32>
    %102 = tpu.matmul %99, %100, %cst_44 {dimension_numbers = #tpu.dot_dimension_numbers<[1], [1], [0], [0], [0, 0, 1, 0], [], []>} : vector<48x8xf32>, vector<48x8xf32>, vector<48x48xf32> -> vector<48x48xf32>
    %103 = arith.addf %102, %5 : vector<48x48xf32>
    %cst_45 = arith.constant dense<0xFF800000> : vector<48xf32>
    %104 = vector.multi_reduction <maximumf>, %103, %cst_45 [1] : vector<48x48xf32> to vector<48xf32>
    %105 = vector.shape_cast %104 : vector<48xf32> to vector<48x1xf32>
    %106 = vector.broadcast %105 : vector<48x1xf32> to vector<48x48xf32>
    %107 = arith.subf %103, %106 : vector<48x48xf32>
    %108 = math.exp %107 : vector<48x48xf32>
    %cst_46 = arith.constant dense<0.000000e+00> : vector<48xf32>
    %109 = vector.multi_reduction <add>, %108, %cst_46 [1] : vector<48x48xf32> to vector<48xf32>
    %110 = vector.shape_cast %109 : vector<48xf32> to vector<48x1xf32>
    %111 = tpu.reciprocal %110 : vector<48x1xf32> -> vector<48x1xf32>
    %112 = vector.broadcast %111 : vector<48x1xf32> to vector<48x48xf32>
    %113 = arith.mulf %108, %112 : vector<48x48xf32>
    %cst_47 = arith.constant dense<0.000000e+00> : vector<48x8xf32>
    %114 = tpu.matmul %113, %101, %cst_47 {dimension_numbers = #tpu.dot_dimension_numbers<[1], [0], [0], [1], [0, 0, 1, 1], [], []>} : vector<48x48xf32>, vector<48x8xf32>, vector<48x8xf32> -> vector<48x8xf32>
    %115 = vector.extract_strided_slice %40 {offsets = [24, 0], sizes = [8, 32], strides = [1, 1]} : vector<32x32xf32> to vector<8x32xf32>
    %cst_48 = arith.constant dense<0.000000e+00> : vector<48x32xf32>
    %116 = tpu.matmul %114, %115, %cst_48 {dimension_numbers = #tpu.dot_dimension_numbers<[1], [0], [0], [1], [0, 0, 1, 1], [], []>} : vector<48x8xf32>, vector<8x32xf32>, vector<48x32xf32> -> vector<48x32xf32>
    %117 = arith.addf %98, %116 : vector<48x32xf32>
    %118 = arith.addf %4, %117 : vector<48x32xf32>
    %c0_49 = arith.constant 0 : index
    %c0_50 = arith.constant 0 : index
    %c0_51 = arith.constant 0 : index
    %119 = vector.load %arg10[%c0_49, %c0_50, %c0_51] : memref<2x1x32xf32, #tpu.memory_space<vmem>>, vector<1x1x32xf32>
    %120 = vector.shape_cast %119 : vector<1x1x32xf32> to vector<1x32xf32>
    %121 = vector.broadcast %120 : vector<1x32xf32> to vector<48x32xf32>
    %122 = arith.addf %118, %121 : vector<48x32xf32>
    %c0_52 = arith.constant 0 : index
    %c0_53 = arith.constant 0 : index
    %c0_54 = arith.constant 0 : index
    %123 = vector.load %arg11[%c0_52, %c0_53, %c0_54] : memref<2x1x32xf32, #tpu.memory_space<vmem>>, vector<1x1x32xf32>
    %124 = vector.shape_cast %123 : vector<1x1x32xf32> to vector<1x32xf32>
    %c0_55 = arith.constant 0 : index
    %c0_56 = arith.constant 0 : index
    %c0_57 = arith.constant 0 : index
    %125 = vector.load %arg12[%c0_55, %c0_56, %c0_57] : memref<2x1x32xf32, #tpu.memory_space<vmem>>, vector<1x1x32xf32>
    %126 = vector.shape_cast %125 : vector<1x1x32xf32> to vector<1x32xf32>
    %cst_58 = arith.constant dense<0.000000e+00> : vector<48xf32>
    %127 = vector.multi_reduction <add>, %122, %cst_58 [1] : vector<48x32xf32> to vector<48xf32>
    %128 = vector.shape_cast %127 : vector<48xf32> to vector<48x1xf32>
    %cst_59 = arith.constant 3.200000e+01 : f32
    %129 = vector.broadcast %cst_59 : f32 to vector<48x1xf32>
    %130 = arith.divf %128, %129 : vector<48x1xf32>
    %131 = arith.mulf %122, %122 : vector<48x32xf32>
    %cst_60 = arith.constant dense<0.000000e+00> : vector<48xf32>
    %132 = vector.multi_reduction <add>, %131, %cst_60 [1] : vector<48x32xf32> to vector<48xf32>
    %133 = vector.shape_cast %132 : vector<48xf32> to vector<48x1xf32>
    %cst_61 = arith.constant 3.200000e+01 : f32
    %134 = vector.broadcast %cst_61 : f32 to vector<48x1xf32>
    %135 = arith.divf %133, %134 : vector<48x1xf32>
    %136 = arith.mulf %130, %130 : vector<48x1xf32>
    %137 = arith.subf %135, %136 : vector<48x1xf32>
    %138 = vector.broadcast %130 : vector<48x1xf32> to vector<48x32xf32>
    %139 = arith.subf %122, %138 : vector<48x32xf32>
    %cst_62 = arith.constant 9.99999997E-7 : f32
    %140 = vector.broadcast %cst_62 : f32 to vector<48x1xf32>
    %141 = arith.addf %137, %140 : vector<48x1xf32>
    %142 = math.rsqrt %141 : vector<48x1xf32>
    %143 = vector.broadcast %142 : vector<48x1xf32> to vector<48x32xf32>
    %144 = arith.mulf %139, %143 : vector<48x32xf32>
    %145 = vector.broadcast %124 : vector<1x32xf32> to vector<48x32xf32>
    %146 = arith.mulf %144, %145 : vector<48x32xf32>
    %147 = vector.broadcast %126 : vector<1x32xf32> to vector<48x32xf32>
    %148 = arith.addf %146, %147 : vector<48x32xf32>
    %c0_63 = arith.constant 0 : index
    %c0_64 = arith.constant 0 : index
    %c0_65 = arith.constant 0 : index
    %149 = vector.load %arg13[%c0_63, %c0_64, %c0_65] : memref<2x32x64xf32, #tpu.memory_space<vmem>>, vector<1x32x64xf32>
    %150 = vector.shape_cast %149 : vector<1x32x64xf32> to vector<32x64xf32>
    %cst_66 = arith.constant dense<0.000000e+00> : vector<48x64xf32>
    %151 = tpu.matmul %148, %150, %cst_66 {dimension_numbers = #tpu.dot_dimension_numbers<[1], [0], [0], [1], [0, 0, 1, 1], [], []>} : vector<48x32xf32>, vector<32x64xf32>, vector<48x64xf32> -> vector<48x64xf32>
    %c0_67 = arith.constant 0 : index
    %c0_68 = arith.constant 0 : index
    %c0_69 = arith.constant 0 : index
    %152 = vector.load %arg14[%c0_67, %c0_68, %c0_69] : memref<2x1x64xf32, #tpu.memory_space<vmem>>, vector<1x1x64xf32>
    %153 = vector.shape_cast %152 : vector<1x1x64xf32> to vector<1x64xf32>
    %154 = vector.broadcast %153 : vector<1x64xf32> to vector<48x64xf32>
    %155 = arith.addf %151, %154 : vector<48x64xf32>
    %cst_70 = arith.constant 5.000000e-01 : f32
    %156 = vector.broadcast %cst_70 : f32 to vector<48x64xf32>
    %157 = arith.mulf %156, %155 : vector<48x64xf32>
    %cst_71 = arith.constant 0.707106769 : f32
    %158 = vector.broadcast %cst_71 : f32 to vector<48x64xf32>
    %159 = arith.mulf %155, %158 : vector<48x64xf32>
    %160 = math.erf %159 : vector<48x64xf32>
    %cst_72 = arith.constant 1.000000e+00 : f32
    %161 = vector.broadcast %cst_72 : f32 to vector<48x64xf32>
    %162 = arith.addf %161, %160 : vector<48x64xf32>
    %163 = arith.mulf %157, %162 : vector<48x64xf32>
    %c0_73 = arith.constant 0 : index
    %c0_74 = arith.constant 0 : index
    %c0_75 = arith.constant 0 : index
    %164 = vector.load %arg15[%c0_73, %c0_74, %c0_75] : memref<2x64x32xf32, #tpu.memory_space<vmem>>, vector<1x64x32xf32>
    %165 = vector.shape_cast %164 : vector<1x64x32xf32> to vector<64x32xf32>
    %cst_76 = arith.constant dense<0.000000e+00> : vector<48x32xf32>
    %166 = tpu.matmul %163, %165, %cst_76 {dimension_numbers = #tpu.dot_dimension_numbers<[1], [0], [0], [1], [0, 0, 1, 1], [], []>} : vector<48x64xf32>, vector<64x32xf32>, vector<48x32xf32> -> vector<48x32xf32>
    %c0_77 = arith.constant 0 : index
    %c0_78 = arith.constant 0 : index
    %c0_79 = arith.constant 0 : index
    %167 = vector.load %arg16[%c0_77, %c0_78, %c0_79] : memref<2x1x32xf32, #tpu.memory_space<vmem>>, vector<1x1x32xf32>
    %168 = vector.shape_cast %167 : vector<1x1x32xf32> to vector<1x32xf32>
    %169 = vector.broadcast %168 : vector<1x32xf32> to vector<48x32xf32>
    %170 = arith.addf %166, %169 : vector<48x32xf32>
    %171 = arith.addf %122, %170 : vector<48x32xf32>
    %c1 = arith.constant 1 : index
    %c0_80 = arith.constant 0 : index
    %c0_81 = arith.constant 0 : index
    %172 = vector.load %arg5[%c1, %c0_80, %c0_81] : memref<2x1x32xf32, #tpu.memory_space<vmem>>, vector<1x1x32xf32>
    %173 = vector.shape_cast %172 : vector<1x1x32xf32> to vector<1x32xf32>
    %c1_82 = arith.constant 1 : index
    %c0_83 = arith.constant 0 : index
    %c0_84 = arith.constant 0 : index
    %174 = vector.load %arg6[%c1_82, %c0_83, %c0_84] : memref<2x1x32xf32, #tpu.memory_space<vmem>>, vector<1x1x32xf32>
    %175 = vector.shape_cast %174 : vector<1x1x32xf32> to vector<1x32xf32>
    %cst_85 = arith.constant dense<0.000000e+00> : vector<48xf32>
    %176 = vector.multi_reduction <add>, %171, %cst_85 [1] : vector<48x32xf32> to vector<48xf32>
    %177 = vector.shape_cast %176 : vector<48xf32> to vector<48x1xf32>
    %cst_86 = arith.constant 3.200000e+01 : f32
    %178 = vector.broadcast %cst_86 : f32 to vector<48x1xf32>
    %179 = arith.divf %177, %178 : vector<48x1xf32>
    %180 = arith.mulf %171, %171 : vector<48x32xf32>
    %cst_87 = arith.constant dense<0.000000e+00> : vector<48xf32>
    %181 = vector.multi_reduction <add>, %180, %cst_87 [1] : vector<48x32xf32> to vector<48xf32>
    %182 = vector.shape_cast %181 : vector<48xf32> to vector<48x1xf32>
    %cst_88 = arith.constant 3.200000e+01 : f32
    %183 = vector.broadcast %cst_88 : f32 to vector<48x1xf32>
    %184 = arith.divf %182, %183 : vector<48x1xf32>
    %185 = arith.mulf %179, %179 : vector<48x1xf32>
    %186 = arith.subf %184, %185 : vector<48x1xf32>
    %187 = vector.broadcast %179 : vector<48x1xf32> to vector<48x32xf32>
    %188 = arith.subf %171, %187 : vector<48x32xf32>
    %cst_89 = arith.constant 9.99999997E-7 : f32
    %189 = vector.broadcast %cst_89 : f32 to vector<48x1xf32>
    %190 = arith.addf %186, %189 : vector<48x1xf32>
    %191 = math.rsqrt %190 : vector<48x1xf32>
    %192 = vector.broadcast %191 : vector<48x1xf32> to vector<48x32xf32>
    %193 = arith.mulf %188, %192 : vector<48x32xf32>
    %194 = vector.broadcast %173 : vector<1x32xf32> to vector<48x32xf32>
    %195 = arith.mulf %193, %194 : vector<48x32xf32>
    %196 = vector.broadcast %175 : vector<1x32xf32> to vector<48x32xf32>
    %197 = arith.addf %195, %196 : vector<48x32xf32>
    %c1_90 = arith.constant 1 : index
    %c0_91 = arith.constant 0 : index
    %c0_92 = arith.constant 0 : index
    %198 = vector.load %arg7[%c1_90, %c0_91, %c0_92] : memref<2x32x96xf32, #tpu.memory_space<vmem>>, vector<1x32x96xf32>
    %199 = vector.shape_cast %198 : vector<1x32x96xf32> to vector<32x96xf32>
    %cst_93 = arith.constant dense<0.000000e+00> : vector<48x96xf32>
    %200 = tpu.matmul %197, %199, %cst_93 {dimension_numbers = #tpu.dot_dimension_numbers<[1], [0], [0], [1], [0, 0, 1, 1], [], []>} : vector<48x32xf32>, vector<32x96xf32>, vector<48x96xf32> -> vector<48x96xf32>
    %c1_94 = arith.constant 1 : index
    %c0_95 = arith.constant 0 : index
    %c0_96 = arith.constant 0 : index
    %201 = vector.load %arg8[%c1_94, %c0_95, %c0_96] : memref<2x1x96xf32, #tpu.memory_space<vmem>>, vector<1x1x96xf32>
    %202 = vector.shape_cast %201 : vector<1x1x96xf32> to vector<1x96xf32>
    %203 = vector.broadcast %202 : vector<1x96xf32> to vector<48x96xf32>
    %204 = arith.addf %200, %203 : vector<48x96xf32>
    %c1_97 = arith.constant 1 : index
    %c0_98 = arith.constant 0 : index
    %c0_99 = arith.constant 0 : index
    %205 = vector.load %arg9[%c1_97, %c0_98, %c0_99] : memref<2x32x32xf32, #tpu.memory_space<vmem>>, vector<1x32x32xf32>
    %206 = vector.shape_cast %205 : vector<1x32x32xf32> to vector<32x32xf32>
    %cst_100 = arith.constant 0.000000e+00 : f32
    %207 = vector.broadcast %cst_100 : f32 to vector<48x32xf32>
    %208 = vector.extract_strided_slice %204 {offsets = [0, 0], sizes = [48, 8], strides = [1, 1]} : vector<48x96xf32> to vector<48x8xf32>
    %209 = vector.extract_strided_slice %204 {offsets = [0, 32], sizes = [48, 8], strides = [1, 1]} : vector<48x96xf32> to vector<48x8xf32>
    %210 = vector.extract_strided_slice %204 {offsets = [0, 64], sizes = [48, 8], strides = [1, 1]} : vector<48x96xf32> to vector<48x8xf32>
    %cst_101 = arith.constant dense<0.000000e+00> : vector<48x48xf32>
    %211 = tpu.matmul %208, %209, %cst_101 {dimension_numbers = #tpu.dot_dimension_numbers<[1], [1], [0], [0], [0, 0, 1, 0], [], []>} : vector<48x8xf32>, vector<48x8xf32>, vector<48x48xf32> -> vector<48x48xf32>
    %212 = arith.addf %211, %5 : vector<48x48xf32>
    %cst_102 = arith.constant dense<0xFF800000> : vector<48xf32>
    %213 = vector.multi_reduction <maximumf>, %212, %cst_102 [1] : vector<48x48xf32> to vector<48xf32>
    %214 = vector.shape_cast %213 : vector<48xf32> to vector<48x1xf32>
    %215 = vector.broadcast %214 : vector<48x1xf32> to vector<48x48xf32>
    %216 = arith.subf %212, %215 : vector<48x48xf32>
    %217 = math.exp %216 : vector<48x48xf32>
    %cst_103 = arith.constant dense<0.000000e+00> : vector<48xf32>
    %218 = vector.multi_reduction <add>, %217, %cst_103 [1] : vector<48x48xf32> to vector<48xf32>
    %219 = vector.shape_cast %218 : vector<48xf32> to vector<48x1xf32>
    %220 = tpu.reciprocal %219 : vector<48x1xf32> -> vector<48x1xf32>
    %221 = vector.broadcast %220 : vector<48x1xf32> to vector<48x48xf32>
    %222 = arith.mulf %217, %221 : vector<48x48xf32>
    %cst_104 = arith.constant dense<0.000000e+00> : vector<48x8xf32>
    %223 = tpu.matmul %222, %210, %cst_104 {dimension_numbers = #tpu.dot_dimension_numbers<[1], [0], [0], [1], [0, 0, 1, 1], [], []>} : vector<48x48xf32>, vector<48x8xf32>, vector<48x8xf32> -> vector<48x8xf32>
    %224 = vector.extract_strided_slice %206 {offsets = [0, 0], sizes = [8, 32], strides = [1, 1]} : vector<32x32xf32> to vector<8x32xf32>
    %cst_105 = arith.constant dense<0.000000e+00> : vector<48x32xf32>
    %225 = tpu.matmul %223, %224, %cst_105 {dimension_numbers = #tpu.dot_dimension_numbers<[1], [0], [0], [1], [0, 0, 1, 1], [], []>} : vector<48x8xf32>, vector<8x32xf32>, vector<48x32xf32> -> vector<48x32xf32>
    %226 = arith.addf %207, %225 : vector<48x32xf32>
    %227 = vector.extract_strided_slice %204 {offsets = [0, 8], sizes = [48, 8], strides = [1, 1]} : vector<48x96xf32> to vector<48x8xf32>
    %228 = vector.extract_strided_slice %204 {offsets = [0, 40], sizes = [48, 8], strides = [1, 1]} : vector<48x96xf32> to vector<48x8xf32>
    %229 = vector.extract_strided_slice %204 {offsets = [0, 72], sizes = [48, 8], strides = [1, 1]} : vector<48x96xf32> to vector<48x8xf32>
    %cst_106 = arith.constant dense<0.000000e+00> : vector<48x48xf32>
    %230 = tpu.matmul %227, %228, %cst_106 {dimension_numbers = #tpu.dot_dimension_numbers<[1], [1], [0], [0], [0, 0, 1, 0], [], []>} : vector<48x8xf32>, vector<48x8xf32>, vector<48x48xf32> -> vector<48x48xf32>
    %231 = arith.addf %230, %5 : vector<48x48xf32>
    %cst_107 = arith.constant dense<0xFF800000> : vector<48xf32>
    %232 = vector.multi_reduction <maximumf>, %231, %cst_107 [1] : vector<48x48xf32> to vector<48xf32>
    %233 = vector.shape_cast %232 : vector<48xf32> to vector<48x1xf32>
    %234 = vector.broadcast %233 : vector<48x1xf32> to vector<48x48xf32>
    %235 = arith.subf %231, %234 : vector<48x48xf32>
    %236 = math.exp %235 : vector<48x48xf32>
    %cst_108 = arith.constant dense<0.000000e+00> : vector<48xf32>
    %237 = vector.multi_reduction <add>, %236, %cst_108 [1] : vector<48x48xf32> to vector<48xf32>
    %238 = vector.shape_cast %237 : vector<48xf32> to vector<48x1xf32>
    %239 = tpu.reciprocal %238 : vector<48x1xf32> -> vector<48x1xf32>
    %240 = vector.broadcast %239 : vector<48x1xf32> to vector<48x48xf32>
    %241 = arith.mulf %236, %240 : vector<48x48xf32>
    %cst_109 = arith.constant dense<0.000000e+00> : vector<48x8xf32>
    %242 = tpu.matmul %241, %229, %cst_109 {dimension_numbers = #tpu.dot_dimension_numbers<[1], [0], [0], [1], [0, 0, 1, 1], [], []>} : vector<48x48xf32>, vector<48x8xf32>, vector<48x8xf32> -> vector<48x8xf32>
    %243 = vector.extract_strided_slice %206 {offsets = [8, 0], sizes = [8, 32], strides = [1, 1]} : vector<32x32xf32> to vector<8x32xf32>
    %cst_110 = arith.constant dense<0.000000e+00> : vector<48x32xf32>
    %244 = tpu.matmul %242, %243, %cst_110 {dimension_numbers = #tpu.dot_dimension_numbers<[1], [0], [0], [1], [0, 0, 1, 1], [], []>} : vector<48x8xf32>, vector<8x32xf32>, vector<48x32xf32> -> vector<48x32xf32>
    %245 = arith.addf %226, %244 : vector<48x32xf32>
    %246 = vector.extract_strided_slice %204 {offsets = [0, 16], sizes = [48, 8], strides = [1, 1]} : vector<48x96xf32> to vector<48x8xf32>
    %247 = vector.extract_strided_slice %204 {offsets = [0, 48], sizes = [48, 8], strides = [1, 1]} : vector<48x96xf32> to vector<48x8xf32>
    %248 = vector.extract_strided_slice %204 {offsets = [0, 80], sizes = [48, 8], strides = [1, 1]} : vector<48x96xf32> to vector<48x8xf32>
    %cst_111 = arith.constant dense<0.000000e+00> : vector<48x48xf32>
    %249 = tpu.matmul %246, %247, %cst_111 {dimension_numbers = #tpu.dot_dimension_numbers<[1], [1], [0], [0], [0, 0, 1, 0], [], []>} : vector<48x8xf32>, vector<48x8xf32>, vector<48x48xf32> -> vector<48x48xf32>
    %250 = arith.addf %249, %5 : vector<48x48xf32>
    %cst_112 = arith.constant dense<0xFF800000> : vector<48xf32>
    %251 = vector.multi_reduction <maximumf>, %250, %cst_112 [1] : vector<48x48xf32> to vector<48xf32>
    %252 = vector.shape_cast %251 : vector<48xf32> to vector<48x1xf32>
    %253 = vector.broadcast %252 : vector<48x1xf32> to vector<48x48xf32>
    %254 = arith.subf %250, %253 : vector<48x48xf32>
    %255 = math.exp %254 : vector<48x48xf32>
    %cst_113 = arith.constant dense<0.000000e+00> : vector<48xf32>
    %256 = vector.multi_reduction <add>, %255, %cst_113 [1] : vector<48x48xf32> to vector<48xf32>
    %257 = vector.shape_cast %256 : vector<48xf32> to vector<48x1xf32>
    %258 = tpu.reciprocal %257 : vector<48x1xf32> -> vector<48x1xf32>
    %259 = vector.broadcast %258 : vector<48x1xf32> to vector<48x48xf32>
    %260 = arith.mulf %255, %259 : vector<48x48xf32>
    %cst_114 = arith.constant dense<0.000000e+00> : vector<48x8xf32>
    %261 = tpu.matmul %260, %248, %cst_114 {dimension_numbers = #tpu.dot_dimension_numbers<[1], [0], [0], [1], [0, 0, 1, 1], [], []>} : vector<48x48xf32>, vector<48x8xf32>, vector<48x8xf32> -> vector<48x8xf32>
    %262 = vector.extract_strided_slice %206 {offsets = [16, 0], sizes = [8, 32], strides = [1, 1]} : vector<32x32xf32> to vector<8x32xf32>
    %cst_115 = arith.constant dense<0.000000e+00> : vector<48x32xf32>
    %263 = tpu.matmul %261, %262, %cst_115 {dimension_numbers = #tpu.dot_dimension_numbers<[1], [0], [0], [1], [0, 0, 1, 1], [], []>} : vector<48x8xf32>, vector<8x32xf32>, vector<48x32xf32> -> vector<48x32xf32>
    %264 = arith.addf %245, %263 : vector<48x32xf32>
    %265 = vector.extract_strided_slice %204 {offsets = [0, 24], sizes = [48, 8], strides = [1, 1]} : vector<48x96xf32> to vector<48x8xf32>
    %266 = vector.extract_strided_slice %204 {offsets = [0, 56], sizes = [48, 8], strides = [1, 1]} : vector<48x96xf32> to vector<48x8xf32>
    %267 = vector.extract_strided_slice %204 {offsets = [0, 88], sizes = [48, 8], strides = [1, 1]} : vector<48x96xf32> to vector<48x8xf32>
    %cst_116 = arith.constant dense<0.000000e+00> : vector<48x48xf32>
    %268 = tpu.matmul %265, %266, %cst_116 {dimension_numbers = #tpu.dot_dimension_numbers<[1], [1], [0], [0], [0, 0, 1, 0], [], []>} : vector<48x8xf32>, vector<48x8xf32>, vector<48x48xf32> -> vector<48x48xf32>
    %269 = arith.addf %268, %5 : vector<48x48xf32>
    %cst_117 = arith.constant dense<0xFF800000> : vector<48xf32>
    %270 = vector.multi_reduction <maximumf>, %269, %cst_117 [1] : vector<48x48xf32> to vector<48xf32>
    %271 = vector.shape_cast %270 : vector<48xf32> to vector<48x1xf32>
    %272 = vector.broadcast %271 : vector<48x1xf32> to vector<48x48xf32>
    %273 = arith.subf %269, %272 : vector<48x48xf32>
    %274 = math.exp %273 : vector<48x48xf32>
    %cst_118 = arith.constant dense<0.000000e+00> : vector<48xf32>
    %275 = vector.multi_reduction <add>, %274, %cst_118 [1] : vector<48x48xf32> to vector<48xf32>
    %276 = vector.shape_cast %275 : vector<48xf32> to vector<48x1xf32>
    %277 = tpu.reciprocal %276 : vector<48x1xf32> -> vector<48x1xf32>
    %278 = vector.broadcast %277 : vector<48x1xf32> to vector<48x48xf32>
    %279 = arith.mulf %274, %278 : vector<48x48xf32>
    %cst_119 = arith.constant dense<0.000000e+00> : vector<48x8xf32>
    %280 = tpu.matmul %279, %267, %cst_119 {dimension_numbers = #tpu.dot_dimension_numbers<[1], [0], [0], [1], [0, 0, 1, 1], [], []>} : vector<48x48xf32>, vector<48x8xf32>, vector<48x8xf32> -> vector<48x8xf32>
    %281 = vector.extract_strided_slice %206 {offsets = [24, 0], sizes = [8, 32], strides = [1, 1]} : vector<32x32xf32> to vector<8x32xf32>
    %cst_120 = arith.constant dense<0.000000e+00> : vector<48x32xf32>
    %282 = tpu.matmul %280, %281, %cst_120 {dimension_numbers = #tpu.dot_dimension_numbers<[1], [0], [0], [1], [0, 0, 1, 1], [], []>} : vector<48x8xf32>, vector<8x32xf32>, vector<48x32xf32> -> vector<48x32xf32>
    %283 = arith.addf %264, %282 : vector<48x32xf32>
    %284 = arith.addf %171, %283 : vector<48x32xf32>
    %c1_121 = arith.constant 1 : index
    %c0_122 = arith.constant 0 : index
    %c0_123 = arith.constant 0 : index
    %285 = vector.load %arg10[%c1_121, %c0_122, %c0_123] : memref<2x1x32xf32, #tpu.memory_space<vmem>>, vector<1x1x32xf32>
    %286 = vector.shape_cast %285 : vector<1x1x32xf32> to vector<1x32xf32>
    %287 = vector.broadcast %286 : vector<1x32xf32> to vector<48x32xf32>
    %288 = arith.addf %284, %287 : vector<48x32xf32>
    %c1_124 = arith.constant 1 : index
    %c0_125 = arith.constant 0 : index
    %c0_126 = arith.constant 0 : index
    %289 = vector.load %arg11[%c1_124, %c0_125, %c0_126] : memref<2x1x32xf32, #tpu.memory_space<vmem>>, vector<1x1x32xf32>
    %290 = vector.shape_cast %289 : vector<1x1x32xf32> to vector<1x32xf32>
    %c1_127 = arith.constant 1 : index
    %c0_128 = arith.constant 0 : index
    %c0_129 = arith.constant 0 : index
    %291 = vector.load %arg12[%c1_127, %c0_128, %c0_129] : memref<2x1x32xf32, #tpu.memory_space<vmem>>, vector<1x1x32xf32>
    %292 = vector.shape_cast %291 : vector<1x1x32xf32> to vector<1x32xf32>
    %cst_130 = arith.constant dense<0.000000e+00> : vector<48xf32>
    %293 = vector.multi_reduction <add>, %288, %cst_130 [1] : vector<48x32xf32> to vector<48xf32>
    %294 = vector.shape_cast %293 : vector<48xf32> to vector<48x1xf32>
    %cst_131 = arith.constant 3.200000e+01 : f32
    %295 = vector.broadcast %cst_131 : f32 to vector<48x1xf32>
    %296 = arith.divf %294, %295 : vector<48x1xf32>
    %297 = arith.mulf %288, %288 : vector<48x32xf32>
    %cst_132 = arith.constant dense<0.000000e+00> : vector<48xf32>
    %298 = vector.multi_reduction <add>, %297, %cst_132 [1] : vector<48x32xf32> to vector<48xf32>
    %299 = vector.shape_cast %298 : vector<48xf32> to vector<48x1xf32>
    %cst_133 = arith.constant 3.200000e+01 : f32
    %300 = vector.broadcast %cst_133 : f32 to vector<48x1xf32>
    %301 = arith.divf %299, %300 : vector<48x1xf32>
    %302 = arith.mulf %296, %296 : vector<48x1xf32>
    %303 = arith.subf %301, %302 : vector<48x1xf32>
    %304 = vector.broadcast %296 : vector<48x1xf32> to vector<48x32xf32>
    %305 = arith.subf %288, %304 : vector<48x32xf32>
    %cst_134 = arith.constant 9.99999997E-7 : f32
    %306 = vector.broadcast %cst_134 : f32 to vector<48x1xf32>
    %307 = arith.addf %303, %306 : vector<48x1xf32>
    %308 = math.rsqrt %307 : vector<48x1xf32>
    %309 = vector.broadcast %308 : vector<48x1xf32> to vector<48x32xf32>
    %310 = arith.mulf %305, %309 : vector<48x32xf32>
    %311 = vector.broadcast %290 : vector<1x32xf32> to vector<48x32xf32>
    %312 = arith.mulf %310, %311 : vector<48x32xf32>
    %313 = vector.broadcast %292 : vector<1x32xf32> to vector<48x32xf32>
    %314 = arith.addf %312, %313 : vector<48x32xf32>
    %c1_135 = arith.constant 1 : index
    %c0_136 = arith.constant 0 : index
    %c0_137 = arith.constant 0 : index
    %315 = vector.load %arg13[%c1_135, %c0_136, %c0_137] : memref<2x32x64xf32, #tpu.memory_space<vmem>>, vector<1x32x64xf32>
    %316 = vector.shape_cast %315 : vector<1x32x64xf32> to vector<32x64xf32>
    %cst_138 = arith.constant dense<0.000000e+00> : vector<48x64xf32>
    %317 = tpu.matmul %314, %316, %cst_138 {dimension_numbers = #tpu.dot_dimension_numbers<[1], [0], [0], [1], [0, 0, 1, 1], [], []>} : vector<48x32xf32>, vector<32x64xf32>, vector<48x64xf32> -> vector<48x64xf32>
    %c1_139 = arith.constant 1 : index
    %c0_140 = arith.constant 0 : index
    %c0_141 = arith.constant 0 : index
    %318 = vector.load %arg14[%c1_139, %c0_140, %c0_141] : memref<2x1x64xf32, #tpu.memory_space<vmem>>, vector<1x1x64xf32>
    %319 = vector.shape_cast %318 : vector<1x1x64xf32> to vector<1x64xf32>
    %320 = vector.broadcast %319 : vector<1x64xf32> to vector<48x64xf32>
    %321 = arith.addf %317, %320 : vector<48x64xf32>
    %cst_142 = arith.constant 5.000000e-01 : f32
    %322 = vector.broadcast %cst_142 : f32 to vector<48x64xf32>
    %323 = arith.mulf %322, %321 : vector<48x64xf32>
    %cst_143 = arith.constant 0.707106769 : f32
    %324 = vector.broadcast %cst_143 : f32 to vector<48x64xf32>
    %325 = arith.mulf %321, %324 : vector<48x64xf32>
    %326 = math.erf %325 : vector<48x64xf32>
    %cst_144 = arith.constant 1.000000e+00 : f32
    %327 = vector.broadcast %cst_144 : f32 to vector<48x64xf32>
    %328 = arith.addf %327, %326 : vector<48x64xf32>
    %329 = arith.mulf %323, %328 : vector<48x64xf32>
    %c1_145 = arith.constant 1 : index
    %c0_146 = arith.constant 0 : index
    %c0_147 = arith.constant 0 : index
    %330 = vector.load %arg15[%c1_145, %c0_146, %c0_147] : memref<2x64x32xf32, #tpu.memory_space<vmem>>, vector<1x64x32xf32>
    %331 = vector.shape_cast %330 : vector<1x64x32xf32> to vector<64x32xf32>
    %cst_148 = arith.constant dense<0.000000e+00> : vector<48x32xf32>
    %332 = tpu.matmul %329, %331, %cst_148 {dimension_numbers = #tpu.dot_dimension_numbers<[1], [0], [0], [1], [0, 0, 1, 1], [], []>} : vector<48x64xf32>, vector<64x32xf32>, vector<48x32xf32> -> vector<48x32xf32>
    %c1_149 = arith.constant 1 : index
    %c0_150 = arith.constant 0 : index
    %c0_151 = arith.constant 0 : index
    %333 = vector.load %arg16[%c1_149, %c0_150, %c0_151] : memref<2x1x32xf32, #tpu.memory_space<vmem>>, vector<1x1x32xf32>
    %334 = vector.shape_cast %333 : vector<1x1x32xf32> to vector<1x32xf32>
    %335 = vector.broadcast %334 : vector<1x32xf32> to vector<48x32xf32>
    %336 = arith.addf %332, %335 : vector<48x32xf32>
    %337 = arith.addf %288, %336 : vector<48x32xf32>
    %c0_152 = arith.constant 0 : index
    %c0_153 = arith.constant 0 : index
    %338 = vector.load %arg3[%c0_152, %c0_153] : memref<2x48xf32, #tpu.memory_space<vmem>>, vector<2x48xf32>
    %cst_154 = arith.constant dense<0.000000e+00> : vector<2x32xf32>
    %339 = tpu.matmul %338, %337, %cst_154 {dimension_numbers = #tpu.dot_dimension_numbers<[1], [0], [0], [1], [0, 0, 1, 1], [], []>} : vector<2x48xf32>, vector<48x32xf32>, vector<2x32xf32> -> vector<2x32xf32>
    %c0_155 = arith.constant 0 : index
    %c0_156 = arith.constant 0 : index
    %340 = vector.load %arg17[%c0_155, %c0_156] : memref<1x32xf32, #tpu.memory_space<vmem>>, vector<1x32xf32>
    %c0_157 = arith.constant 0 : index
    %c0_158 = arith.constant 0 : index
    %341 = vector.load %arg18[%c0_157, %c0_158] : memref<1x32xf32, #tpu.memory_space<vmem>>, vector<1x32xf32>
    %cst_159 = arith.constant dense<0.000000e+00> : vector<2xf32>
    %342 = vector.multi_reduction <add>, %339, %cst_159 [1] : vector<2x32xf32> to vector<2xf32>
    %343 = vector.shape_cast %342 : vector<2xf32> to vector<2x1xf32>
    %cst_160 = arith.constant 3.200000e+01 : f32
    %344 = vector.broadcast %cst_160 : f32 to vector<2x1xf32>
    %345 = arith.divf %343, %344 : vector<2x1xf32>
    %346 = arith.mulf %339, %339 : vector<2x32xf32>
    %cst_161 = arith.constant dense<0.000000e+00> : vector<2xf32>
    %347 = vector.multi_reduction <add>, %346, %cst_161 [1] : vector<2x32xf32> to vector<2xf32>
    %348 = vector.shape_cast %347 : vector<2xf32> to vector<2x1xf32>
    %cst_162 = arith.constant 3.200000e+01 : f32
    %349 = vector.broadcast %cst_162 : f32 to vector<2x1xf32>
    %350 = arith.divf %348, %349 : vector<2x1xf32>
    %351 = arith.mulf %345, %345 : vector<2x1xf32>
    %352 = arith.subf %350, %351 : vector<2x1xf32>
    %353 = vector.broadcast %345 : vector<2x1xf32> to vector<2x32xf32>
    %354 = arith.subf %339, %353 : vector<2x32xf32>
    %cst_163 = arith.constant 9.99999997E-7 : f32
    %355 = vector.broadcast %cst_163 : f32 to vector<2x1xf32>
    %356 = arith.addf %352, %355 : vector<2x1xf32>
    %357 = math.rsqrt %356 : vector<2x1xf32>
    %358 = vector.broadcast %357 : vector<2x1xf32> to vector<2x32xf32>
    %359 = arith.mulf %354, %358 : vector<2x32xf32>
    %360 = vector.broadcast %340 : vector<1x32xf32> to vector<2x32xf32>
    %361 = arith.mulf %359, %360 : vector<2x32xf32>
    %362 = vector.broadcast %341 : vector<1x32xf32> to vector<2x32xf32>
    %363 = arith.addf %361, %362 : vector<2x32xf32>
    %c0_164 = arith.constant 0 : index
    %c0_165 = arith.constant 0 : index
    %364 = vector.load %arg19[%c0_164, %c0_165] : memref<32x10xf32, #tpu.memory_space<vmem>>, vector<32x10xf32>
    %cst_166 = arith.constant dense<0.000000e+00> : vector<2x10xf32>
    %365 = tpu.matmul %363, %364, %cst_166 {dimension_numbers = #tpu.dot_dimension_numbers<[1], [0], [0], [1], [0, 0, 1, 1], [], []>} : vector<2x32xf32>, vector<32x10xf32>, vector<2x10xf32> -> vector<2x10xf32>
    %c0_167 = arith.constant 0 : index
    %c0_168 = arith.constant 0 : index
    %366 = vector.load %arg20[%c0_167, %c0_168] : memref<1x10xf32, #tpu.memory_space<vmem>>, vector<1x10xf32>
    %367 = vector.broadcast %366 : vector<1x10xf32> to vector<2x10xf32>
    %368 = arith.addf %365, %367 : vector<2x10xf32>
    %c0_169 = arith.constant 0 : index
    %c0_170 = arith.constant 0 : index
    %369 = vector.load %arg21[%c0_169, %c0_170] : memref<2x10xf32, #tpu.memory_space<vmem>>, vector<2x10xf32>
    tpu.vector_store %arg21[%c0_169, %c0_170], %368 {strides = array<i32>} : memref<2x10xf32, #tpu.memory_space<vmem>>, vector<2x10xf32>,
    return
  }
}

</mosaic_0001>

<bundles_post_ra>
// kernel: _vit_forward.1
= control target key start
LH: loop header
LB: loop body
LE: loop exit
PB: predicated region body
PF: predicated region fallthrough
CT: control target
= control target key end

     0   :  { %s8574_s0 = inlined_call_operand.vmem [shape: f32[48,48], index: 0, kind: input, shape index: {}]   ;;  %s8575_s1 = inlined_call_operand.vmem [shape: f32[48,32], index: 1, kind: input, shape index: {}]   ;;  %s8576_s2 = inlined_call_operand.vmem [shape: f32[48,48], index: 2, kind: input, shape index: {}]   ;;  %s8577_s3 = inlined_call_operand.vmem [shape: f32[2,48], index: 3, kind: input, shape index: {}]   ;;  %s8578_s4 = inlined_call_operand.vmem [shape: f32[48,32], index: 4, kind: input, shape index: {}]   ;;  %s8579_s5 = inlined_call_operand.vmem [shape: f32[2,1,32], index: 5, kind: input, shape index: {}]   ;;  %s8580_s6 = inlined_call_operand.vmem [shape: f32[2,1,32], index: 6, kind: input, shape index: {}]   ;;  %s8581_s7 = inlined_call_operand.vmem [shape: f32[2,32,96], index: 7, kind: input, shape index: {}]   ;;  %s8582_s8 = inlined_call_operand.vmem [shape: f32[2,1,96], index: 8, kind: input, shape index: {}]   ;;  %s8583_s9 = inlined_call_operand.vmem [shape: f32[2,32,32], index: 9, kind: input, shape index: {}]   ;;  %s8584_s10 = inlined_call_operand.vmem [shape: f32[2,1,32], index: 10, kind: input, shape index: {}]   ;;  %s8585_s11 = inlined_call_operand.vmem [shape: f32[2,1,32], index: 11, kind: input, shape index: {}]   ;;  %s8586_s12 = inlined_call_operand.vmem [shape: f32[2,1,32], index: 12, kind: input, shape index: {}]   ;;  %s8587_s13 = inlined_call_operand.vmem [shape: f32[2,32,64], index: 13, kind: input, shape index: {}]   ;;  %s8588_s14 = inlined_call_operand.vmem [shape: f32[2,1,64], index: 14, kind: input, shape index: {}]   ;;  %s8589_s15 = inlined_call_operand.vmem [shape: f32[2,64,32], index: 15, kind: input, shape index: {}]   ;;  %s8590_s16 = inlined_call_operand.vmem [shape: f32[2,1,32], index: 16, kind: input, shape index: {}]   ;;  %s8591_s17 = inlined_call_operand.vmem [shape: f32[1,32], index: 17, kind: input, shape index: {}]   ;;  %s8592_s18 = inlined_call_operand.vmem [shape: f32[1,32], index: 18, kind: input, shape index: {}]   ;;  %s8593_s19 = inlined_call_operand.vmem [shape: f32[32,10], index: 19, kind: input, shape index: {}]   ;;  %s8594_s20 = inlined_call_operand.vmem [shape: f32[1,10], index: 20, kind: input, shape index: {}]   ;;  %s8595_s21 = inlined_call_operand.hbm [shape: f32[2,10], index: 21, kind: output, shape index: {}]  }
   0x1   :  { %8613 = sst [smem:[#allocation5_spill]] %s8574_s0 }
   0x2   :  { %8614 = sst [smem:[#allocation6_spill]] %s8575_s1 }
   0x3   :  { %8615 = sst [smem:[#allocation7_spill]] %s8576_s2 }
   0x4   :  { %8616 = sst [smem:[#allocation8_spill]] %s8577_s3 }
   0x5   :  { %8617 = sst [smem:[#allocation9_spill]] %s8578_s4 }
   0x6   :  { %8618 = sst [smem:[#allocation10_spill]] %s8579_s5 }
   0x7   :  { %s8619_s26 = sld [smem:[#allocation9_spill]]  ;;  %vm87_vm0 = vcmask 392192  }
   0x8   :  { %s8620_s30 = sld [smem:[#allocation5_spill]] }
   0xd   :  { %v80_v0 = vld [vmem:[%s8619_s26 + $0x28] sm:$0xff]  ;;  %v79_v1 = vld [vmem:[%s8619_s26 + $0x20] sm:$0xff]  ;;  %v78_v2 = vld [vmem:[%s8619_s26 + $0x18] sm:$0xff] }
   0xe   :  { %6022 = vmatprep.subr.mxu0 %v80_v0  ;;  %v69_v3 = vld [vmem:[%s8620_s30] sm:$0xff]  ;;  %v77_v4 = vld [vmem:[%s8619_s26 + $0x10] sm:$0xff] }
   0xf   :  { %6023 = vmatpush3.msra.mxu0 %v80_v0  ;;  %6034 = vmatprep.mubr.msk.f32.mxu0 %vm87_vm0, %v69_v3 }
  0x10   :  { %6024 = vmatprep.subr.mxu0 %v79_v1 }
  0x11   :  { %6025 = vmatpush3.msra.mxu0 %v79_v1 }
  0x12   :  { %26 = vsyncpa [#allocation3], 0  ;;  %6026 = vmatprep.subr.mxu0 %v78_v2  ;;  %v76_v5 = vld [vmem:[%s8619_s26 + $0x8] sm:$0xff]  ;;  %v75_v6 = vld [vmem:[%s8619_s26] sm:$0xff]  ;;  %s8621_s24 = sld [smem:[#allocation6_spill]]  ;;  %vm209_vm1 = vcmask 261120  }
  0x13   :  { %6027 = vmatpush3.msra.mxu0 %v78_v2  ;;  %v70_v7 = vld [vmem:[%s8620_s30 + $0x8] sm:$0xff]  ;;  %v71_v8 = vld [vmem:[%s8620_s30 + $0x10] sm:$0xff]  ;;  %v72_v9 = vld [vmem:[%s8620_s30 + $0x18] sm:$0xff]  ;;  %s8622_s28 = sld [smem:[#allocation10_spill]]  ;;  %vm471_vm2 = vcmask 64512   ;;  %s6919_s5 = smov 96  }
  0x14   :  { %6028 = vmatprep.subr.mxu0 %v77_v4  ;;  %v73_v10 = vld [vmem:[%s8620_s30 + $0x20] sm:$0xff]  ;;  %v74_v11 = vld [vmem:[%s8620_s30 + $0x28] sm:$0xff]  ;;  %v328_v48 = vld [vmem:[%s8581_s7 + $0x18] sm:$0xff]  ;;  %s6920_s22 = smov 64   ;;  %s6921_s23 = smov 88   ;;  %vm2576_vm3 = vcmask 523264  }
  0x15   :  { %6029 = vmatpush3.msra.mxu0 %v77_v4  ;;  %6043 = vmatprep.subr.mxu1 %v328_v48  ;;  %v327_v49 = vld [vmem:[%s8581_s7 + $0x10] sm:$0xff]  ;;  %v326_v50 = vld [vmem:[%s8581_s7 + $0x8] sm:$0xff]  ;;  %v325_v51 = vld [vmem:[%s8581_s7] sm:$0xff]  ;;  %s8623_s2 = sld [smem:[#allocation7_spill]]  ;;  %s6922_s25 = smov 120   ;;  %vm6931_vm4 = vmmov 0  }
  0x16   :  { %6030 = vmatprep.subr.mxu0 %v76_v5  ;;  %6044 = vmatpush3.msra.mxu1 %v328_v48  ;;  %s6923_s3 = smov 56   ;;  %s8611_s29 = smov 80   ;;  %vm5269_vm5 = vcmask 254976   ;;  %vm5383_vm6 = vcmask 74752  }
  0x17   :  { %6031 = vmatpush3.msra.mxu0 %v76_v5  ;;  %6045 = vmatprep.subr.mxu1 %v327_v49  ;;  %s8609_s0 = smov 112   ;;  %s8607_s26 = smov 72  }
  0x18   :  { %6032 = vmatprep.subr.mxu0 %v75_v6  ;;  %v82_v12 = vld [vmem:[%s8621_s24 + $0x8] sm:$0xff]  ;;  %v81_v14 = vld [vmem:[%s8621_s24] sm:$0xff]  ;;  %v83_v21 = vld [vmem:[%s8621_s24 + $0x10] sm:$0xff]  ;;  %6046 = vmatpush3.msra.mxu1 %v327_v49  ;;  %s8605_s4 = smov 104   ;;  %s8603_s30 = smov 48  }
  0x19   :  { %6033 = vmatpush3.msra.mxu0 %v75_v6  ;;  %v84_v24 = vld [vmem:[%s8621_s24 + $0x18] sm:$0xff]  ;;  %v85_v33 = vld [vmem:[%s8621_s24 + $0x20] sm:$0xff]  ;;  %v86_v38 = vld [vmem:[%s8621_s24 + $0x28] sm:$0xff]  ;;  %6047 = vmatprep.subr.mxu1 %v326_v50  ;;  %s8601_s27 = smov 40  }
  0x1a   :  { %6035 = vmatmul.mubr.msk.f32.vlgmr.msra.gmra.mxu0 %vm87_vm0, %v70_v7  ;;  %6048 = vmatpush3.msra.mxu1 %v326_v50 }
  0x1b   :  { %6037 = vmatprep.mubr.msk.f32.mxu0 %vm87_vm0, %v71_v8  ;;  %6049 = vmatprep.subr.mxu1 %v325_v51 }
  0x1c   :  { %6050 = vmatpush3.msra.mxu1 %v325_v51 }
  0x1e   :  { %6038 = vmatmul.mubr.msk.f32.gmra.mxu0 %vm87_vm0, %v72_v9 }
  0x1f   :  { %6040 = vmatprep.mubr.msk.f32.mxu0 %vm87_vm0, %v73_v10 }
  0x22   :  { %6041 = vmatmul.mubr.msk.f32.gmra.mxu0 %vm87_vm0, %v74_v11 }
  0xda   :  { %v6036_v13 = vpop.f32.mrf.mxu0 }
  0xdb   :  { %v7091_v15 = vadd.f32 %v6036_v13, %v82_v12 }
  0xdc   :  { %v172_v16 = vpop.f32.mrf.mxu0 }
  0xdd   :  { %v7093_v17 = vadd.f32 %v172_v16, %v81_v14  ;;  %v213_v18 = vsel %vm209_vm1, %v7091_v15, 0.0  ;;  %v236_v19 = vmul.f32 %v7091_v15, %v7091_v15 }
  0xde   :  { %214 = vadd.xlane.f32.xlu0 %v213_v18  ;;  %v6039_v20 = vpop.f32.mrf.mxu0 }
  0xdf   :  { %v244_v22 = vsel %vm209_vm1, %v236_v19, 0.0  ;;  %v235_v23 = vmul.f32 %v7093_v17, %v7093_v17  ;;  %v210_v27 = vsel %vm209_vm1, %v7093_v17, 0.0  ;;  %v7112_v29 = vadd.f32 %v6039_v20, %v84_v24 }
  0xe0   :  { %245 = vadd.xlane.f32.xlu1 %v244_v22  ;;  %v182_v25 = vpop.f32.mrf.mxu0 }
  0xe1   :  { %v7108_v26 = vadd.f32 %v182_v25, %v83_v21  ;;  %v241_v30 = vsel %vm209_vm1, %v235_v23, 0.0  ;;  %v219_v35 = vsel %vm209_vm1, %v7112_v29, 0.0  ;;  %v238_v37 = vmul.f32 %v7112_v29, %v7112_v29 }
  0xe2   :  { %211 = vadd.xlane.f32.xlu0 %v210_v27  ;;  %v6042_v28 = vpop.f32.mrf.mxu0 }
  0xe3   :  { %v216_v31 = vsel %vm209_vm1, %v7108_v26, 0.0  ;;  %v237_v34 = vmul.f32 %v7108_v26, %v7108_v26  ;;  %v7132_v40 = vadd.f32 %v6042_v28, %v86_v38  ;;  %v250_v41 = vsel %vm209_vm1, %v238_v37, 0.0  ;;  %v5405_v38 = vld [vmem:[%s8622_s28] ss:$0 sm:$0xff] }
  0xe4   :  { %242 = vadd.xlane.f32.xlu1 %v241_v30  ;;  %v192_v32 = vpop.f32.mrf.mxu0 }
  0xe5   :  { %v7124_v36 = vadd.f32 %v192_v32, %v85_v33  ;;  %v247_v39 = vsel %vm209_vm1, %v237_v34, 0.0  ;;  %v225_v44 = vsel %vm209_vm1, %v7132_v40, 0.0  ;;  %v240_v45 = vmul.f32 %v7132_v40, %v7132_v40 }
  0xe6   :  { %217 = vadd.xlane.f32.xlu0 %v216_v31 }
  0xe7   :  { %v222_v42 = vsel %vm209_vm1, %v7124_v36, 0.0  ;;  %v239_v43 = vmul.f32 %v7124_v36, %v7124_v36  ;;  %v256_v47 = vsel %vm209_vm1, %v240_v45, 0.0 }
  0xe8   :  { %220 = vadd.xlane.f32.xlu1 %v219_v35 }
  0xe9   :  { %v253_v46 = vsel %vm209_vm1, %v239_v43, 0.0 }
  0xea   :  { %248 = vadd.xlane.f32.xlu0 %v247_v39 }
  0xec   :  { %251 = vadd.xlane.f32.xlu1 %v250_v41 }
  0xee   :  { %223 = vadd.xlane.f32.xlu0 %v222_v42 }
  0xf0   :  { %226 = vadd.xlane.f32.xlu1 %v225_v44  ;;  %v5406_v44 = vld [vmem:[%s8580_s6] ss:$0 sm:$0xff] }
  0xf2   :  { %254 = vadd.xlane.f32.xlu0 %v253_v46 }
  0xf4   :  { %257 = vadd.xlane.f32.xlu1 %v256_v47 }
 0x167   :  { %v215_v52 = vpop.xlane.xlu0 %214 }
 0x168   :  { %v230_v53 = vmul.f32 0.03125, %v215_v52 }
 0x169   :  { %v246_v54 = vpop.xlane.xlu1 %245 }
 0x16a   :  { %v266_v55 = vmul.f32 %v230_v53, %v230_v53  ;;  %v260_v56 = vmul.f32 0.03125, %v246_v54  ;;  %v278_v27 = vsub.f32 %v7091_v15, %v230_v53 }
 0x16b   :  { %v212_v57 = vpop.xlane.xlu0 %211 }
 0x16c   :  { %v272_v58 = vsub.f32 %v260_v56, %v266_v55  ;;  %v229_v59 = vmul.f32 0.03125, %v212_v57 }
 0x16d   :  { %v243_v60 = vpop.xlane.xlu1 %242 }
 0x16e   :  { %v284_v61 = vadd.f32 1e-06, %v272_v58  ;;  %v265_v62 = vmul.f32 %v229_v59, %v229_v59  ;;  %v259_v63 = vmul.f32 0.03125, %v243_v60  ;;  %v277_v34 = vsub.f32 %v7093_v17, %v229_v59 }
 0x16f   :  { %v218_v0 = vpop.xlane.xlu0 %217 }
 0x170   :  { %6625 = vrsqrt.f32 %v284_v61  ;;  %v271_v1 = vsub.f32 %v259_v63, %v265_v62  ;;  %v231_v2 = vmul.f32 0.03125, %v218_v0 }
 0x171   :  { %v221_v3 = vpop.xlane.xlu1 %220 }
 0x172   :  { %v283_v4 = vadd.f32 1e-06, %v271_v1  ;;  %v232_v5 = vmul.f32 0.03125, %v221_v3  ;;  %v267_v7 = vmul.f32 %v231_v2, %v231_v2  ;;  %v279_v46 = vsub.f32 %v7108_v26, %v231_v2 }
 0x173   :  { %v249_v6 = vpop.xlane.xlu0 %248 }
 0x174   :  { %6627 = vrsqrt.f32 %v283_v4  ;;  %v261_v8 = vmul.f32 0.03125, %v249_v6  ;;  %v268_v10 = vmul.f32 %v232_v5, %v232_v5  ;;  %v280_v50 = vsub.f32 %v7112_v29, %v232_v5  ;;  %v5407_v5 = vld [vmem:[%s8582_s8] ss:$0 sm:$0xff] }
 0x175   :  { %v252_v9 = vpop.xlane.xlu1 %251 }
 0x176   :  { %v273_v11 = vsub.f32 %v261_v8, %v267_v7  ;;  %v262_v12 = vmul.f32 0.03125, %v252_v9 }
 0x177   :  { %v224_v13 = vpop.xlane.xlu0 %223 }
 0x178   :  { %v285_v14 = vadd.f32 1e-06, %v273_v11  ;;  %v274_v16 = vsub.f32 %v262_v12, %v268_v10  ;;  %v233_v18 = vmul.f32 0.03125, %v224_v13 }
 0x179   :  { %v227_v19 = vpop.xlane.xlu1 %226 }
 0x17a   :  { %6629 = vrsqrt.f32 %v285_v14  ;;  %v286_v20 = vadd.f32 1e-06, %v274_v16  ;;  %v234_v21 = vmul.f32 0.03125, %v227_v19  ;;  %v269_v23 = vmul.f32 %v233_v18, %v233_v18 }
 0x17b   :  { %v255_v22 = vpop.xlane.xlu0 %254  ;;  %v281_v57 = vsub.f32 %v7124_v36, %v233_v18 }
 0x17c   :  { %6631 = vrsqrt.f32 %v286_v20  ;;  %v263_v24 = vmul.f32 0.03125, %v255_v22  ;;  %v270_v30 = vmul.f32 %v234_v21, %v234_v21  ;;  %v282_v60 = vsub.f32 %v7132_v40, %v234_v21 }
 0x17d   :  { %v6626_v25 = vpop.eup %6625  ;;  %v258_v28 = vpop.xlane.xlu1 %257 }
 0x17e   :  { %v275_v31 = vsub.f32 %v263_v24, %v269_v23  ;;  %v264_v32 = vmul.f32 0.03125, %v258_v28  ;;  %v296_v33 = vmul.f32 %v6626_v25, %v278_v27 }
 0x180   :  { %v287_v35 = vadd.f32 1e-06, %v275_v31  ;;  %v276_v37 = vsub.f32 %v264_v32, %v270_v30  ;;  %v308_v43 = vmul.f32 %v5405_v38, %v296_v33 }
 0x181   :  { %v6628_v39 = vpop.eup %6627 }
 0x182   :  { %6633 = vrsqrt.f32 %v287_v35  ;;  %v288_v41 = vadd.f32 1e-06, %v276_v37  ;;  %v295_v42 = vmul.f32 %v6628_v39, %v277_v34  ;;  %v320_v49 = vadd.f32 %v5406_v44, %v308_v43  ;;  %v7249_v34 = vld [vmem:[%s8623_s2 + $0x8] sm:$0xff]  ;;  %v7254_v37 = vld [vmem:[%s8623_s2] sm:$0xff] }
 0x184   :  { %6635 = vrsqrt.f32 %v288_v41  ;;  %v307_v45 = vmul.f32 %v5405_v38, %v295_v42  ;;  %v7260_v41 = vld [vmem:[%s8623_s2 + $0x18] sm:$0xff] }
 0x186   :  { %v319_v47 = vadd.f32 %v5406_v44, %v307_v45 }
 0x187   :  { %v6630_v48 = vpop.eup %6629 }
 0x188   :  { %6051 = vmatprep.mubr.msk.f32.mxu1 %vm209_vm1, %v319_v47  ;;  %v297_v51 = vmul.f32 %v6630_v48, %v279_v46  ;;  %v7269_v48 = vld [vmem:[%s8623_s2 + $0x10] sm:$0xff] }
 0x189   :  { %v6632_v52 = vpop.eup %6631  ;;  %6052 = vmatmul.mubr.msk.f32.vlgmr.msra.gmra.mxu1 %vm209_vm1, %v320_v49  ;;  %v7274_v49 = vld [vmem:[%s8623_s2 + $0x28] sm:$0xff] }
 0x18a   :  { %v309_v53 = vmul.f32 %v5405_v38, %v297_v51  ;;  %v298_v54 = vmul.f32 %v6632_v52, %v280_v50 }
 0x18c   :  { %v321_v55 = vadd.f32 %v5406_v44, %v309_v53  ;;  %v310_v56 = vmul.f32 %v5405_v38, %v298_v54 }
 0x18e   :  { %6054 = vmatprep.mubr.msk.f32.mxu1 %vm209_vm1, %v321_v55  ;;  %v322_v58 = vadd.f32 %v5406_v44, %v310_v56  ;;  %v7282_v55 = vld [vmem:[%s8623_s2 + $0x20] sm:$0xff] }
 0x18f   :  { %v6634_v59 = vpop.eup %6633 }
 0x190   :  { %6055 = vmatmul.mubr.msk.f32.gmra.mxu1 %vm209_vm1, %v322_v58  ;;  %v299_v61 = vmul.f32 %v6634_v59, %v281_v57 }
 0x191   :  { %v6636_v62 = vpop.eup %6635 }
 0x192   :  { %v311_v63 = vmul.f32 %v5405_v38, %v299_v61  ;;  %v300_v0 = vmul.f32 %v6636_v62, %v282_v60 }
 0x194   :  { %v323_v1 = vadd.f32 %v5406_v44, %v311_v63  ;;  %v312_v2 = vmul.f32 %v5405_v38, %v300_v0 }
 0x196   :  { %6057 = vmatprep.mubr.msk.f32.mxu1 %vm209_vm1, %v323_v1  ;;  %v324_v3 = vadd.f32 %v5406_v44, %v312_v2 }
 0x198   :  { %6058 = vmatmul.mubr.msk.f32.gmra.mxu1 %vm209_vm1, %v324_v3 }
 0x249   :  { %v6053_v4 = vpop.f32.mrf.mxu1 }
 0x24a   :  { %v7188_v14 = vadd.f32 %v6053_v4, %v5407_v5 }
 0x24b   :  { %v420_v6 = vpop.f32.mrf.mxu1 }
 0x24c   :  { %v7178_v7 = vadd.f32 %v5407_v5, %v420_v6 }
 0x24e   :  { %6072 = vmatprep.mubr.msk.f32.mxu1 %vm471_vm2, %v7178_v7 }
 0x250   :  { %v6056_v8 = vpop.f32.mrf.mxu1 }
 0x251   :  { %v7192_v16 = vadd.f32 %v6056_v8, %v5407_v5 }
 0x252   :  { %v430_v9 = vpop.f32.mrf.mxu1 }
 0x253   :  { %v7198_v18 = vadd.f32 %v5407_v5, %v430_v9 }
 0x258   :  { %v6059_v10 = vpop.f32.mrf.mxu1 }
 0x259   :  { %v7182_v11 = vadd.f32 %v6059_v10, %v5407_v5 }
 0x25a   :  { %v440_v12 = vpop.f32.mrf.mxu1 }
 0x25b   :  { %v7184_v13 = vadd.f32 %v5407_v5, %v440_v12  ;;  %469 = vrot.lane.b32.xlu0 %v7182_v11, %s6919_s5 }
 0x25d   :  { %467 = vrot.lane.b32.xlu1 %v7184_v13, %s6919_s5 }
 0x25f   :  { %461 = vrot.lane.b32.xlu0 %v7188_v14, %s6919_s5 }
 0x261   :  { %465 = vrot.lane.b32.xlu1 %v7192_v16, %s6919_s5 }
 0x263   :  { %667 = vrot.lane.b32.xlu0 %v7182_v11, %s6920_s22 }
 0x265   :  { %463 = vrot.lane.b32.xlu1 %v7198_v18, %s6919_s5 }
 0x267   :  { %663 = vrot.lane.b32.xlu0 %v7192_v16, %s6920_s22 }
 0x269   :  { %459 = vrot.lane.b32.xlu1 %v7178_v7, %s6919_s5 }
 0x26b   :  { %810 = vrot.lane.b32.xlu0 %v7182_v11, %s6921_s23 }
 0x26d   :  { %661 = vrot.lane.b32.xlu1 %v7198_v18, %s6920_s22 }
 0x271   :  { %659 = vrot.lane.b32.xlu1 %v7188_v14, %s6920_s22 }
 0x275   :  { %657 = vrot.lane.b32.xlu1 %v7178_v7, %s6920_s22 }
 0x279   :  { %665 = vrot.lane.b32.xlu1 %v7184_v13, %s6920_s22 }
 0x27d   :  { %808 = vrot.lane.b32.xlu1 %v7184_v13, %s6921_s23 }
 0x2cd   :  { %v470_v19 = vpop.permute.xlu0 %469 }
 0x2ce   :  { %6060 = vmatprep.subr.msk.mxu1 %vm471_vm2, %v470_v19 }
 0x2cf   :  { %6061 = vmatpush3.xpose.msk.msra.mxu1 %vm471_vm2, %v470_v19  ;;  %v468_v20 = vpop.permute.xlu1 %467 }
 0x2d0   :  { %6062 = vmatprep.subr.msk.mxu1 %vm471_vm2, %v468_v20 }
 0x2d1   :  { %v462_v21 = vpop.permute.xlu0 %461 }
 0x2d3   :  { %6063 = vmatpush3.xpose.msk.msra.mxu1 %vm471_vm2, %v468_v20  ;;  %v466_v22 = vpop.permute.xlu1 %465 }
 0x2d4   :  { %6064 = vmatprep.subr.msk.mxu1 %vm471_vm2, %v466_v22 }
 0x2d5   :  { %v668_v23 = vpop.permute.xlu0 %667 }
 0x2d6   :  { %6081 = vmatprep.subr.mxu0 %v668_v23 }
 0x2d7   :  { %6065 = vmatpush3.xpose.msk.msra.mxu1 %vm471_vm2, %v466_v22  ;;  %6082 = vmatpush3.msra.mxu0 %v668_v23  ;;  %v464_v24 = vpop.permute.xlu1 %463 }
 0x2d8   :  { %6066 = vmatprep.subr.msk.mxu1 %vm471_vm2, %v464_v24 }
 0x2d9   :  { %v664_v32 = vpop.permute.xlu0 %663 }
 0x2db   :  { %6067 = vmatpush3.xpose.msk.msra.mxu1 %vm471_vm2, %v464_v24  ;;  %v460_v25 = vpop.permute.xlu1 %459 }
 0x2dc   :  { %6068 = vmatprep.subr.msk.mxu1 %vm471_vm2, %v462_v21 }
 0x2dd   :  { %v7242_v33 = vpop.permute.xlu0 %810 }
 0x2df   :  { %6069 = vmatpush3.xpose.msk.msra.mxu1 %vm471_vm2, %v462_v21  ;;  %v662_v27 = vpop.permute.xlu1 %661 }
 0x2e0   :  { %6070 = vmatprep.subr.msk.mxu1 %vm471_vm2, %v460_v25 }
 0x2e3   :  { %6071 = vmatpush3.xpose.msk.msra.mxu1 %vm471_vm2, %v460_v25  ;;  %v660_v28 = vpop.permute.xlu1 %659 }
 0x2e6   :  { %6073 = vmatmul.mubr.msk.f32.vlgmr.msra.gmra.mxu1 %vm471_vm2, %v7188_v14 }
 0x2e7   :  { %6075 = vmatprep.mubr.msk.f32.mxu1 %vm471_vm2, %v7198_v18  ;;  %v658_v30 = vpop.permute.xlu1 %657 }
 0x2ea   :  { %6076 = vmatmul.mubr.msk.f32.gmra.mxu1 %vm471_vm2, %v7192_v16 }
 0x2eb   :  { %6078 = vmatprep.mubr.msk.f32.mxu1 %vm471_vm2, %v7184_v13  ;;  %v666_v31 = vpop.permute.xlu1 %665 }
 0x2ec   :  { %6083 = vmatprep.subr.mxu0 %v666_v31 }
 0x2ed   :  { %6084 = vmatpush3.msra.mxu0 %v666_v31 }
 0x2ee   :  { %6079 = vmatmul.mubr.msk.f32.gmra.mxu1 %vm471_vm2, %v7182_v11  ;;  %6085 = vmatprep.subr.mxu0 %v664_v32 }
 0x2ef   :  { %6086 = vmatpush3.msra.mxu0 %v664_v32  ;;  %v7292_v60 = vpop.permute.xlu1 %808 }
 0x2f0   :  { %6087 = vmatprep.subr.mxu0 %v662_v27 }
 0x2f1   :  { %6088 = vmatpush3.msra.mxu0 %v662_v27 }
 0x2f2   :  { %6089 = vmatprep.subr.mxu0 %v660_v28 }
 0x2f3   :  { %6090 = vmatpush3.msra.mxu0 %v660_v28 }
 0x2f4   :  { %6091 = vmatprep.subr.mxu0 %v658_v30 }
 0x2f5   :  { %6092 = vmatpush3.msra.mxu0 %v658_v30 }
 0x2f6   :  { %6102 = vmatprep.subr.msk.mxu0 %vm471_vm2, %v7242_v33 }
 0x3a6   :  { %v6074_v35 = vpop.f32.mrf.mxu1 }
 0x3a7   :  { %v568_v38 = vadd.f32 %v6074_v35, %v7249_v34 }
 0x3a8   :  { %v562_v39 = vpop.f32.mrf.mxu1 }
 0x3a9   :  { %v563_v42 = vadd.f32 %v562_v39, %v7254_v37  ;;  %v594_v43 = vsel %vm87_vm0, %v568_v38, -inf }
 0x3aa   :  { %595 = vmax.xlane.f32.xlu1 %v594_v43  ;;  %v6077_v44 = vpop.f32.mrf.mxu1 }
 0x3ab   :  { %v578_v45 = vadd.f32 %v6077_v44, %v7260_v41  ;;  %v591_v46 = vsel %vm87_vm0, %v563_v42, -inf }
 0x3ac   :  { %v572_v47 = vpop.f32.mrf.mxu1  ;;  %592 = vmax.xlane.f32.xlu0 %v591_v46 }
 0x3ad   :  { %v573_v51 = vadd.f32 %v572_v47, %v7269_v48  ;;  %v600_v53 = vsel %vm87_vm0, %v578_v45, -inf }
 0x3ae   :  { %v6080_v50 = vpop.f32.mrf.mxu1 }
 0x3af   :  { %v588_v52 = vadd.f32 %v6080_v50, %v7274_v49  ;;  %v597_v58 = vsel %vm87_vm0, %v573_v51, -inf }
 0x3b0   :  { %v582_v54 = vpop.f32.mrf.mxu1  ;;  %601 = vmax.xlane.f32.xlu0 %v600_v53 }
 0x3b1   :  { %v606_v56 = vsel %vm87_vm0, %v588_v52, -inf  ;;  %v583_v57 = vadd.f32 %v582_v54, %v7282_v55 }
 0x3b2   :  { %607 = vmax.xlane.f32.xlu1 %v606_v56 }
 0x3b3   :  { %v603_v59 = vsel %vm87_vm0, %v583_v57, -inf }
 0x3b4   :  { %598 = vmax.xlane.f32.xlu0 %v597_v58 }
 0x3b8   :  { %604 = vmax.xlane.f32.xlu0 %v603_v59 }
 0x3c3   :  { %804 = vrot.lane.b32.xlu1 %v7198_v18, %s6921_s23 }
 0x3ce   :  { %806 = vrot.lane.b32.xlu0 %v7192_v16, %s6921_s23 }
 0x433   :  { %v596_v61 = vpop.xlane.xlu1 %595 }
 0x434   :  { %v610_v62 = vsub.f32 %v568_v38, %v596_v61 }
 0x435   :  { %v593_v63 = vpop.xlane.xlu0 %592 }
 0x436   :  { %v617_v0 = vmul.f32 1.442695, %v610_v62  ;;  %v609_v1 = vsub.f32 %v563_v42, %v593_v63 }
 0x438   :  { %6637 = vpow2.f32 %v617_v0  ;;  %v615_v2 = vmul.f32 1.442695, %v609_v1 }
 0x439   :  { %v602_v3 = vpop.xlane.xlu0 %601 }
 0x43a   :  { %6639 = vpow2.f32 %v615_v2  ;;  %v612_v4 = vsub.f32 %v578_v45, %v602_v3 }
 0x43b   :  { %v608_v28 = vpop.xlane.xlu1 %607 }
 0x43c   :  { %v621_v5 = vmul.f32 1.442695, %v612_v4  ;;  %v614_v30 = vsub.f32 %v588_v52, %v608_v28 }
 0x43d   :  { %v599_v6 = vpop.xlane.xlu0 %598 }
 0x43e   :  { %6641 = vpow2.f32 %v621_v5  ;;  %v611_v8 = vsub.f32 %v573_v51, %v599_v6  ;;  %v625_v32 = vmul.f32 1.442695, %v614_v30 }
 0x43f   :  { %v805_v43 = vpop.permute.xlu1 %804 }
 0x440   :  { %v619_v9 = vmul.f32 1.442695, %v611_v8  ;;  %v449_v8 = vld [vmem:[%s8583_s9] sm:$0xff] }
 0x441   :  { %v605_v25 = vpop.xlane.xlu0 %604 }
 0x442   :  { %6643 = vpow2.f32 %v619_v9  ;;  %v613_v27 = vsub.f32 %v583_v57, %v605_v25 }
 0x444   :  { %v623_v31 = vmul.f32 1.442695, %v613_v27 }
 0x445   :  { %v6638_v10 = vpop.eup %6637  ;;  %v807_v44 = vpop.permute.xlu0 %806 }
 0x446   :  { %v630_v12 = vsel %vm87_vm0, %v6638_v10, 0.0  ;;  %6645 = vpow2.f32 %v623_v31 }
 0x447   :  { %v6640_v19 = vpop.eup %6639  ;;  %631 = vadd.xlane.f32.xlu1 %v630_v12  ;;  %6647 = vpow2.f32 %v625_v32 }
 0x448   :  { %v627_v20 = vsel %vm87_vm0, %v6640_v19, 0.0 }
 0x449   :  { %628 = vadd.xlane.f32.xlu0 %v627_v20 }
 0x44b   :  { %v6642_v21 = vpop.eup %6641 }
 0x44c   :  { %v636_v22 = vsel %vm87_vm0, %v6642_v21, 0.0 }
 0x44d   :  { %637 = vadd.xlane.f32.xlu1 %v636_v22 }
 0x44f   :  { %v6644_v23 = vpop.eup %6643 }
 0x450   :  { %v633_v24 = vsel %vm87_vm0, %v6644_v23, 0.0 }
 0x451   :  { %634 = vadd.xlane.f32.xlu0 %v633_v24 }
 0x453   :  { %v6646_v35 = vpop.eup %6645 }
 0x454   :  { %v639_v38 = vsel %vm87_vm0, %v6646_v35, 0.0  ;;  %v6648_v39 = vpop.eup %6647 }
 0x455   :  { %v642_v42 = vsel %vm87_vm0, %v6648_v39, 0.0 }
 0x45e   :  { %800 = vrot.lane.b32.xlu1 %v7178_v7, %s6921_s23 }
 0x467   :  { %802 = vrot.lane.b32.xlu0 %v7188_v14, %s6921_s23 }
 0x482   :  { %640 = vadd.xlane.f32.xlu1 %v639_v38 }
 0x486   :  { %643 = vadd.xlane.f32.xlu0 %v642_v42 }
 0x493   :  { %790 = vrot.lane.b32.xlu1 %v7188_v14, %s6922_s25 }
 0x497   :  { %794 = vrot.lane.b32.xlu1 %v7192_v16, %s6922_s25 }
 0x49b   :  { %798 = vrot.lane.b32.xlu1 %v7182_v11, %s6922_s25 }
 0x49c   :  { %788 = vrot.lane.b32.xlu0 %v7178_v7, %s6922_s25 }
 0x4a0   :  { %792 = vrot.lane.b32.xlu0 %v7198_v18, %s6922_s25 }
 0x4a4   :  { %796 = vrot.lane.b32.xlu0 %v7184_v13, %s6922_s25 }
 0x4d0   :  { %v632_v45 = vpop.xlane.xlu1 %631 }
 0x4d1   :  { %6649 = vrcp.f32 %v632_v45 }
 0x4d2   :  { %v629_v46 = vpop.xlane.xlu0 %628 }
 0x4d3   :  { %6651 = vrcp.f32 %v629_v46 }
 0x4d6   :  { %v638_v47 = vpop.xlane.xlu1 %637 }
 0x4d7   :  { %6653 = vrcp.f32 %v638_v47 }
 0x4da   :  { %v635_v50 = vpop.xlane.xlu0 %634  ;;  %v801_v61 = vpop.permute.xlu1 %800 }
 0x4db   :  { %6655 = vrcp.f32 %v635_v50 }
 0x4de   :  { %v6650_v51 = vpop.eup %6649 }
 0x4df   :  { %v652_v54 = vmul.f32 %v6650_v51, %v6638_v10 }
 0x4e0   :  { %v6652_v52 = vpop.eup %6651 }
 0x4e1   :  { %v651_v53 = vmul.f32 %v6652_v52, %v6640_v19 }
 0x4e3   :  { %6093 = vmatprep.mubr.msk.f32.mxu0 %vm87_vm0, %v651_v53 }
 0x4e4   :  { %6094 = vmatmul.mubr.msk.f32.vlgmr.msra.gmra.mxu0 %vm87_vm0, %v652_v54  ;;  %v6654_v56 = vpop.eup %6653 }
 0x4e5   :  { %6103 = vmatpush3.xpose.msk.msra.mxu0 %vm471_vm2, %v7242_v33  ;;  %v654_v59 = vmul.f32 %v6654_v56, %v6642_v21  ;;  %v803_v33 = vpop.permute.xlu0 %802 }
 0x4e6   :  { %6104 = vmatprep.subr.msk.mxu0 %vm471_vm2, %v7292_v60 }
 0x4e8   :  { %v6656_v57 = vpop.eup %6655 }
 0x4e9   :  { %6105 = vmatpush3.xpose.msk.msra.mxu0 %vm471_vm2, %v7292_v60  ;;  %v653_v58 = vmul.f32 %v6656_v57, %v6644_v23 }
 0x4ea   :  { %6106 = vmatprep.subr.msk.mxu0 %vm471_vm2, %v807_v44 }
 0x4eb   :  { %6096 = vmatprep.mubr.msk.f32.mxu0 %vm87_vm0, %v653_v58 }
 0x4ec   :  { %6097 = vmatmul.mubr.msk.f32.gmra.mxu0 %vm87_vm0, %v654_v59 }
 0x4ed   :  { %6107 = vmatpush3.xpose.msk.msra.mxu0 %vm471_vm2, %v807_v44 }
 0x4ee   :  { %6108 = vmatprep.subr.msk.mxu0 %vm471_vm2, %v805_v43 }
 0x4f1   :  { %6109 = vmatpush3.xpose.msk.msra.mxu0 %vm471_vm2, %v805_v43 }
 0x4f2   :  { %6110 = vmatprep.subr.msk.mxu0 %vm471_vm2, %v803_v33 }
 0x4f5   :  { %6111 = vmatpush3.xpose.msk.msra.mxu0 %vm471_vm2, %v803_v33 }
 0x4f6   :  { %6112 = vmatprep.subr.msk.mxu0 %vm471_vm2, %v801_v61 }
 0x4f9   :  { %6113 = vmatpush3.xpose.msk.msra.mxu0 %vm471_vm2, %v801_v61 }
 0x4fa   :  { %6155 = vmatprep.subr.mxu0 %v449_v8 }
 0x50b   :  { %v641_v60 = vpop.xlane.xlu1 %640 }
 0x50c   :  { %6657 = vrcp.f32 %v641_v60 }
 0x50f   :  { %v644_v62 = vpop.xlane.xlu0 %643  ;;  %v791_v4 = vpop.permute.xlu1 %790 }
 0x510   :  { %6659 = vrcp.f32 %v644_v62 }
 0x513   :  { %v789_v1 = vpop.permute.xlu0 %788  ;;  %v795_v6 = vpop.permute.xlu1 %794 }
 0x517   :  { %v793_v5 = vpop.permute.xlu0 %792  ;;  %v799_v10 = vpop.permute.xlu1 %798 }
 0x519   :  { %v6658_v63 = vpop.eup %6657 }
 0x51a   :  { %v655_v0 = vmul.f32 %v6658_v63, %v6646_v35 }
 0x51b   :  { %v797_v9 = vpop.permute.xlu0 %796 }
 0x51c   :  { %6099 = vmatprep.mubr.msk.f32.mxu0 %vm87_vm0, %v655_v0 }
 0x51d   :  { %v6660_v2 = vpop.eup %6659 }
 0x51e   :  { %v656_v3 = vmul.f32 %v6660_v2, %v6648_v39 }
 0x520   :  { %6100 = vmatmul.mubr.msk.f32.gmra.mxu0 %vm87_vm0, %v656_v3 }
 0x521   :  { %6114 = vmatprep.mubr.msk.f32.mxu0 %vm471_vm2, %v789_v1 }
 0x524   :  { %6115 = vmatmul.mubr.msk.f32.vlgmr.msra.gmra.mxu0 %vm471_vm2, %v791_v4 }
 0x525   :  { %6117 = vmatprep.mubr.msk.f32.mxu0 %vm471_vm2, %v793_v5  ;;  %6156 = vmatpush3.msra.mxu0 %v449_v8 }
 0x528   :  { %6118 = vmatmul.mubr.msk.f32.gmra.mxu0 %vm471_vm2, %v795_v6 }
 0x529   :  { %6120 = vmatprep.mubr.msk.f32.mxu0 %vm471_vm2, %v797_v9 }
 0x52c   :  { %6121 = vmatmul.mubr.msk.f32.gmra.mxu0 %vm471_vm2, %v799_v10 }
 0x5a4   :  { %v6095_v12 = vpop.f32.mrf.mxu0 }
 0x5a6   :  { %v759_v19 = vpop.f32.mrf.mxu0 }
 0x5a7   :  { %6157 = vmatprep.mubr.msk.f32.mxu0 %vm471_vm2, %v759_v19 }
 0x5a8   :  { %6158 = vmatmul.mubr.msk.f32.vlgmr.msra.gmra.mxu0 %vm471_vm2, %v6095_v12 }
 0x5ac   :  { %v6098_v20 = vpop.f32.mrf.mxu0 }
 0x5ae   :  { %v769_v21 = vpop.f32.mrf.mxu0 }
 0x5af   :  { %6160 = vmatprep.mubr.msk.f32.mxu0 %vm471_vm2, %v769_v21 }
 0x5b0   :  { %6161 = vmatmul.mubr.msk.f32.gmra.mxu0 %vm471_vm2, %v6098_v20 }
 0x5e0   :  { %v6101_v22 = vpop.f32.mrf.mxu0 }
 0x5e2   :  { %v779_v23 = vpop.f32.mrf.mxu0 }
 0x5e3   :  { %6163 = vmatprep.mubr.msk.f32.mxu0 %vm471_vm2, %v779_v23 }
 0x5e4   :  { %v6116_v24 = vpop.f32.mrf.mxu0  ;;  %6164 = vmatmul.mubr.msk.f32.gmra.mxu0 %vm471_vm2, %v6101_v22 }
 0x5e5   :  { %v908_v25 = vadd.f32 %v6116_v24, %v7249_v34 }
 0x5e6   :  { %v902_v27 = vpop.f32.mrf.mxu0 }
 0x5e7   :  { %v903_v28 = vadd.f32 %v902_v27, %v7254_v37  ;;  %v934_v30 = vsel %vm87_vm0, %v908_v25, -inf }
 0x5e8   :  { %935 = vmax.xlane.f32.xlu1 %v934_v30  ;;  %v6119_v31 = vpop.f32.mrf.mxu0 }
 0x5e9   :  { %v918_v32 = vadd.f32 %v6119_v31, %v7260_v41  ;;  %v931_v35 = vsel %vm87_vm0, %v903_v28, -inf }
 0x5ea   :  { %932 = vmax.xlane.f32.xlu0 %v931_v35  ;;  %v912_v38 = vpop.f32.mrf.mxu0 }
 0x5eb   :  { %v913_v42 = vadd.f32 %v912_v38, %v7269_v48  ;;  %v940_v44 = vsel %vm87_vm0, %v918_v32, -inf }
 0x5ec   :  { %v6122_v39 = vpop.f32.mrf.mxu0 }
 0x5ed   :  { %v928_v43 = vadd.f32 %v6122_v39, %v7274_v49  ;;  %v937_v50 = vsel %vm87_vm0, %v913_v42, -inf }
 0x5ee   :  { %941 = vmax.xlane.f32.xlu0 %v940_v44  ;;  %v922_v45 = vpop.f32.mrf.mxu0 }
 0x5ef   :  { %v946_v46 = vsel %vm87_vm0, %v928_v43, -inf  ;;  %v923_v47 = vadd.f32 %v922_v45, %v7282_v55 }
 0x5f0   :  { %947 = vmax.xlane.f32.xlu1 %v946_v46 }
 0x5f1   :  { %v943_v51 = vsel %vm87_vm0, %v923_v47, -inf }
 0x5f2   :  { %938 = vmax.xlane.f32.xlu0 %v937_v50 }
 0x5f6   :  { %944 = vmax.xlane.f32.xlu0 %v943_v51 }
 0x60c   :  { %1007 = vrot.lane.b32.xlu0 %v7182_v11, %s6923_s3 }
 0x671   :  { %v936_v52 = vpop.xlane.xlu1 %935 }
 0x672   :  { %v950_v53 = vsub.f32 %v908_v25, %v936_v52 }
 0x673   :  { %v933_v54 = vpop.xlane.xlu0 %932 }
 0x674   :  { %v957_v56 = vmul.f32 1.442695, %v950_v53  ;;  %v949_v57 = vsub.f32 %v903_v28, %v933_v54 }
 0x676   :  { %6661 = vpow2.f32 %v957_v56  ;;  %v955_v58 = vmul.f32 1.442695, %v949_v57 }
 0x677   :  { %v942_v59 = vpop.xlane.xlu0 %941 }
 0x678   :  { %6663 = vpow2.f32 %v955_v58  ;;  %v952_v6 = vsub.f32 %v918_v32, %v942_v59 }
 0x679   :  { %v948_v10 = vpop.xlane.xlu1 %947 }
 0x67a   :  { %v961_v8 = vmul.f32 1.442695, %v952_v6  ;;  %v954_v12 = vsub.f32 %v928_v43, %v948_v10 }
 0x67b   :  { %v939_v33 = vpop.xlane.xlu0 %938 }
 0x67c   :  { %v951_v61 = vsub.f32 %v913_v42, %v939_v33  ;;  %v965_v20 = vmul.f32 1.442695, %v954_v12 }
 0x67e   :  { %v959_v60 = vmul.f32 1.442695, %v951_v61 }
 0x67f   :  { %v945_v62 = vpop.xlane.xlu0 %944 }
 0x680   :  { %6665 = vpow2.f32 %v959_v60  ;;  %v953_v9 = vsub.f32 %v923_v47, %v945_v62  ;;  %v450_v47 = vld [vmem:[%s8583_s9 + $0x8] sm:$0xff] }
 0x681   :  { %6667 = vpow2.f32 %v961_v8 }
 0x682   :  { %v963_v19 = vmul.f32 1.442695, %v953_v9 }
 0x683   :  { %v7365_v63 = vpop.eup %6661  ;;  %v1008_v0 = vpop.permute.xlu0 %1007 }
 0x684   :  { %6123 = vmatprep.subr.mxu1 %v1008_v0  ;;  %v970_v1 = vsel %vm87_vm0, %v7365_v63, 0.0  ;;  %6669 = vpow2.f32 %v963_v19 }
 0x685   :  { %v7369_v2 = vpop.eup %6663  ;;  %6124 = vmatpush3.msra.mxu1 %v1008_v0  ;;  %971 = vadd.xlane.f32.xlu1 %v970_v1  ;;  %6671 = vpow2.f32 %v965_v20 }
 0x686   :  { %v967_v3 = vsel %vm87_vm0, %v7369_v2, 0.0 }
 0x687   :  { %968 = vadd.xlane.f32.xlu0 %v967_v3 }
 0x68d   :  { %v7373_v4 = vpop.eup %6665 }
 0x68e   :  { %v973_v5 = vsel %vm87_vm0, %v7373_v4, 0.0  ;;  %v7389_v21 = vpop.eup %6667 }
 0x68f   :  { %974 = vadd.xlane.f32.xlu0 %v973_v5  ;;  %v976_v22 = vsel %vm87_vm0, %v7389_v21, 0.0 }
 0x691   :  { %v7395_v23 = vpop.eup %6669 }
 0x692   :  { %v979_v24 = vsel %vm87_vm0, %v7395_v23, 0.0  ;;  %v7401_v25 = vpop.eup %6671 }
 0x693   :  { %v982_v27 = vsel %vm87_vm0, %v7401_v25, 0.0 }
 0x696   :  { %1005 = vrot.lane.b32.xlu1 %v7184_v13, %s6923_s3 }
 0x6a5   :  { %1003 = vrot.lane.b32.xlu0 %v7192_v16, %s6923_s3 }
 0x6a9   :  { %1001 = vrot.lane.b32.xlu0 %v7198_v18, %s6923_s3 }
 0x6ad   :  { %999 = vrot.lane.b32.xlu0 %v7188_v14, %s6923_s3 }
 0x6b1   :  { %997 = vrot.lane.b32.xlu0 %v7178_v7, %s6923_s3 }
 0x6b5   :  { %1376 = vrot.lane.b32.xlu0 %v7182_v11, %s8611_s29 }
 0x6b9   :  { %1374 = vrot.lane.b32.xlu0 %v7184_v13, %s8611_s29 }
 0x6ba   :  { %977 = vadd.xlane.f32.xlu1 %v976_v22 }
 0x6bd   :  { %1372 = vrot.lane.b32.xlu0 %v7192_v16, %s8611_s29 }
 0x6be   :  { %980 = vadd.xlane.f32.xlu1 %v979_v24 }
 0x6c1   :  { %1370 = vrot.lane.b32.xlu0 %v7198_v18, %s8611_s29 }
 0x6c2   :  { %983 = vadd.xlane.f32.xlu1 %v982_v27 }
 0x6c5   :  { %1368 = vrot.lane.b32.xlu0 %v7188_v14, %s8611_s29 }
 0x6c9   :  { %1354 = vrot.lane.b32.xlu0 %v7178_v7, %s8609_s0 }
 0x6cd   :  { %1356 = vrot.lane.b32.xlu0 %v7188_v14, %s8609_s0 }
 0x6d1   :  { %1358 = vrot.lane.b32.xlu0 %v7198_v18, %s8609_s0 }
 0x6d3   :  { %1366 = vrot.lane.b32.xlu1 %v7178_v7, %s8611_s29 }
 0x6d5   :  { %1360 = vrot.lane.b32.xlu0 %v7192_v16, %s8609_s0 }
 0x6d7   :  { %1364 = vrot.lane.b32.xlu1 %v7182_v11, %s8609_s0 }
 0x6d9   :  { %1362 = vrot.lane.b32.xlu0 %v7184_v13, %s8609_s0 }
 0x6db   :  { %1833 = vrot.lane.b32.xlu1 %v7184_v13, %s8607_s26 }
 0x6dd   :  { %1835 = vrot.lane.b32.xlu0 %v7182_v11, %s8607_s26 }
 0x6df   :  { %1829 = vrot.lane.b32.xlu1 %v7198_v18, %s8607_s26 }
 0x6e1   :  { %1831 = vrot.lane.b32.xlu0 %v7192_v16, %s8607_s26 }
 0x6e3   :  { %1825 = vrot.lane.b32.xlu1 %v7178_v7, %s8607_s26 }
 0x6e5   :  { %1827 = vrot.lane.b32.xlu0 %v7188_v14, %s8607_s26 }
 0x6e7   :  { %1815 = vrot.lane.b32.xlu1 %v7188_v14, %s8605_s4 }
 0x6e9   :  { %1813 = vrot.lane.b32.xlu0 %v7178_v7, %s8605_s4 }
 0x6eb   :  { %1819 = vrot.lane.b32.xlu1 %v7192_v16, %s8605_s4 }
 0x6ed   :  { %1817 = vrot.lane.b32.xlu0 %v7198_v18, %s8605_s4 }
 0x6ef   :  { %1823 = vrot.lane.b32.xlu1 %v7182_v11, %s8605_s4 }
 0x6f1   :  { %1821 = vrot.lane.b32.xlu0 %v7184_v13, %s8605_s4  ;;  %s8629_s4 = smov 40  }
 0x70e   :  { %v972_v28 = vpop.xlane.xlu1 %971 }
 0x710   :  { %v969_v30 = vpop.xlane.xlu0 %968 }
 0x711   :  { %6673 = vrcp.f32 %v969_v30 }
 0x712   :  { %v1006_v31 = vpop.permute.xlu1 %1005  ;;  %6675 = vrcp.f32 %v972_v28 }
 0x713   :  { %6125 = vmatprep.subr.mxu1 %v1006_v31 }
 0x714   :  { %6126 = vmatpush3.msra.mxu1 %v1006_v31 }
 0x718   :  { %v975_v32 = vpop.xlane.xlu0 %974 }
 0x719   :  { %6677 = vrcp.f32 %v975_v32 }
 0x71c   :  { %v1004_v35 = vpop.permute.xlu0 %1003 }
 0x71d   :  { %6127 = vmatprep.subr.mxu1 %v1004_v35 }
 0x71e   :  { %v6674_v38 = vpop.eup %6673  ;;  %6128 = vmatpush3.msra.mxu1 %v1004_v35 }
 0x71f   :  { %v991_v39 = vmul.f32 %v6674_v38, %v7369_v2  ;;  %v6676_v44 = vpop.eup %6675 }
 0x720   :  { %v1002_v42 = vpop.permute.xlu0 %1001  ;;  %v992_v50 = vmul.f32 %v6676_v44, %v7365_v63 }
 0x721   :  { %6129 = vmatprep.subr.mxu1 %v1002_v42  ;;  %6135 = vmatprep.mubr.msk.f32.mxu1 %vm87_vm0, %v991_v39 }
 0x722   :  { %6130 = vmatpush3.msra.mxu1 %v1002_v42 }
 0x724   :  { %v1000_v43 = vpop.permute.xlu0 %999 }
 0x725   :  { %6131 = vmatprep.subr.mxu1 %v1000_v43 }
 0x726   :  { %6132 = vmatpush3.msra.mxu1 %v1000_v43  ;;  %v6678_v45 = vpop.eup %6677 }
 0x727   :  { %v993_v51 = vmul.f32 %v6678_v45, %v7373_v4 }
 0x728   :  { %v998_v46 = vpop.permute.xlu0 %997 }
 0x729   :  { %6133 = vmatprep.subr.mxu1 %v998_v46 }
 0x72a   :  { %6134 = vmatpush3.msra.mxu1 %v998_v46 }
 0x72b   :  { %6136 = vmatmul.mubr.msk.f32.vlgmr.msra.gmra.mxu1 %vm87_vm0, %v992_v50  ;;  %6144 = vmatprep.subr.mxu1 %v450_v47 }
 0x72c   :  { %v1377_v52 = vpop.permute.xlu0 %1376  ;;  %6138 = vmatprep.mubr.msk.f32.mxu1 %vm87_vm0, %v993_v51  ;;  %6145 = vmatpush3.msra.mxu1 %v450_v47 }
 0x72d   :  { %6166 = vmatprep.subr.msk.mxu1 %vm471_vm2, %v1377_v52 }
 0x730   :  { %v1375_v62 = vpop.permute.xlu0 %1374 }
 0x734   :  { %v1373_v63 = vpop.permute.xlu0 %1372 }
 0x738   :  { %v1371_v0 = vpop.permute.xlu0 %1370 }
 0x73c   :  { %v1369_v1 = vpop.permute.xlu0 %1368 }
 0x740   :  { %v1355_v2 = vpop.permute.xlu0 %1354 }
 0x743   :  { %v978_v53 = vpop.xlane.xlu1 %977 }
 0x744   :  { %6679 = vrcp.f32 %v978_v53  ;;  %v1357_v4 = vpop.permute.xlu0 %1356 }
 0x747   :  { %v981_v54 = vpop.xlane.xlu1 %980 }
 0x748   :  { %6681 = vrcp.f32 %v981_v54  ;;  %v1359_v6 = vpop.permute.xlu0 %1358 }
 0x74b   :  { %v984_v56 = vpop.xlane.xlu1 %983 }
 0x74c   :  { %6683 = vrcp.f32 %v984_v56  ;;  %v1361_v8 = vpop.permute.xlu0 %1360 }
 0x74f   :  { %v1367_v10 = vpop.permute.xlu1 %1366 }
 0x750   :  { %v1363_v9 = vpop.permute.xlu0 %1362 }
 0x751   :  { %v6680_v57 = vpop.eup %6679 }
 0x752   :  { %v994_v58 = vmul.f32 %v6680_v57, %v7389_v21 }
 0x754   :  { %6139 = vmatmul.mubr.msk.f32.gmra.mxu1 %vm87_vm0, %v994_v58  ;;  %v1836_v12 = vpop.permute.xlu0 %1835 }
 0x755   :  { %v6682_v59 = vpop.eup %6681 }
 0x756   :  { %v995_v33 = vmul.f32 %v6682_v59, %v7395_v23  ;;  %v1365_v23 = vpop.permute.xlu1 %1364 }
 0x758   :  { %6141 = vmatprep.mubr.msk.f32.mxu1 %vm87_vm0, %v995_v33  ;;  %v1832_v24 = vpop.permute.xlu0 %1831 }
 0x759   :  { %v6684_v61 = vpop.eup %6683 }
 0x75a   :  { %v996_v60 = vmul.f32 %v6684_v61, %v7401_v25  ;;  %v1834_v25 = vpop.permute.xlu1 %1833 }
 0x75c   :  { %6142 = vmatmul.mubr.msk.f32.gmra.mxu1 %vm87_vm0, %v996_v60  ;;  %v1828_v27 = vpop.permute.xlu0 %1827 }
 0x75e   :  { %v1830_v28 = vpop.permute.xlu1 %1829 }
 0x760   :  { %v1814_v30 = vpop.permute.xlu0 %1813 }
 0x762   :  { %v1826_v31 = vpop.permute.xlu1 %1825 }
 0x764   :  { %v1818_v35 = vpop.permute.xlu0 %1817 }
 0x766   :  { %v1816_v32 = vpop.permute.xlu1 %1815 }
 0x768   :  { %v1822_v39 = vpop.permute.xlu0 %1821 }
 0x76a   :  { %v1820_v38 = vpop.permute.xlu1 %1819 }
 0x76e   :  { %v1824_v42 = vpop.permute.xlu1 %1823 }
 0x7eb   :  { %v6137_v3 = vpop.f32.mrf.mxu1 }
 0x7ed   :  { %v1099_v5 = vpop.f32.mrf.mxu1 }
 0x7ee   :  { %6146 = vmatprep.mubr.msk.f32.mxu1 %vm471_vm2, %v1099_v5 }
 0x7ef   :  { %6147 = vmatmul.mubr.msk.f32.vlgmr.msra.gmra.mxu1 %vm471_vm2, %v6137_v3 }
 0x7f0   :  { %6167 = vmatpush3.xpose.msk.msra.mxu1 %vm471_vm2, %v1377_v52 }
 0x7f1   :  { %6168 = vmatprep.subr.msk.mxu1 %vm471_vm2, %v1375_v62 }
 0x7f4   :  { %6169 = vmatpush3.xpose.msk.msra.mxu1 %vm471_vm2, %v1375_v62 }
 0x7f5   :  { %6170 = vmatprep.subr.msk.mxu1 %vm471_vm2, %v1373_v63 }
 0x7f8   :  { %6171 = vmatpush3.xpose.msk.msra.mxu1 %vm471_vm2, %v1373_v63 }
 0x7f9   :  { %6172 = vmatprep.subr.msk.mxu1 %vm471_vm2, %v1371_v0 }
 0x7fc   :  { %6173 = vmatpush3.xpose.msk.msra.mxu1 %vm471_vm2, %v1371_v0 }
 0x7fd   :  { %6174 = vmatprep.subr.msk.mxu1 %vm471_vm2, %v1369_v1 }
 0x800   :  { %6175 = vmatpush3.xpose.msk.msra.mxu1 %vm471_vm2, %v1369_v1 }
 0x801   :  { %6176 = vmatprep.subr.msk.mxu1 %vm471_vm2, %v1367_v10 }
 0x804   :  { %6177 = vmatpush3.xpose.msk.msra.mxu1 %vm471_vm2, %v1367_v10 }
 0x805   :  { %6219 = vmatprep.subr.msk.mxu1 %vm471_vm2, %v1836_v12 }
 0x814   :  { %v6140_v19 = vpop.f32.mrf.mxu1 }
 0x816   :  { %v1109_v20 = vpop.f32.mrf.mxu1 }
 0x817   :  { %6149 = vmatprep.mubr.msk.f32.mxu1 %vm471_vm2, %v1109_v20 }
 0x818   :  { %6150 = vmatmul.mubr.msk.f32.gmra.mxu1 %vm471_vm2, %v6140_v19 }
 0x81c   :  { %v6143_v21 = vpop.f32.mrf.mxu1 }
 0x81e   :  { %v1119_v22 = vpop.f32.mrf.mxu1 }
 0x81f   :  { %6152 = vmatprep.mubr.msk.f32.mxu1 %vm471_vm2, %v1119_v22 }
 0x820   :  { %6153 = vmatmul.mubr.msk.f32.gmra.mxu1 %vm471_vm2, %v6143_v21 }
 0x821   :  { %6178 = vmatprep.mubr.msk.f32.mxu1 %vm471_vm2, %v1355_v2 }
 0x824   :  { %6179 = vmatmul.mubr.msk.f32.vlgmr.msra.gmra.mxu1 %vm471_vm2, %v1357_v4 }
 0x825   :  { %6220 = vmatpush3.xpose.msk.msra.mxu1 %vm471_vm2, %v1836_v12  ;;  %6181 = vmatprep.mubr.msk.f32.mxu1 %vm471_vm2, %v1359_v6 }
 0x826   :  { %6221 = vmatprep.subr.msk.mxu1 %vm471_vm2, %v1834_v25 }
 0x828   :  { %6182 = vmatmul.mubr.msk.f32.gmra.mxu1 %vm471_vm2, %v1361_v8 }
 0x829   :  { %6222 = vmatpush3.xpose.msk.msra.mxu1 %vm471_vm2, %v1834_v25  ;;  %6184 = vmatprep.mubr.msk.f32.mxu1 %vm471_vm2, %v1363_v9 }
 0x82a   :  { %6223 = vmatprep.subr.msk.mxu1 %vm471_vm2, %v1832_v24 }
 0x82c   :  { %6185 = vmatmul.mubr.msk.f32.gmra.mxu1 %vm471_vm2, %v1365_v23 }
 0x82d   :  { %6224 = vmatpush3.xpose.msk.msra.mxu1 %vm471_vm2, %v1832_v24  ;;  %6231 = vmatprep.mubr.msk.f32.mxu1 %vm471_vm2, %v1814_v30 }
 0x82e   :  { %6225 = vmatprep.subr.msk.mxu1 %vm471_vm2, %v1830_v28 }
 0x831   :  { %6226 = vmatpush3.xpose.msk.msra.mxu1 %vm471_vm2, %v1830_v28 }
 0x832   :  { %6227 = vmatprep.subr.msk.mxu1 %vm471_vm2, %v1828_v27 }
 0x835   :  { %6228 = vmatpush3.xpose.msk.msra.mxu1 %vm471_vm2, %v1828_v27 }
 0x836   :  { %6229 = vmatprep.subr.msk.mxu1 %vm471_vm2, %v1826_v31 }
 0x839   :  { %6230 = vmatpush3.xpose.msk.msra.mxu1 %vm471_vm2, %v1826_v31 }
 0x83c   :  { %6232 = vmatmul.mubr.msk.f32.vlgmr.msra.gmra.mxu1 %vm471_vm2, %v1816_v32 }
 0x83d   :  { %6234 = vmatprep.mubr.msk.f32.mxu1 %vm471_vm2, %v1818_v35 }
 0x840   :  { %6235 = vmatmul.mubr.msk.f32.gmra.mxu1 %vm471_vm2, %v1820_v38 }
 0x841   :  { %6237 = vmatprep.mubr.msk.f32.mxu1 %vm471_vm2, %v1822_v39 }
 0x844   :  { %6238 = vmatmul.mubr.msk.f32.gmra.mxu1 %vm471_vm2, %v1824_v42 }
 0x8af   :  { %v7504_v43 = vpop.f32.mrf.mxu1 }
 0x8b1   :  { %v7506_v44 = vpop.f32.mrf.mxu1 }
 0x8d8   :  { %v7508_v45 = vpop.f32.mrf.mxu1 }
 0x8da   :  { %v7510_v46 = vpop.f32.mrf.mxu1 }
 0x8e0   :  { %v7512_v47 = vpop.f32.mrf.mxu1 }
 0x8e2   :  { %v7514_v50 = vpop.f32.mrf.mxu1 }
 0x8e4   :  { %v6180_v51 = vpop.f32.mrf.mxu1 }
 0x8e5   :  { %v1474_v52 = vadd.f32 %v6180_v51, %v7249_v34 }
 0x8e6   :  { %v1468_v53 = vpop.f32.mrf.mxu1 }
 0x8e7   :  { %v1469_v54 = vadd.f32 %v1468_v53, %v7254_v37  ;;  %v1500_v56 = vsel %vm87_vm0, %v1474_v52, -inf }
 0x8e8   :  { %1501 = vmax.xlane.f32.xlu1 %v1500_v56  ;;  %v6183_v57 = vpop.f32.mrf.mxu1 }
 0x8e9   :  { %v1497_v58 = vsel %vm87_vm0, %v1469_v54, -inf  ;;  %v1484_v60 = vadd.f32 %v6183_v57, %v7260_v41 }
 0x8ea   :  { %v1478_v59 = vpop.f32.mrf.mxu1  ;;  %1498 = vmax.xlane.f32.xlu0 %v1497_v58 }
 0x8eb   :  { %v1479_v33 = vadd.f32 %v1478_v59, %v7269_v48  ;;  %v1506_v2 = vsel %vm87_vm0, %v1484_v60, -inf }
 0x8ec   :  { %v6186_v61 = vpop.f32.mrf.mxu1 }
 0x8ed   :  { %v1503_v62 = vsel %vm87_vm0, %v1479_v33, -inf  ;;  %v1494_v1 = vadd.f32 %v6186_v61, %v7274_v49 }
 0x8ee   :  { %1504 = vmax.xlane.f32.xlu0 %v1503_v62  ;;  %v1488_v63 = vpop.f32.mrf.mxu1 }
 0x8ef   :  { %v1489_v0 = vadd.f32 %v1488_v63, %v7282_v55  ;;  %v1512_v4 = vsel %vm87_vm0, %v1494_v1, -inf }
 0x8f1   :  { %v1509_v3 = vsel %vm87_vm0, %v1489_v0, -inf }
 0x8f2   :  { %1507 = vmax.xlane.f32.xlu0 %v1506_v2  ;;  %1510 = vmax.xlane.f32.xlu1 %v1509_v3 }
 0x8f6   :  { %1513 = vmax.xlane.f32.xlu0 %v1512_v4 }
 0x8fc   :  { %v6233_v63 = vpop.f32.mrf.mxu1 }
 0x8fd   :  { %v7565_v4 = vadd.f32 %v6233_v63, %v7249_v34 }
 0x903   :  { %1573 = vrot.lane.b32.xlu1 %v7182_v11, %s8603_s30 }
 0x907   :  { %1569 = vrot.lane.b32.xlu1 %v7192_v16, %s8603_s30 }
 0x90b   :  { %1567 = vrot.lane.b32.xlu1 %v7198_v18, %s8603_s30 }
 0x90c   :  { %1571 = vrot.lane.b32.xlu0 %v7184_v13, %s8603_s30 }
 0x971   :  { %v1502_v5 = vpop.xlane.xlu1 %1501 }
 0x972   :  { %v1516_v6 = vsub.f32 %v1474_v52, %v1502_v5 }
 0x973   :  { %v1499_v8 = vpop.xlane.xlu0 %1498 }
 0x974   :  { %v1523_v9 = vmul.f32 1.442695, %v1516_v6  ;;  %v1515_v10 = vsub.f32 %v1469_v54, %v1499_v8 }
 0x976   :  { %6685 = vpow2.f32 %v1523_v9  ;;  %v1521_v12 = vmul.f32 1.442695, %v1515_v10  ;;  %v1959_v9 = vsel %vm87_vm0, %v7565_v4, -inf }
 0x977   :  { %v1505_v19 = vpop.xlane.xlu0 %1504 }
 0x978   :  { %6687 = vpow2.f32 %v1521_v12  ;;  %v1517_v20 = vsub.f32 %v1479_v33, %v1505_v19 }
 0x97a   :  { %v1525_v21 = vmul.f32 1.442695, %v1517_v20 }
 0x97b   :  { %v1508_v22 = vpop.xlane.xlu0 %1507  ;;  %v1511_v23 = vpop.xlane.xlu1 %1510 }
 0x97c   :  { %6689 = vpow2.f32 %v1525_v21  ;;  %v1518_v24 = vsub.f32 %v1484_v60, %v1508_v22  ;;  %v1519_v25 = vsub.f32 %v1489_v0, %v1511_v23  ;;  %v1927_v0 = vpop.f32.mrf.mxu1 }
 0x97d   :  { %v7568_v6 = vadd.f32 %v1927_v0, %v7254_v37 }
 0x97e   :  { %v1527_v27 = vmul.f32 1.442695, %v1518_v24  ;;  %v1529_v28 = vmul.f32 1.442695, %v1519_v25 }
 0x97f   :  { %v1514_v30 = vpop.xlane.xlu0 %1513  ;;  %v1574_v31 = vpop.permute.xlu1 %1573  ;;  %v1956_v12 = vsel %vm87_vm0, %v7568_v6, -inf }
 0x980   :  { %6691 = vpow2.f32 %v1527_v27  ;;  %v1520_v32 = vsub.f32 %v1494_v1, %v1514_v30  ;;  %6187 = vmatprep.subr.mxu0 %v1574_v31  ;;  %v6236_v1 = vpop.f32.mrf.mxu1 }
 0x981   :  { %6693 = vpow2.f32 %v1529_v28  ;;  %6188 = vmatpush3.msra.mxu0 %v1574_v31  ;;  %v7583_v37 = vadd.f32 %v6236_v1, %v7260_v41  ;;  %v451_v28 = vld [vmem:[%s8583_s9 + $0x10] sm:$0xff] }
 0x982   :  { %v1531_v35 = vmul.f32 1.442695, %v1520_v32  ;;  %v1937_v2 = vpop.f32.mrf.mxu1 }
 0x983   :  { %v7536_v38 = vpop.eup %6685  ;;  %v1572_v39 = vpop.permute.xlu0 %1571  ;;  %v7576_v10 = vadd.f32 %v1937_v2, %v7269_v48  ;;  %v1965_v48 = vsel %vm87_vm0, %v7583_v37, -inf }
 0x984   :  { %v1570_v42 = vpop.permute.xlu1 %1569  ;;  %6695 = vpow2.f32 %v1531_v35  ;;  %6189 = vmatprep.subr.mxu0 %v1572_v39  ;;  %v1536_v51 = vsel %vm87_vm0, %v7536_v38, 0.0  ;;  %v6239_v3 = vpop.f32.mrf.mxu1 }
 0x985   :  { %v7540_v52 = vpop.eup %6687  ;;  %1537 = vadd.xlane.f32.xlu0 %v1536_v51  ;;  %6190 = vmatpush3.msra.mxu0 %v1572_v39  ;;  %v7588_v19 = vadd.f32 %v6239_v3, %v7274_v49 }
 0x986   :  { %6191 = vmatprep.subr.mxu0 %v1570_v42  ;;  %v1533_v53 = vsel %vm87_vm0, %v7540_v52, 0.0  ;;  %v1947_v5 = vpop.f32.mrf.mxu1 }
 0x987   :  { %1534 = vadd.xlane.f32.xlu1 %v1533_v53  ;;  %6192 = vmatpush3.msra.mxu0 %v1570_v42  ;;  %v7571_v8 = vadd.f32 %v1947_v5, %v7282_v55  ;;  %v1962_v55 = vsel %vm87_vm0, %v7576_v10, -inf  ;;  %v1971_v20 = vsel %vm87_vm0, %v7588_v19, -inf }
 0x988   :  { %v1568_v54 = vpop.permute.xlu1 %1567 }
 0x989   :  { %6193 = vmatprep.subr.mxu0 %v1568_v54  ;;  %v7544_v56 = vpop.eup %6689  ;;  %v1968_v34 = vsel %vm87_vm0, %v7571_v8, -inf }
 0x98a   :  { %6194 = vmatpush3.msra.mxu0 %v1568_v54  ;;  %v1539_v57 = vsel %vm87_vm0, %v7544_v56, 0.0 }
 0x98b   :  { %1540 = vadd.xlane.f32.xlu1 %v1539_v57 }
 0x98d   :  { %v7548_v58 = vpop.eup %6691 }
 0x98e   :  { %v7550_v59 = vpop.eup %6693  ;;  %v1542_v33 = vsel %vm87_vm0, %v7548_v58, 0.0 }
 0x98f   :  { %1543 = vadd.xlane.f32.xlu0 %v1542_v33  ;;  %v1545_v61 = vsel %vm87_vm0, %v7550_v59, 0.0 }
 0x990   :  { %1546 = vadd.xlane.f32.xlu1 %v1545_v61 }
 0x991   :  { %v7556_v60 = vpop.eup %6695 }
 0x992   :  { %v1548_v62 = vsel %vm87_vm0, %v7556_v60, 0.0 }
 0x993   :  { %1549 = vadd.xlane.f32.xlu0 %v1548_v62 }
 0x9a1   :  { %1563 = vrot.lane.b32.xlu1 %v7178_v7, %s8603_s30 }
 0x9a9   :  { %1565 = vrot.lane.b32.xlu0 %v7188_v14, %s8603_s30 }
 0x9c5   :  { %1960 = vmax.xlane.f32.xlu1 %v1959_v9 }
 0x9c8   :  { %1957 = vmax.xlane.f32.xlu0 %v1956_v12 }
 0x9c9   :  { %1969 = vmax.xlane.f32.xlu1 %v1968_v34 }
 0x9cc   :  { %1963 = vmax.xlane.f32.xlu0 %v1962_v55 }
 0x9d0   :  { %1966 = vmax.xlane.f32.xlu0 %v1965_v48 }
 0x9d4   :  { %1972 = vmax.xlane.f32.xlu0 %v1971_v20 }
 0x9da   :  { %2032 = vrot.lane.b32.xlu1 %v7182_v11, %s8601_s27 }
 0x9de   :  { %2028 = vrot.lane.b32.xlu1 %v7192_v16, %s8601_s27 }
 0x9e2   :  { %2026 = vrot.lane.b32.xlu1 %v7198_v18, %s8601_s27 }
 0x9ea   :  { %2030 = vrot.lane.b32.xlu0 %v7184_v13, %s8601_s27 }
 0xa0e   :  { %v1538_v41 = vpop.xlane.xlu0 %1537 }
 0xa10   :  { %v1535_v49 = vpop.xlane.xlu1 %1534 }
 0xa11   :  { %6697 = vrcp.f32 %v1535_v49 }
 0xa12   :  { %6699 = vrcp.f32 %v1538_v41 }
 0xa14   :  { %v1541_v21 = vpop.xlane.xlu1 %1540 }
 0xa15   :  { %6701 = vrcp.f32 %v1541_v21  ;;  %v7648_v21 = vpop.f32.mrf.mxu0 }
 0xa18   :  { %v1544_v22 = vpop.xlane.xlu0 %1543 }
 0xa19   :  { %6703 = vrcp.f32 %v1544_v22  ;;  %v1547_v23 = vpop.xlane.xlu1 %1546  ;;  %v7650_v22 = vpop.f32.mrf.mxu0 }
 0xa1a   :  { %6705 = vrcp.f32 %v1547_v23 }
 0xa1b   :  { %v7652_v23 = vpop.f32.mrf.mxu0 }
 0xa1c   :  { %v1550_v11 = vpop.xlane.xlu0 %1549 }
 0xa1d   :  { %6707 = vrcp.f32 %v1550_v11  ;;  %v1564_v27 = vpop.permute.xlu1 %1563  ;;  %v7654_v11 = vpop.f32.mrf.mxu0 }
 0xa1e   :  { %v6698_v24 = vpop.eup %6697 }
 0xa1f   :  { %v1557_v16 = vmul.f32 %v6698_v24, %v7540_v52  ;;  %v6700_v25 = vpop.eup %6699  ;;  %v7656_v24 = vpop.f32.mrf.mxu0 }
 0xa20   :  { %v1566_v18 = vpop.permute.xlu0 %1565  ;;  %v1558_v30 = vmul.f32 %v6700_v25, %v7536_v38 }
 0xa21   :  { %6195 = vmatprep.subr.mxu0 %v1566_v18  ;;  %6199 = vmatprep.mubr.msk.f32.mxu0 %vm87_vm0, %v1557_v16  ;;  %v7658_v16 = vpop.f32.mrf.mxu0 }
 0xa22   :  { %v6702_v13 = vpop.eup %6701  ;;  %6196 = vmatpush3.msra.mxu0 %v1566_v18 }
 0xa23   :  { %6197 = vmatprep.subr.mxu0 %v1564_v27  ;;  %v1559_v31 = vmul.f32 %v6702_v13, %v7544_v56 }
 0xa24   :  { %6198 = vmatpush3.msra.mxu0 %v1564_v27 }
 0xa25   :  { %6200 = vmatmul.mubr.msk.f32.vlgmr.msra.gmra.mxu0 %vm87_vm0, %v1558_v30  ;;  %6208 = vmatprep.subr.mxu0 %v451_v28 }
 0xa26   :  { %v6704_v32 = vpop.eup %6703  ;;  %6202 = vmatprep.mubr.msk.f32.mxu0 %vm87_vm0, %v1559_v31  ;;  %6209 = vmatpush3.msra.mxu0 %v451_v28 }
 0xa27   :  { %v6706_v35 = vpop.eup %6705  ;;  %v1560_v39 = vmul.f32 %v6704_v32, %v7548_v58 }
 0xa28   :  { %v1561_v42 = vmul.f32 %v6706_v35, %v7550_v59 }
 0xa29   :  { %6203 = vmatmul.mubr.msk.f32.gmra.mxu0 %vm87_vm0, %v1560_v39 }
 0xa2a   :  { %v6708_v51 = vpop.eup %6707  ;;  %6205 = vmatprep.mubr.msk.f32.mxu0 %vm87_vm0, %v1561_v42 }
 0xa2b   :  { %v1562_v38 = vmul.f32 %v6708_v51, %v7556_v60 }
 0xa2d   :  { %6206 = vmatmul.mubr.msk.f32.gmra.mxu0 %vm87_vm0, %v1562_v38 }
 0xa4e   :  { %v1961_v52 = vpop.xlane.xlu1 %1960 }
 0xa4f   :  { %v1975_v53 = vsub.f32 %v7565_v4, %v1961_v52 }
 0xa51   :  { %v1982_v54 = vmul.f32 1.442695, %v1975_v53  ;;  %v1958_v56 = vpop.xlane.xlu0 %1957 }
 0xa52   :  { %v1974_v57 = vsub.f32 %v7568_v6, %v1958_v56  ;;  %v1970_v33 = vpop.xlane.xlu1 %1969 }
 0xa53   :  { %6709 = vpow2.f32 %v1982_v54  ;;  %v1978_v59 = vsub.f32 %v7571_v8, %v1970_v33 }
 0xa54   :  { %v1980_v58 = vmul.f32 1.442695, %v1974_v57 }
 0xa55   :  { %v1964_v61 = vpop.xlane.xlu0 %1963  ;;  %v1988_v60 = vmul.f32 1.442695, %v1978_v59 }
 0xa56   :  { %6711 = vpow2.f32 %v1980_v58  ;;  %v1976_v62 = vsub.f32 %v7576_v10, %v1964_v61  ;;  %v2033_v63 = vpop.permute.xlu1 %2032 }
 0xa57   :  { %6240 = vmatprep.subr.mxu0 %v2033_v63 }
 0xa58   :  { %v1984_v0 = vmul.f32 1.442695, %v1976_v62 }
 0xa59   :  { %v1967_v1 = vpop.xlane.xlu0 %1966 }
 0xa5a   :  { %6713 = vpow2.f32 %v1984_v0  ;;  %v1977_v2 = vsub.f32 %v7583_v37, %v1967_v1  ;;  %v2029_v25 = vpop.permute.xlu1 %2028 }
 0xa5b   :  { %6715 = vpow2.f32 %v1988_v60 }
 0xa5c   :  { %v1986_v3 = vmul.f32 1.442695, %v1977_v2  ;;  %v452_v2 = vld [vmem:[%s8583_s9 + $0x18] sm:$0xff] }
 0xa5d   :  { %v1973_v4 = vpop.xlane.xlu0 %1972 }
 0xa5e   :  { %6717 = vpow2.f32 %v1986_v3  ;;  %v1979_v5 = vsub.f32 %v7588_v19, %v1973_v4  ;;  %v1331_v3 = vadd.f32 %v7648_v21, %v7504_v43 }
 0xa60   :  { %v7623_v6 = vpop.eup %6709  ;;  %v1990_v8 = vmul.f32 1.442695, %v1979_v5  ;;  %v1326_v5 = vadd.f32 %v7650_v22, %v7506_v44  ;;  %v1346_v44 = vadd.f32 %v7658_v16, %v7514_v50 }
 0xa61   :  { %v1995_v9 = vsel %vm87_vm0, %v7623_v6, 0.0  ;;  %v2031_v27 = vpop.permute.xlu0 %2030 }
 0xa62   :  { %6719 = vpow2.f32 %v1990_v8  ;;  %1996 = vadd.xlane.f32.xlu0 %v1995_v9  ;;  %v1341_v9 = vadd.f32 %v7652_v23, %v7508_v45 }
 0xa63   :  { %v6712_v10 = vpop.eup %6711 }
 0xa64   :  { %v1992_v12 = vsel %vm87_vm0, %v6712_v10, 0.0 }
 0xa65   :  { %1993 = vadd.xlane.f32.xlu1 %v1992_v12 }
 0xa67   :  { %v7628_v34 = vpop.eup %6713 }
 0xa68   :  { %v1998_v37 = vsel %vm87_vm0, %v7628_v34, 0.0  ;;  %v7632_v55 = vpop.eup %6715 }
 0xa69   :  { %1999 = vadd.xlane.f32.xlu1 %v1998_v37  ;;  %v2004_v20 = vsel %vm87_vm0, %v7632_v55, 0.0 }
 0xa6b   :  { %v7634_v19 = vpop.eup %6717 }
 0xa6c   :  { %v2001_v48 = vsel %vm87_vm0, %v7634_v19, 0.0 }
 0xa6d   :  { %2002 = vadd.xlane.f32.xlu0 %v2001_v48  ;;  %2005 = vadd.xlane.f32.xlu1 %v2004_v20 }
 0xa6f   :  { %v7640_v41 = vpop.eup %6719 }
 0xa70   :  { %v2007_v49 = vsel %vm87_vm0, %v7640_v41, 0.0 }
 0xa71   :  { %2008 = vadd.xlane.f32.xlu0 %v2007_v49 }
 0xa7e   :  { %2022 = vrot.lane.b32.xlu1 %v7178_v7, %s8601_s27 }
 0xa87   :  { %2024 = vrot.lane.b32.xlu0 %v7188_v14, %s8601_s27  ;;  %v2027_v14 = vpop.permute.xlu1 %2026 }
 0xae5   :  { %v6201_v18 = vpop.f32.mrf.mxu0 }
 0xae7   :  { %v1665_v13 = vpop.f32.mrf.mxu0 }
 0xae8   :  { %6210 = vmatprep.mubr.msk.f32.mxu0 %vm471_vm2, %v1665_v13 }
 0xae9   :  { %v6204_v7 = vpop.f32.mrf.mxu0  ;;  %6211 = vmatmul.mubr.msk.f32.vlgmr.msra.gmra.mxu0 %vm471_vm2, %v6201_v18 }
 0xaea   :  { %6241 = vmatpush3.msra.mxu0 %v2033_v63 }
 0xaeb   :  { %6242 = vmatprep.subr.mxu0 %v2031_v27  ;;  %v1675_v28 = vpop.f32.mrf.mxu0  ;;  %v1997_v31 = vpop.xlane.xlu0 %1996 }
 0xaec   :  { %6243 = vmatpush3.msra.mxu0 %v2031_v27  ;;  %6213 = vmatprep.mubr.msk.f32.mxu0 %vm471_vm2, %v1675_v28 }
 0xaed   :  { %6244 = vmatprep.subr.mxu0 %v2029_v25  ;;  %v6207_v30 = vpop.f32.mrf.mxu0  ;;  %6214 = vmatmul.mubr.msk.f32.gmra.mxu0 %vm471_vm2, %v6204_v7 }
 0xaee   :  { %6245 = vmatpush3.msra.mxu0 %v2029_v25  ;;  %v1994_v32 = vpop.xlane.xlu1 %1993 }
 0xaef   :  { %6246 = vmatprep.subr.mxu0 %v2027_v14  ;;  %6721 = vrcp.f32 %v1994_v32  ;;  %v1685_v35 = vpop.f32.mrf.mxu0 }
 0xaf0   :  { %6247 = vmatpush3.msra.mxu0 %v2027_v14  ;;  %6216 = vmatprep.mubr.msk.f32.mxu0 %vm471_vm2, %v1685_v35  ;;  %6723 = vrcp.f32 %v1997_v31 }
 0xaf1   :  { %6217 = vmatmul.mubr.msk.f32.gmra.mxu0 %vm471_vm2, %v6207_v30 }
 0xaf2   :  { %v2000_v39 = vpop.xlane.xlu1 %1999 }
 0xaf3   :  { %6725 = vrcp.f32 %v2000_v39 }
 0xaf6   :  { %v2003_v42 = vpop.xlane.xlu0 %2002  ;;  %v2006_v51 = vpop.xlane.xlu1 %2005 }
 0xaf7   :  { %6727 = vrcp.f32 %v2003_v42 }
 0xaf8   :  { %6729 = vrcp.f32 %v2006_v51 }
 0xafa   :  { %v2009_v38 = vpop.xlane.xlu0 %2008  ;;  %v2023_v33 = vpop.permute.xlu1 %2022 }
 0xafb   :  { %6731 = vrcp.f32 %v2009_v38 }
 0xafc   :  { %v6722_v52 = vpop.eup %6721 }
 0xafd   :  { %v2016_v53 = vmul.f32 %v6722_v52, %v6712_v10  ;;  %v6724_v54 = vpop.eup %6723 }
 0xafe   :  { %v2025_v56 = vpop.permute.xlu0 %2024  ;;  %v2017_v58 = vmul.f32 %v6724_v54, %v7623_v6 }
 0xaff   :  { %6248 = vmatprep.subr.mxu0 %v2025_v56  ;;  %6252 = vmatprep.mubr.msk.f32.mxu0 %vm87_vm0, %v2016_v53 }
 0xb00   :  { %v6726_v57 = vpop.eup %6725  ;;  %6249 = vmatpush3.msra.mxu0 %v2025_v56 }
 0xb01   :  { %6250 = vmatprep.subr.mxu0 %v2023_v33  ;;  %v2018_v59 = vmul.f32 %v6726_v57, %v7628_v34  ;;  %v1336_v34 = vadd.f32 %v7654_v11, %v7510_v46 }
 0xb02   :  { %6251 = vmatpush3.msra.mxu0 %v2023_v33 }
 0xb03   :  { %6253 = vmatmul.mubr.msk.f32.vlgmr.msra.gmra.mxu0 %vm87_vm0, %v2017_v58  ;;  %6261 = vmatprep.subr.mxu0 %v452_v2 }
 0xb04   :  { %v6728_v61 = vpop.eup %6727  ;;  %6255 = vmatprep.mubr.msk.f32.mxu0 %vm87_vm0, %v2018_v59  ;;  %6262 = vmatpush3.msra.mxu0 %v452_v2 }
 0xb05   :  { %v6730_v62 = vpop.eup %6729  ;;  %v2019_v63 = vmul.f32 %v6728_v61, %v7634_v19  ;;  %v1351_v19 = vadd.f32 %v7656_v24, %v7512_v47  ;;  %v5510_v24 = vld [vmem:[%s8584_s10] ss:$0 sm:$0xff] }
 0xb06   :  { %v2020_v60 = vmul.f32 %v6730_v62, %v7632_v55 }
 0xb07   :  { %6256 = vmatmul.mubr.msk.f32.gmra.mxu0 %vm87_vm0, %v2019_v63 }
 0xb08   :  { %v6732_v0 = vpop.eup %6731  ;;  %6258 = vmatprep.mubr.msk.f32.mxu0 %vm87_vm0, %v2020_v60 }
 0xb09   :  { %v2021_v1 = vmul.f32 %v6732_v0, %v7640_v41 }
 0xb0b   :  { %6259 = vmatmul.mubr.msk.f32.gmra.mxu0 %vm87_vm0, %v2021_v1 }
 0xba9   :  { %v6212_v4 = vpop.f32.mrf.mxu0 }
 0xbaa   :  { %v1808_v6 = vadd.f32 %v6212_v4, %v1331_v3 }
 0xbab   :  { %v1778_v8 = vpop.f32.mrf.mxu0 }
 0xbac   :  { %v1807_v10 = vadd.f32 %v1778_v8, %v1326_v5  ;;  %v2409_v8 = vld [vmem:[%s8587_s13 + $0x10] sm:$0xff] }
 0xbad   :  { %v6215_v12 = vpop.f32.mrf.mxu0 }
 0xbae   :  { %v1810_v37 = vadd.f32 %v6215_v12, %v1341_v9  ;;  %v2408_v9 = vld [vmem:[%s8587_s13 + $0x8] sm:$0xff] }
 0xbaf   :  { %v1788_v55 = vpop.f32.mrf.mxu0 }
 0xbb0   :  { %v1809_v43 = vadd.f32 %v1788_v55, %v1336_v34 }
 0xbb1   :  { %v6218_v48 = vpop.f32.mrf.mxu0 }
 0xbb2   :  { %v1812_v20 = vadd.f32 %v6218_v48, %v1351_v19 }
 0xbb3   :  { %v1798_v41 = vpop.f32.mrf.mxu0 }
 0xbb4   :  { %v1811_v49 = vadd.f32 %v1798_v41, %v1346_v44 }
 0xbc3   :  { %v6254_v21 = vpop.f32.mrf.mxu0 }
 0xbc5   :  { %v2124_v45 = vpop.f32.mrf.mxu0 }
 0xbc6   :  { %6263 = vmatprep.mubr.msk.f32.mxu0 %vm471_vm2, %v2124_v45 }
 0xbc7   :  { %v6257_v22 = vpop.f32.mrf.mxu0  ;;  %6264 = vmatmul.mubr.msk.f32.vlgmr.msra.gmra.mxu0 %vm471_vm2, %v6254_v21 }
 0xbc9   :  { %v2134_v46 = vpop.f32.mrf.mxu0 }
 0xbca   :  { %6266 = vmatprep.mubr.msk.f32.mxu0 %vm471_vm2, %v2134_v46 }
 0xbcb   :  { %v6260_v23 = vpop.f32.mrf.mxu0  ;;  %6267 = vmatmul.mubr.msk.f32.gmra.mxu0 %vm471_vm2, %v6257_v22 }
 0xbcd   :  { %v2144_v47 = vpop.f32.mrf.mxu0 }
 0xbce   :  { %6269 = vmatprep.mubr.msk.f32.mxu0 %vm471_vm2, %v2144_v47 }
 0xbcf   :  { %6270 = vmatmul.mubr.msk.f32.gmra.mxu0 %vm471_vm2, %v6260_v23 }
 0xc87   :  { %v6265_v50 = vpop.f32.mrf.mxu0 }
 0xc88   :  { %v2267_v11 = vadd.f32 %v6265_v50, %v1808_v6  ;;  %v2410_v6 = vld [vmem:[%s8587_s13 + $0x18] sm:$0xff] }
 0xc89   :  { %v2237_v16 = vpop.f32.mrf.mxu0  ;;  %6272 = vmatprep.subr.mxu1 %v2410_v6 }
 0xc8a   :  { %v2273_v25 = vadd.f32 %v2267_v11, %v7091_v15  ;;  %v2266_v18 = vadd.f32 %v2237_v16, %v1807_v10  ;;  %6273 = vmatpush3.msra.mxu1 %v2410_v6  ;;  %v2407_v10 = vld [vmem:[%s8587_s13] sm:$0xff] }
 0xc8b   :  { %v6268_v13 = vpop.f32.mrf.mxu0  ;;  %6274 = vmatprep.subr.mxu1 %v2409_v8 }
 0xc8c   :  { %v7702_v7 = vadd.f32 %v5510_v24, %v2273_v25  ;;  %v2272_v14 = vadd.f32 %v2266_v18, %v7093_v17  ;;  %v2269_v32 = vadd.f32 %v6268_v13, %v1810_v37  ;;  %6275 = vmatpush3.msra.mxu1 %v2409_v8 }
 0xc8d   :  { %v2247_v27 = vpop.f32.mrf.mxu0  ;;  %6276 = vmatprep.subr.mxu1 %v2408_v9 }
 0xc8e   :  { %v7705_v28 = vadd.f32 %v5510_v24, %v2272_v14  ;;  %v2268_v30 = vadd.f32 %v2247_v27, %v1809_v43  ;;  %v2296_v31 = vsel %vm209_vm1, %v7702_v7, 0.0  ;;  %v2318_v39 = vmul.f32 %v7702_v7, %v7702_v7  ;;  %6277 = vmatpush3.msra.mxu1 %v2408_v9 }
 0xc8f   :  { %2297 = vadd.xlane.f32.xlu1 %v2296_v31  ;;  %v6271_v35 = vpop.f32.mrf.mxu0  ;;  %v2275_v52 = vadd.f32 %v2269_v32, %v7112_v29  ;;  %6278 = vmatprep.subr.mxu1 %v2407_v10 }
 0xc90   :  { %v2274_v15 = vadd.f32 %v2268_v30, %v7108_v26  ;;  %v2293_v42 = vsel %vm209_vm1, %v7705_v28, 0.0  ;;  %v2326_v53 = vsel %vm209_vm1, %v2318_v39, 0.0  ;;  %v2317_v26 = vmul.f32 %v7705_v28, %v7705_v28  ;;  %6279 = vmatpush3.msra.mxu1 %v2407_v10 }
 0xc91   :  { %2294 = vadd.xlane.f32.xlu0 %v2293_v42  ;;  %v2257_v17 = vpop.f32.mrf.mxu0  ;;  %v2271_v33 = vadd.f32 %v6271_v35, %v1812_v20  ;;  %v7725_v58 = vadd.f32 %v5510_v24, %v2275_v52 }
 0xc92   :  { %v7714_v51 = vadd.f32 %v5510_v24, %v2274_v15  ;;  %v2270_v38 = vadd.f32 %v2257_v17, %v1811_v49  ;;  %v2323_v29 = vsel %vm209_vm1, %v2317_v26, 0.0 }
 0xc93   :  { %v2277_v61 = vadd.f32 %v2271_v33, %v7132_v40  ;;  %v2302_v62 = vsel %vm209_vm1, %v7725_v58, 0.0  ;;  %v2320_v60 = vmul.f32 %v7725_v58, %v7725_v58 }
 0xc94   :  { %v2276_v54 = vadd.f32 %v2270_v38, %v7124_v36  ;;  %v2299_v56 = vsel %vm209_vm1, %v7714_v51, 0.0  ;;  %v2319_v57 = vmul.f32 %v7714_v51, %v7714_v51 }
 0xc95   :  { %2327 = vadd.xlane.f32.xlu0 %v2326_v53  ;;  %2300 = vadd.xlane.f32.xlu1 %v2299_v56  ;;  %v7740_v1 = vadd.f32 %v5510_v24, %v2277_v61  ;;  %v2332_v2 = vsel %vm209_vm1, %v2320_v60, 0.0 }
 0xc96   :  { %v7727_v59 = vadd.f32 %v5510_v24, %v2276_v54  ;;  %v2329_v36 = vsel %vm209_vm1, %v2319_v57, 0.0 }
 0xc97   :  { %v2308_v3 = vsel %vm209_vm1, %v7740_v1, 0.0  ;;  %v2322_v4 = vmul.f32 %v7740_v1, %v7740_v1 }
 0xc98   :  { %v2305_v63 = vsel %vm209_vm1, %v7727_v59, 0.0  ;;  %v2321_v0 = vmul.f32 %v7727_v59, %v7727_v59 }
 0xc99   :  { %2324 = vadd.xlane.f32.xlu0 %v2323_v29  ;;  %2330 = vadd.xlane.f32.xlu1 %v2329_v36  ;;  %v2338_v5 = vsel %vm209_vm1, %v2322_v4, 0.0 }
 0xc9a   :  { %v2335_v40 = vsel %vm209_vm1, %v2321_v0, 0.0 }
 0xc9d   :  { %2303 = vadd.xlane.f32.xlu0 %v2302_v62  ;;  %2306 = vadd.xlane.f32.xlu1 %v2305_v63  ;;  %v5511_v62 = vld [vmem:[%s8585_s11] ss:$0 sm:$0xff] }
 0xca1   :  { %2333 = vadd.xlane.f32.xlu0 %v2332_v2  ;;  %2336 = vadd.xlane.f32.xlu1 %v2335_v40 }
 0xca5   :  { %2309 = vadd.xlane.f32.xlu0 %v2308_v3 }
 0xca9   :  { %2339 = vadd.xlane.f32.xlu0 %v2338_v5  ;;  %v5512_v5 = vld [vmem:[%s8586_s12] ss:$0 sm:$0xff] }
 0xd18   :  { %v2298_v12 = vpop.xlane.xlu1 %2297 }
 0xd19   :  { %v2312_v37 = vmul.f32 0.03125, %v2298_v12 }
 0xd1a   :  { %v2295_v34 = vpop.xlane.xlu0 %2294 }
 0xd1b   :  { %v2311_v55 = vmul.f32 0.03125, %v2295_v34  ;;  %v2348_v48 = vmul.f32 %v2312_v37, %v2312_v37  ;;  %v2360_v56 = vsub.f32 %v7702_v7, %v2312_v37 }
 0xd1d   :  { %v2347_v49 = vmul.f32 %v2311_v55, %v2311_v55  ;;  %v2359_v36 = vsub.f32 %v7705_v28, %v2311_v55 }
 0xd1e   :  { %v2328_v19 = vpop.xlane.xlu0 %2327  ;;  %v2301_v43 = vpop.xlane.xlu1 %2300 }
 0xd1f   :  { %v2342_v44 = vmul.f32 0.03125, %v2328_v19  ;;  %v2313_v20 = vmul.f32 0.03125, %v2301_v43 }
 0xd21   :  { %v2354_v41 = vsub.f32 %v2342_v44, %v2348_v48  ;;  %v2349_v46 = vmul.f32 %v2313_v20, %v2313_v20  ;;  %v2361_v60 = vsub.f32 %v7714_v51, %v2313_v20 }
 0xd22   :  { %v2325_v21 = vpop.xlane.xlu0 %2324  ;;  %v2331_v45 = vpop.xlane.xlu1 %2330 }
 0xd23   :  { %v2366_v22 = vadd.f32 1e-06, %v2354_v41  ;;  %v2341_v23 = vmul.f32 0.03125, %v2325_v21  ;;  %v2343_v47 = vmul.f32 0.03125, %v2331_v45 }
 0xd25   :  { %6733 = vrsqrt.f32 %v2366_v22  ;;  %v2353_v50 = vsub.f32 %v2341_v23, %v2347_v49  ;;  %v2355_v11 = vsub.f32 %v2343_v47, %v2349_v46  ;;  %v2568_v47 = vld [vmem:[%s8589_s15 + $0x38] sm:$0xff] }
 0xd26   :  { %v2304_v24 = vpop.xlane.xlu0 %2303  ;;  %v2307_v16 = vpop.xlane.xlu1 %2306  ;;  %6289 = vmatprep.subr.mxu0 %v2568_v47 }
 0xd27   :  { %v2365_v25 = vadd.f32 1e-06, %v2353_v50  ;;  %v2367_v18 = vadd.f32 1e-06, %v2355_v11  ;;  %v2314_v13 = vmul.f32 0.03125, %v2304_v24  ;;  %v2315_v14 = vmul.f32 0.03125, %v2307_v16  ;;  %6290 = vmatpush3.msra.mxu0 %v2568_v47 }
 0xd28   :  { %v2567_v50 = vld [vmem:[%s8589_s15 + $0x30] sm:$0xff]  ;;  %v2566_v11 = vld [vmem:[%s8589_s15 + $0x28] sm:$0xff]  ;;  %v2565_v24 = vld [vmem:[%s8589_s15 + $0x20] sm:$0xff] }
 0xd29   :  { %6735 = vrsqrt.f32 %v2365_v25  ;;  %v2350_v31 = vmul.f32 %v2314_v13, %v2314_v13  ;;  %v2351_v32 = vmul.f32 %v2315_v14, %v2315_v14  ;;  %v2362_v12 = vsub.f32 %v7725_v58, %v2314_v13  ;;  %6291 = vmatprep.subr.mxu0 %v2567_v50  ;;  %v2564_v16 = vld [vmem:[%s8589_s15 + $0x18] sm:$0xff]  ;;  %v2563_v25 = vld [vmem:[%s8589_s15 + $0x10] sm:$0xff]  ;;  %v2561_v13 = vld [vmem:[%s8589_s15] sm:$0xff] }
 0xd2a   :  { %6737 = vrsqrt.f32 %v2367_v18  ;;  %v2334_v27 = vpop.xlane.xlu0 %2333  ;;  %v2337_v30 = vpop.xlane.xlu1 %2336  ;;  %v2363_v55 = vsub.f32 %v7727_v59, %v2315_v14  ;;  %6292 = vmatpush3.msra.mxu0 %v2567_v50  ;;  %v2562_v18 = vld [vmem:[%s8589_s15 + $0x8] sm:$0xff]  ;;  %v5513_v14 = vld [vmem:[%s8588_s14] ss:$0 sm:$0xff] }
 0xd2b   :  { %v2344_v35 = vmul.f32 0.03125, %v2334_v27  ;;  %v2345_v39 = vmul.f32 0.03125, %v2337_v30  ;;  %6293 = vmatprep.subr.mxu0 %v2566_v11 }
 0xd2c   :  { %6294 = vmatpush3.msra.mxu0 %v2566_v11 }
 0xd2d   :  { %v2356_v15 = vsub.f32 %v2344_v35, %v2350_v31  ;;  %v2357_v42 = vsub.f32 %v2345_v39, %v2351_v32  ;;  %6295 = vmatprep.subr.mxu0 %v2565_v24 }
 0xd2e   :  { %v2310_v17 = vpop.xlane.xlu0 %2309  ;;  %6296 = vmatpush3.msra.mxu0 %v2565_v24 }
 0xd2f   :  { %v2368_v38 = vadd.f32 1e-06, %v2356_v15  ;;  %v2369_v52 = vadd.f32 1e-06, %v2357_v42  ;;  %v2316_v53 = vmul.f32 0.03125, %v2310_v17  ;;  %6297 = vmatprep.subr.mxu0 %v2564_v16 }
 0xd30   :  { %6298 = vmatpush3.msra.mxu0 %v2564_v16 }
 0xd31   :  { %6739 = vrsqrt.f32 %v2368_v38  ;;  %v2352_v57 = vmul.f32 %v2316_v53, %v2316_v53  ;;  %v2364_v21 = vsub.f32 %v7740_v1, %v2316_v53  ;;  %6299 = vmatprep.subr.mxu0 %v2563_v25 }
 0xd32   :  { %v6734_v54 = vpop.eup %6733  ;;  %6741 = vrsqrt.f32 %v2369_v52  ;;  %v2340_v26 = vpop.xlane.xlu0 %2339  ;;  %6300 = vmatpush3.msra.mxu0 %v2563_v25 }
 0xd33   :  { %v2346_v33 = vmul.f32 0.03125, %v2340_v26  ;;  %v2378_v29 = vmul.f32 %v6734_v54, %v2360_v56  ;;  %6301 = vmatprep.subr.mxu0 %v2562_v18 }
 0xd34   :  { %6302 = vmatpush3.msra.mxu0 %v2562_v18 }
 0xd35   :  { %v2358_v61 = vsub.f32 %v2346_v33, %v2352_v57  ;;  %v2390_v3 = vmul.f32 %v5511_v62, %v2378_v29  ;;  %6303 = vmatprep.subr.mxu0 %v2561_v13 }
 0xd36   :  { %v6736_v63 = vpop.eup %6735  ;;  %6304 = vmatpush3.msra.mxu0 %v2561_v13 }
 0xd37   :  { %v6738_v0 = vpop.eup %6737  ;;  %v2370_v2 = vadd.f32 1e-06, %v2358_v61  ;;  %v2377_v40 = vmul.f32 %v6736_v63, %v2359_v36  ;;  %v2402_v10 = vadd.f32 %v5512_v5, %v2390_v3 }
 0xd38   :  { %v2379_v4 = vmul.f32 %v6738_v0, %v2361_v60 }
 0xd39   :  { %6743 = vrsqrt.f32 %v2370_v2  ;;  %v2389_v6 = vmul.f32 %v5511_v62, %v2377_v40 }
 0xd3a   :  { %v2391_v8 = vmul.f32 %v5511_v62, %v2379_v4 }
 0xd3b   :  { %v2401_v9 = vadd.f32 %v5512_v5, %v2389_v6 }
 0xd3c   :  { %v2403_v34 = vadd.f32 %v5512_v5, %v2391_v8 }
 0xd3d   :  { %6280 = vmatprep.mubr.msk.f32.mxu1 %vm209_vm1, %v2401_v9 }
 0xd3e   :  { %v6740_v37 = vpop.eup %6739  ;;  %6281 = vmatmul.mubr.msk.f32.vlgmr.msra.gmra.mxu1 %vm209_vm1, %v2402_v10 }
 0xd3f   :  { %v6742_v19 = vpop.eup %6741  ;;  %6283 = vmatprep.mubr.msk.f32.mxu1 %vm209_vm1, %v2403_v34  ;;  %v2380_v43 = vmul.f32 %v6740_v37, %v2362_v12 }
 0xd40   :  { %v2381_v48 = vmul.f32 %v6742_v19, %v2363_v55 }
 0xd41   :  { %v2392_v44 = vmul.f32 %v5511_v62, %v2380_v43 }
 0xd42   :  { %v2393_v20 = vmul.f32 %v5511_v62, %v2381_v48 }
 0xd43   :  { %v2404_v41 = vadd.f32 %v5512_v5, %v2392_v44 }
 0xd44   :  { %v2405_v49 = vadd.f32 %v5512_v5, %v2393_v20 }
 0xd45   :  { %6284 = vmatmul.mubr.msk.f32.gmra.mxu1 %vm209_vm1, %v2404_v41  ;;  %v5520_v41 = vld [vmem:[%s8590_s16] ss:$0 sm:$0xff] }
 0xd46   :  { %v6744_v45 = vpop.eup %6743  ;;  %6286 = vmatprep.mubr.msk.f32.mxu1 %vm209_vm1, %v2405_v49 }
 0xd47   :  { %v2382_v22 = vmul.f32 %v6744_v45, %v2364_v21 }
 0xd49   :  { %v2394_v46 = vmul.f32 %v5511_v62, %v2382_v22 }
 0xd4b   :  { %v2406_v23 = vadd.f32 %v5512_v5, %v2394_v46 }
 0xd4d   :  { %6287 = vmatmul.mubr.msk.f32.gmra.mxu1 %vm209_vm1, %v2406_v23 }
 0xdfe   :  { %v6282_v27 = vpop.f32.mrf.mxu1 }
 0xdff   :  { %v2508_v30 = vadd.f32 %v6282_v27, %v5513_v14 }
 0xe00   :  { %v2502_v31 = vpop.f32.mrf.mxu1 }
 0xe01   :  { %v2538_v32 = vmul.f32 0.70710677, %v2508_v30  ;;  %v2503_v35 = vadd.f32 %v5513_v14, %v2502_v31  ;;  %v2532_v0 = vmul.f32 0.5, %v2508_v30 }
 0xe03   :  { %6745 = verf.f32 %v2538_v32  ;;  %v2537_v39 = vmul.f32 0.70710677, %v2503_v35  ;;  %v2531_v63 = vmul.f32 0.5, %v2503_v35 }
 0xe05   :  { %6747 = verf.f32 %v2537_v39  ;;  %v6285_v15 = vpop.f32.mrf.mxu1 }
 0xe06   :  { %v2518_v42 = vadd.f32 %v6285_v15, %v5513_v14 }
 0xe07   :  { %v2512_v17 = vpop.f32.mrf.mxu1 }
 0xe08   :  { %v2540_v38 = vmul.f32 0.70710677, %v2518_v42  ;;  %v2513_v52 = vadd.f32 %v5513_v14, %v2512_v17  ;;  %v2534_v9 = vmul.f32 0.5, %v2518_v42 }
 0xe0a   :  { %6749 = verf.f32 %v2540_v38  ;;  %v2539_v53 = vmul.f32 0.70710677, %v2513_v52  ;;  %v2533_v6 = vmul.f32 0.5, %v2513_v52 }
 0xe0c   :  { %6751 = verf.f32 %v2539_v53 }
 0xe0d   :  { %v6288_v54 = vpop.f32.mrf.mxu1 }
 0xe0e   :  { %v2528_v56 = vadd.f32 %v6288_v54, %v5513_v14 }
 0xe0f   :  { %v2522_v26 = vpop.f32.mrf.mxu1 }
 0xe10   :  { %v6746_v57 = vpop.eup %6745  ;;  %v2542_v33 = vmul.f32 0.70710677, %v2528_v56  ;;  %v2523_v29 = vadd.f32 %v5513_v14, %v2522_v26  ;;  %v2536_v48 = vmul.f32 0.5, %v2528_v56 }
 0xe11   :  { %v2550_v61 = vadd.f32 1.0, %v6746_v57  ;;  %v5534_v57 = vld [vmem:[%s8581_s7 + $0x38] sm:$0xff] }
 0xe12   :  { %v6748_v36 = vpop.eup %6747  ;;  %6753 = verf.f32 %v2542_v33  ;;  %v2541_v62 = vmul.f32 0.70710677, %v2523_v29  ;;  %v2535_v19 = vmul.f32 0.5, %v2523_v29  ;;  %6314 = vmatprep.subr.mxu1 %v5534_v57  ;;  %v5533_v33 = vld [vmem:[%s8581_s7 + $0x30] sm:$0xff]  ;;  %v5532_v29 = vld [vmem:[%s8581_s7 + $0x28] sm:$0xff] }
 0xe13   :  { %v2549_v60 = vadd.f32 1.0, %v6748_v36  ;;  %v2556_v40 = vmul.f32 %v2550_v61, %v2532_v0  ;;  %6315 = vmatpush3.msra.mxu1 %v5534_v57  ;;  %v5531_v36 = vld [vmem:[%s8581_s7 + $0x20] sm:$0xff]  ;;  %s6932_s7 = smov [#allocation2]  }
 0xe14   :  { %6755 = verf.f32 %v2541_v62  ;;  %6316 = vmatprep.subr.mxu1 %v5533_v33 }
 0xe15   :  { %v2555_v2 = vmul.f32 %v2549_v60, %v2531_v63  ;;  %6317 = vmatpush3.msra.mxu1 %v5533_v33 }
 0xe16   :  { %6318 = vmatprep.subr.mxu1 %v5532_v29 }
 0xe17   :  { %v6750_v3 = vpop.eup %6749  ;;  %6305 = vmatprep.mubr.msk.f32.mxu0 %vm2576_vm3, %v2555_v2  ;;  %6319 = vmatpush3.msra.mxu1 %v5532_v29 }
 0xe18   :  { %6306 = vmatmul.mubr.msk.f32.vlgmr.msra.gmra.mxu0 %vm2576_vm3, %v2556_v40  ;;  %v2552_v5 = vadd.f32 1.0, %v6750_v3  ;;  %6320 = vmatprep.subr.mxu1 %v5531_v36 }
 0xe19   :  { %v6752_v4 = vpop.eup %6751  ;;  %6321 = vmatpush3.msra.mxu1 %v5531_v36 }
 0xe1a   :  { %v2551_v8 = vadd.f32 1.0, %v6752_v4  ;;  %v2558_v12 = vmul.f32 %v2552_v5, %v2534_v9 }
 0xe1c   :  { %v2557_v10 = vmul.f32 %v2551_v8, %v2533_v6 }
 0xe1e   :  { %6308 = vmatprep.mubr.msk.f32.mxu0 %vm2576_vm3, %v2557_v10 }
 0xe1f   :  { %v6754_v34 = vpop.eup %6753  ;;  %6309 = vmatmul.mubr.msk.f32.gmra.mxu0 %vm2576_vm3, %v2558_v12 }
 0xe20   :  { %v2554_v55 = vadd.f32 1.0, %v6754_v34 }
 0xe21   :  { %v6756_v37 = vpop.eup %6755 }
 0xe22   :  { %v2553_v43 = vadd.f32 1.0, %v6756_v37  ;;  %v2560_v20 = vmul.f32 %v2554_v55, %v2536_v48 }
 0xe24   :  { %v2559_v44 = vmul.f32 %v2553_v43, %v2535_v19 }
 0xe26   :  { %6311 = vmatprep.mubr.msk.f32.mxu0 %vm2576_vm3, %v2559_v44 }
 0xe27   :  { %6312 = vmatmul.mubr.msk.f32.gmra.mxu0 %vm2576_vm3, %v2560_v20 }
 0xed8   :  { %v6307_v49 = vpop.f32.mrf.mxu0 }
 0xed9   :  { %v2667_v21 = vadd.f32 %v6307_v49, %v5520_v41 }
 0xeda   :  { %v2661_v45 = vpop.f32.mrf.mxu0 }
 0xedb   :  { %v7816_v22 = vadd.f32 %v2667_v21, %v7702_v7  ;;  %v2662_v46 = vadd.f32 %v5520_v41, %v2661_v45 }
 0xedd   :  { %v7819_v23 = vadd.f32 %v2662_v46, %v7705_v28  ;;  %v2703_v47 = vsel %vm209_vm1, %v7816_v22, 0.0  ;;  %v2725_v50 = vmul.f32 %v7816_v22, %v7816_v22 }
 0xede   :  { %2704 = vadd.xlane.f32.xlu0 %v2703_v47 }
 0xedf   :  { %v6310_v11 = vpop.f32.mrf.mxu0  ;;  %v2700_v24 = vsel %vm209_vm1, %v7819_v23, 0.0  ;;  %v2724_v16 = vmul.f32 %v7819_v23, %v7819_v23  ;;  %v2733_v28 = vsel %vm209_vm1, %v2725_v50, 0.0 }
 0xee0   :  { %v2677_v7 = vadd.f32 %v6310_v11, %v5520_v41  ;;  %2701 = vadd.xlane.f32.xlu1 %v2700_v24 }
 0xee1   :  { %v2671_v25 = vpop.f32.mrf.mxu0  ;;  %v2730_v14 = vsel %vm209_vm1, %v2724_v16, 0.0 }
 0xee2   :  { %v7831_v18 = vadd.f32 %v2677_v7, %v7725_v58  ;;  %v2672_v13 = vadd.f32 %v5520_v41, %v2671_v25  ;;  %2734 = vadd.xlane.f32.xlu0 %v2733_v28 }
 0xee4   :  { %v7835_v27 = vadd.f32 %v2672_v13, %v7714_v51  ;;  %2731 = vadd.xlane.f32.xlu1 %v2730_v14  ;;  %v2709_v30 = vsel %vm209_vm1, %v7831_v18, 0.0  ;;  %v2727_v31 = vmul.f32 %v7831_v18, %v7831_v18 }
 0xee6   :  { %2710 = vadd.xlane.f32.xlu0 %v2709_v30  ;;  %v2706_v32 = vsel %vm209_vm1, %v7835_v27, 0.0  ;;  %v2726_v35 = vmul.f32 %v7835_v27, %v7835_v27  ;;  %v2739_v51 = vsel %vm209_vm1, %v2727_v31, 0.0 }
 0xee7   :  { %v6313_v58 = vpop.f32.mrf.mxu0 }
 0xee8   :  { %v2687_v39 = vadd.f32 %v6313_v58, %v5520_v41  ;;  %2707 = vadd.xlane.f32.xlu1 %v2706_v32  ;;  %v2736_v38 = vsel %vm209_vm1, %v2726_v35, 0.0 }
 0xee9   :  { %v2681_v15 = vpop.f32.mrf.mxu0 }
 0xeea   :  { %v7847_v42 = vadd.f32 %v2687_v39, %v7740_v1  ;;  %v2682_v17 = vadd.f32 %v5520_v41, %v2681_v15  ;;  %2740 = vadd.xlane.f32.xlu0 %v2739_v51  ;;  %v5529_v51 = vld [vmem:[%s8622_s28 + $0x1] ss:$0 sm:$0xff]  ;;  %s8626_s28 = smov 72  }
 0xeec   :  { %v7851_v52 = vadd.f32 %v2682_v17, %v7727_v59  ;;  %2737 = vadd.xlane.f32.xlu1 %v2736_v38  ;;  %v2715_v53 = vsel %vm209_vm1, %v7847_v42, 0.0  ;;  %v2729_v54 = vmul.f32 %v7847_v42, %v7847_v42 }
 0xeee   :  { %2716 = vadd.xlane.f32.xlu0 %v2715_v53  ;;  %v2712_v56 = vsel %vm209_vm1, %v7851_v52, 0.0  ;;  %v2728_v1 = vmul.f32 %v7851_v52, %v7851_v52  ;;  %v2745_v26 = vsel %vm209_vm1, %v2729_v54, 0.0 }
 0xef0   :  { %2713 = vadd.xlane.f32.xlu1 %v2712_v56  ;;  %v2742_v59 = vsel %vm209_vm1, %v2728_v1, 0.0  ;;  %v5530_v56 = vld [vmem:[%s8580_s6 + $0x1] ss:$0 sm:$0xff]  ;;  %s8625_s6 = smov 112  }
 0xef2   :  { %2746 = vadd.xlane.f32.xlu0 %v2745_v26 }
 0xef4   :  { %2743 = vadd.xlane.f32.xlu1 %v2742_v59 }
 0xf67   :  { %v2705_v61 = vpop.xlane.xlu0 %2704 }
 0xf68   :  { %v2719_v62 = vmul.f32 0.03125, %v2705_v61 }
 0xf69   :  { %v2702_v63 = vpop.xlane.xlu1 %2701 }
 0xf6a   :  { %v2718_v60 = vmul.f32 0.03125, %v2702_v63  ;;  %v2755_v2 = vmul.f32 %v2719_v62, %v2719_v62  ;;  %v2767_v13 = vsub.f32 %v7816_v22, %v2719_v62 }
 0xf6b   :  { %v2735_v0 = vpop.xlane.xlu0 %2734 }
 0xf6c   :  { %v2749_v40 = vmul.f32 0.03125, %v2735_v0  ;;  %v2754_v4 = vmul.f32 %v2718_v60, %v2718_v60  ;;  %v2766_v58 = vsub.f32 %v7819_v23, %v2718_v60 }
 0xf6d   :  { %v2732_v3 = vpop.xlane.xlu1 %2731 }
 0xf6e   :  { %v2761_v5 = vsub.f32 %v2749_v40, %v2755_v2  ;;  %v2748_v6 = vmul.f32 0.03125, %v2732_v3 }
 0xf6f   :  { %v2711_v8 = vpop.xlane.xlu0 %2710 }
 0xf70   :  { %v2773_v9 = vadd.f32 1e-06, %v2761_v5  ;;  %v2760_v10 = vsub.f32 %v2748_v6, %v2754_v4  ;;  %v2721_v12 = vmul.f32 0.03125, %v2711_v8 }
 0xf71   :  { %v2708_v34 = vpop.xlane.xlu1 %2707 }
 0xf72   :  { %6757 = vrsqrt.f32 %v2773_v9  ;;  %v2772_v37 = vadd.f32 1e-06, %v2760_v10  ;;  %v2720_v55 = vmul.f32 0.03125, %v2708_v34  ;;  %v2757_v43 = vmul.f32 %v2721_v12, %v2721_v12 }
 0xf73   :  { %v2741_v19 = vpop.xlane.xlu0 %2740  ;;  %v2769_v26 = vsub.f32 %v7831_v18, %v2721_v12 }
 0xf74   :  { %6759 = vrsqrt.f32 %v2772_v37  ;;  %v2751_v48 = vmul.f32 0.03125, %v2741_v19  ;;  %v2756_v20 = vmul.f32 %v2720_v55, %v2720_v55  ;;  %v2768_v29 = vsub.f32 %v7835_v27, %v2720_v55  ;;  %v5536_v55 = vld [vmem:[%s8582_s8 + $0x1] ss:$0 sm:$0xff]  ;;  %s8627_s8 = smov 104  }
 0xf75   :  { %v2738_v44 = vpop.xlane.xlu1 %2737 }
 0xf76   :  { %v2763_v41 = vsub.f32 %v2751_v48, %v2757_v43  ;;  %v2750_v49 = vmul.f32 0.03125, %v2738_v44 }
 0xf77   :  { %v2717_v21 = vpop.xlane.xlu0 %2716 }
 0xf78   :  { %v2775_v45 = vadd.f32 1e-06, %v2763_v41  ;;  %v2762_v46 = vsub.f32 %v2750_v49, %v2756_v20  ;;  %v2723_v47 = vmul.f32 0.03125, %v2717_v21 }
 0xf79   :  { %v2714_v50 = vpop.xlane.xlu1 %2713 }
 0xf7a   :  { %6761 = vrsqrt.f32 %v2775_v45  ;;  %v2774_v11 = vadd.f32 1e-06, %v2762_v46  ;;  %v2722_v24 = vmul.f32 0.03125, %v2714_v50  ;;  %v2759_v7 = vmul.f32 %v2723_v47, %v2723_v47 }
 0xf7b   :  { %v2747_v16 = vpop.xlane.xlu0 %2746  ;;  %v2771_v0 = vsub.f32 %v7847_v42, %v2723_v47 }
 0xf7c   :  { %6763 = vrsqrt.f32 %v2774_v11  ;;  %v2753_v25 = vmul.f32 0.03125, %v2747_v16  ;;  %v2758_v14 = vmul.f32 %v2722_v24, %v2722_v24  ;;  %v2770_v4 = vsub.f32 %v7851_v52, %v2722_v24 }
 0xf7d   :  { %v2744_v28 = vpop.xlane.xlu1 %2743 }
 0xf7e   :  { %v2765_v30 = vsub.f32 %v2753_v25, %v2759_v7  ;;  %v2752_v31 = vmul.f32 0.03125, %v2744_v28 }
 0xf7f   :  { %v6758_v32 = vpop.eup %6757 }
 0xf80   :  { %v2785_v35 = vmul.f32 %v6758_v32, %v2767_v13  ;;  %v2777_v39 = vadd.f32 1e-06, %v2765_v30  ;;  %v2764_v15 = vsub.f32 %v2752_v31, %v2758_v14 }
 0xf81   :  { %v6760_v17 = vpop.eup %6759 }
 0xf82   :  { %6765 = vrsqrt.f32 %v2777_v39  ;;  %v2776_v38 = vadd.f32 1e-06, %v2764_v15  ;;  %v2784_v53 = vmul.f32 %v6760_v17, %v2766_v58  ;;  %v2797_v54 = vmul.f32 %v5529_v51, %v2785_v35  ;;  %v7967_v39 = vld [vmem:[%s8623_s2 + $0x8] sm:$0xff]  ;;  %v7973_v17 = vld [vmem:[%s8623_s2] sm:$0xff] }
 0xf84   :  { %6767 = vrsqrt.f32 %v2776_v38  ;;  %v2796_v1 = vmul.f32 %v5529_v51, %v2784_v53  ;;  %v2809_v33 = vadd.f32 %v5530_v56, %v2797_v54 }
 0xf86   :  { %v2808_v59 = vadd.f32 %v5530_v56, %v2796_v1 }
 0xf87   :  { %v6762_v57 = vpop.eup %6761 }
 0xf88   :  { %6322 = vmatprep.mubr.msk.f32.mxu1 %vm209_vm1, %v2808_v59  ;;  %v2787_v36 = vmul.f32 %v6762_v57, %v2769_v26 }
 0xf89   :  { %v6764_v61 = vpop.eup %6763  ;;  %6323 = vmatmul.mubr.msk.f32.vlgmr.msra.gmra.mxu1 %vm209_vm1, %v2809_v33  ;;  %v7987_v33 = vld [vmem:[%s8623_s2 + $0x10] sm:$0xff] }
 0xf8a   :  { %v2786_v62 = vmul.f32 %v6764_v61, %v2768_v29  ;;  %v2799_v63 = vmul.f32 %v5529_v51, %v2787_v36 }
 0xf8c   :  { %v2798_v60 = vmul.f32 %v5529_v51, %v2786_v62  ;;  %v2811_v3 = vadd.f32 %v5530_v56, %v2799_v63  ;;  %v7994_v62 = vld [vmem:[%s8623_s2 + $0x20] sm:$0xff] }
 0xf8e   :  { %v2810_v2 = vadd.f32 %v5530_v56, %v2798_v60  ;;  %v8000_v60 = vld [vmem:[%s8623_s2 + $0x28] sm:$0xff] }
 0xf8f   :  { %v6766_v40 = vpop.eup %6765 }
 0xf90   :  { %6325 = vmatprep.mubr.msk.f32.mxu1 %vm209_vm1, %v2810_v2  ;;  %v2789_v5 = vmul.f32 %v6766_v40, %v2771_v0 }
 0xf91   :  { %v6768_v6 = vpop.eup %6767  ;;  %6326 = vmatmul.mubr.msk.f32.gmra.mxu1 %vm209_vm1, %v2811_v3 }
 0xf92   :  { %v2788_v8 = vmul.f32 %v6768_v6, %v2770_v4  ;;  %v2801_v9 = vmul.f32 %v5529_v51, %v2789_v5 }
 0xf94   :  { %v2800_v10 = vmul.f32 %v5529_v51, %v2788_v8  ;;  %v2813_v34 = vadd.f32 %v5530_v56, %v2801_v9 }
 0xf96   :  { %v2812_v12 = vadd.f32 %v5530_v56, %v2800_v10  ;;  %v7980_v56 = vld [vmem:[%s8623_s2 + $0x18] sm:$0xff] }
 0xf98   :  { %6328 = vmatprep.mubr.msk.f32.mxu1 %vm209_vm1, %v2812_v12 }
 0xf99   :  { %6329 = vmatmul.mubr.msk.f32.gmra.mxu1 %vm209_vm1, %v2813_v34 }
0x1049   :  { %v6324_v37 = vpop.f32.mrf.mxu1 }
0x104a   :  { %v7910_v46 = vadd.f32 %v6324_v37, %v5536_v55 }
0x104b   :  { %v2911_v19 = vpop.f32.mrf.mxu1 }
0x104c   :  { %v7896_v43 = vadd.f32 %v5536_v55, %v2911_v19 }
0x104e   :  { %6343 = vmatprep.mubr.msk.f32.mxu0 %vm471_vm2, %v7896_v43 }
0x1051   :  { %v6327_v48 = vpop.f32.mrf.mxu1 }
0x1052   :  { %v7906_v45 = vadd.f32 %v6327_v48, %v5536_v55 }
0x1053   :  { %v2921_v44 = vpop.f32.mrf.mxu1 }
0x1054   :  { %v7914_v47 = vadd.f32 %v5536_v55, %v2921_v44 }
0x1059   :  { %v6330_v20 = vpop.f32.mrf.mxu1 }
0x105a   :  { %v7900_v41 = vadd.f32 %v6330_v20, %v5536_v55 }
0x105b   :  { %v2931_v49 = vpop.f32.mrf.mxu1 }
0x105c   :  { %v7902_v21 = vadd.f32 %v5536_v55, %v2931_v49  ;;  %2961 = vrot.lane.b32.xlu1 %v7900_v41, %s6919_s5 }
0x105e   :  { %2959 = vrot.lane.b32.xlu0 %v7902_v21, %s6919_s5 }
0x1060   :  { %2957 = vrot.lane.b32.xlu1 %v7906_v45, %s6919_s5 }
0x1062   :  { %2953 = vrot.lane.b32.xlu0 %v7910_v46, %s6919_s5 }
0x1064   :  { %2955 = vrot.lane.b32.xlu1 %v7914_v47, %s6919_s5 }
0x1066   :  { %3152 = vrot.lane.b32.xlu0 %v7914_v47, %s6920_s22 }
0x1068   :  { %2951 = vrot.lane.b32.xlu1 %v7896_v43, %s6919_s5 }
0x106a   :  { %3301 = vrot.lane.b32.xlu0 %v7900_v41, %s6921_s23 }
0x106c   :  { %3158 = vrot.lane.b32.xlu1 %v7900_v41, %s6920_s22 }
0x106e   :  { %3156 = vrot.lane.b32.xlu0 %v7902_v21, %s6920_s22 }
0x1070   :  { %3154 = vrot.lane.b32.xlu1 %v7906_v45, %s6920_s22 }
0x1074   :  { %3150 = vrot.lane.b32.xlu1 %v7910_v46, %s6920_s22 }
0x1078   :  { %3148 = vrot.lane.b32.xlu1 %v7896_v43, %s6920_s22  ;;  %s8628_s22 = smov 48  }
0x107c   :  { %3299 = vrot.lane.b32.xlu1 %v7902_v21, %s6921_s23 }
0x10ce   :  { %v2962_v50 = vpop.permute.xlu1 %2961 }
0x10cf   :  { %6331 = vmatprep.subr.msk.mxu0 %vm471_vm2, %v2962_v50 }
0x10d0   :  { %6332 = vmatpush3.xpose.msk.msra.mxu0 %vm471_vm2, %v2962_v50  ;;  %v2960_v11 = vpop.permute.xlu0 %2959 }
0x10d1   :  { %6333 = vmatprep.subr.msk.mxu0 %vm471_vm2, %v2960_v11 }
0x10d2   :  { %v2958_v24 = vpop.permute.xlu1 %2957 }
0x10d4   :  { %6334 = vmatpush3.xpose.msk.msra.mxu0 %vm471_vm2, %v2960_v11  ;;  %v2954_v16 = vpop.permute.xlu0 %2953 }
0x10d5   :  { %6335 = vmatprep.subr.msk.mxu0 %vm471_vm2, %v2958_v24 }
0x10d6   :  { %v2956_v7 = vpop.permute.xlu1 %2955 }
0x10d8   :  { %6336 = vmatpush3.xpose.msk.msra.mxu0 %vm471_vm2, %v2958_v24  ;;  %v3153_v25 = vpop.permute.xlu0 %3152 }
0x10d9   :  { %6337 = vmatprep.subr.msk.mxu0 %vm471_vm2, %v2956_v7 }
0x10da   :  { %v2952_v28 = vpop.permute.xlu1 %2951 }
0x10dc   :  { %6338 = vmatpush3.xpose.msk.msra.mxu0 %vm471_vm2, %v2956_v7  ;;  %v7946_v13 = vpop.permute.xlu0 %3301 }
0x10dd   :  { %6339 = vmatprep.subr.msk.mxu0 %vm471_vm2, %v2954_v16 }
0x10de   :  { %v3159_v14 = vpop.permute.xlu1 %3158 }
0x10df   :  { %6352 = vmatprep.subr.mxu1 %v3159_v14 }
0x10e0   :  { %6340 = vmatpush3.xpose.msk.msra.mxu0 %vm471_vm2, %v2954_v16  ;;  %6353 = vmatpush3.msra.mxu1 %v3159_v14  ;;  %v3157_v30 = vpop.permute.xlu0 %3156 }
0x10e1   :  { %6341 = vmatprep.subr.msk.mxu0 %vm471_vm2, %v2952_v28  ;;  %6354 = vmatprep.subr.mxu1 %v3157_v30 }
0x10e2   :  { %v3155_v31 = vpop.permute.xlu1 %3154  ;;  %6355 = vmatpush3.msra.mxu1 %v3157_v30 }
0x10e3   :  { %6356 = vmatprep.subr.mxu1 %v3155_v31 }
0x10e4   :  { %6342 = vmatpush3.xpose.msk.msra.mxu0 %vm471_vm2, %v2952_v28  ;;  %6357 = vmatpush3.msra.mxu1 %v3155_v31 }
0x10e5   :  { %6358 = vmatprep.subr.mxu1 %v3153_v25 }
0x10e6   :  { %v3151_v32 = vpop.permute.xlu1 %3150  ;;  %6359 = vmatpush3.msra.mxu1 %v3153_v25 }
0x10e7   :  { %6344 = vmatmul.mubr.msk.f32.vlgmr.msra.gmra.mxu0 %vm471_vm2, %v7910_v46  ;;  %6360 = vmatprep.subr.mxu1 %v3151_v32 }
0x10e8   :  { %6346 = vmatprep.mubr.msk.f32.mxu0 %vm471_vm2, %v7914_v47  ;;  %6361 = vmatpush3.msra.mxu1 %v3151_v32 }
0x10ea   :  { %v3149_v58 = vpop.permute.xlu1 %3148 }
0x10eb   :  { %6347 = vmatmul.mubr.msk.f32.gmra.mxu0 %vm471_vm2, %v7906_v45  ;;  %6362 = vmatprep.subr.mxu1 %v3149_v58 }
0x10ec   :  { %6349 = vmatprep.mubr.msk.f32.mxu0 %vm471_vm2, %v7902_v21  ;;  %6363 = vmatpush3.msra.mxu1 %v3149_v58 }
0x10ed   :  { %6373 = vmatprep.subr.msk.mxu1 %vm471_vm2, %v7946_v13 }
0x10ee   :  { %v8010_v4 = vpop.permute.xlu1 %3299 }
0x10ef   :  { %6350 = vmatmul.mubr.msk.f32.gmra.mxu0 %vm471_vm2, %v7900_v41 }
0x11a7   :  { %v6345_v35 = vpop.f32.mrf.mxu0 }
0x11a8   :  { %v3059_v15 = vadd.f32 %v7967_v39, %v6345_v35 }
0x11a9   :  { %v3053_v51 = vpop.f32.mrf.mxu0 }
0x11aa   :  { %v3054_v38 = vadd.f32 %v7973_v17, %v3053_v51  ;;  %v3085_v53 = vsel %vm87_vm0, %v3059_v15, -inf }
0x11ab   :  { %3086 = vmax.xlane.f32.xlu1 %v3085_v53  ;;  %v6348_v54 = vpop.f32.mrf.mxu0 }
0x11ac   :  { %v3069_v1 = vadd.f32 %v7980_v56, %v6348_v54  ;;  %v3082_v26 = vsel %vm87_vm0, %v3054_v38, -inf }
0x11ad   :  { %v3063_v59 = vpop.f32.mrf.mxu0  ;;  %3083 = vmax.xlane.f32.xlu0 %v3082_v26 }
0x11ae   :  { %v3064_v29 = vadd.f32 %v7987_v33, %v3063_v59  ;;  %v3091_v36 = vsel %vm87_vm0, %v3069_v1, -inf }
0x11af   :  { %v6351_v57 = vpop.f32.mrf.mxu0 }
0x11b0   :  { %v3079_v0 = vadd.f32 %v8000_v60, %v6351_v57  ;;  %v3088_v40 = vsel %vm87_vm0, %v3064_v29, -inf }
0x11b1   :  { %v3073_v61 = vpop.f32.mrf.mxu0  ;;  %3092 = vmax.xlane.f32.xlu0 %v3091_v36 }
0x11b2   :  { %v3074_v63 = vadd.f32 %v7994_v62, %v3073_v61  ;;  %v3097_v3 = vsel %vm87_vm0, %v3079_v0, -inf }
0x11b4   :  { %v3094_v2 = vsel %vm87_vm0, %v3074_v63, -inf }
0x11b5   :  { %3095 = vmax.xlane.f32.xlu1 %v3094_v2  ;;  %3089 = vmax.xlane.f32.xlu0 %v3088_v40 }
0x11b9   :  { %3098 = vmax.xlane.f32.xlu0 %v3097_v3 }
0x11c6   :  { %3295 = vrot.lane.b32.xlu1 %v7914_v47, %s6921_s23 }
0x11cf   :  { %3297 = vrot.lane.b32.xlu0 %v7906_v45, %s6921_s23 }
0x1234   :  { %v3087_v5 = vpop.xlane.xlu1 %3086 }
0x1235   :  { %v3101_v6 = vsub.f32 %v3059_v15, %v3087_v5 }
0x1236   :  { %v3084_v8 = vpop.xlane.xlu0 %3083 }
0x1237   :  { %v3108_v9 = vmul.f32 1.442695, %v3101_v6  ;;  %v3100_v10 = vsub.f32 %v3054_v38, %v3084_v8 }
0x1239   :  { %6769 = vpow2.f32 %v3108_v9  ;;  %v3106_v12 = vmul.f32 1.442695, %v3100_v10 }
0x123a   :  { %v3093_v48 = vpop.xlane.xlu0 %3092 }
0x123b   :  { %6771 = vpow2.f32 %v3106_v12  ;;  %v3103_v20 = vsub.f32 %v3069_v1, %v3093_v48 }
0x123d   :  { %v3112_v24 = vmul.f32 1.442695, %v3103_v20 }
0x123e   :  { %v3090_v44 = vpop.xlane.xlu0 %3089  ;;  %v3096_v11 = vpop.xlane.xlu1 %3095 }
0x123f   :  { %v3102_v50 = vsub.f32 %v3064_v29, %v3090_v44  ;;  %v3104_v7 = vsub.f32 %v3074_v63, %v3096_v11  ;;  %6773 = vpow2.f32 %v3112_v24  ;;  %v5543_v44 = vld [vmem:[%s8583_s9 + $0x20] sm:$0xff] }
0x1241   :  { %v3110_v25 = vmul.f32 1.442695, %v3102_v50  ;;  %v3114_v14 = vmul.f32 1.442695, %v3104_v7 }
0x1242   :  { %v3099_v49 = vpop.xlane.xlu0 %3098  ;;  %v3296_v54 = vpop.permute.xlu1 %3295 }
0x1243   :  { %v3105_v16 = vsub.f32 %v3079_v0, %v3099_v49  ;;  %6775 = vpow2.f32 %v3110_v25 }
0x1245   :  { %v3116_v28 = vmul.f32 1.442695, %v3105_v16 }
0x1246   :  { %v6770_v34 = vpop.eup %6769  ;;  %v3298_v53 = vpop.permute.xlu0 %3297 }
0x1247   :  { %v3121_v37 = vsel %vm87_vm0, %v6770_v34, 0.0  ;;  %6777 = vpow2.f32 %v3116_v28 }
0x1248   :  { %v6772_v55 = vpop.eup %6771  ;;  %3122 = vadd.xlane.f32.xlu0 %v3121_v37  ;;  %6779 = vpow2.f32 %v3114_v14 }
0x1249   :  { %v3118_v19 = vsel %vm87_vm0, %v6772_v55, 0.0 }
0x124a   :  { %3119 = vadd.xlane.f32.xlu1 %v3118_v19 }
0x124c   :  { %v6774_v30 = vpop.eup %6773 }
0x124d   :  { %v3127_v32 = vsel %vm87_vm0, %v6774_v30, 0.0 }
0x1250   :  { %v6776_v31 = vpop.eup %6775 }
0x1251   :  { %v3124_v35 = vsel %vm87_vm0, %v6776_v31, 0.0 }
0x1254   :  { %v6778_v58 = vpop.eup %6777 }
0x1255   :  { %v6780_v15 = vpop.eup %6779  ;;  %v3133_v51 = vsel %vm87_vm0, %v6778_v58, 0.0 }
0x1256   :  { %v3130_v38 = vsel %vm87_vm0, %v6780_v15, 0.0 }
0x125b   :  { %3291 = vrot.lane.b32.xlu1 %v7896_v43, %s6921_s23 }
0x125e   :  { %3293 = vrot.lane.b32.xlu0 %v7910_v46, %s6921_s23 }
0x127d   :  { %3128 = vadd.xlane.f32.xlu0 %v3127_v32 }
0x127f   :  { %3125 = vadd.xlane.f32.xlu1 %v3124_v35 }
0x1281   :  { %3134 = vadd.xlane.f32.xlu0 %v3133_v51 }
0x1283   :  { %3131 = vadd.xlane.f32.xlu1 %v3130_v38 }
0x1294   :  { %3281 = vrot.lane.b32.xlu1 %v7910_v46, %s6922_s25 }
0x1297   :  { %3279 = vrot.lane.b32.xlu0 %v7896_v43, %s6922_s25 }
0x1298   :  { %3285 = vrot.lane.b32.xlu1 %v7906_v45, %s6922_s25 }
0x129b   :  { %3283 = vrot.lane.b32.xlu0 %v7914_v47, %s6922_s25 }
0x129c   :  { %3289 = vrot.lane.b32.xlu1 %v7900_v41, %s6922_s25 }
0x129f   :  { %3287 = vrot.lane.b32.xlu0 %v7902_v21, %s6922_s25  ;;  %s8624_s25 = smov 80  }
0x12d1   :  { %v3123_v1 = vpop.xlane.xlu0 %3122 }
0x12d2   :  { %6781 = vrcp.f32 %v3123_v1 }
0x12d3   :  { %v3120_v26 = vpop.xlane.xlu1 %3119 }
0x12d4   :  { %6783 = vrcp.f32 %v3120_v26 }
0x12d5   :  { %v3294_v61 = vpop.permute.xlu0 %3293 }
0x12d7   :  { %v3292_v63 = vpop.permute.xlu1 %3291 }
0x12df   :  { %v6782_v59 = vpop.eup %6781 }
0x12e0   :  { %v3143_v36 = vmul.f32 %v6782_v59, %v6770_v34 }
0x12e1   :  { %v6784_v57 = vpop.eup %6783 }
0x12e2   :  { %v3142_v29 = vmul.f32 %v6784_v57, %v6772_v55 }
0x12e4   :  { %6364 = vmatprep.mubr.msk.f32.mxu1 %vm87_vm0, %v3142_v29 }
0x12e5   :  { %6365 = vmatmul.mubr.msk.f32.vlgmr.msra.gmra.mxu1 %vm87_vm0, %v3143_v36 }
0x12e6   :  { %6374 = vmatpush3.xpose.msk.msra.mxu1 %vm471_vm2, %v7946_v13 }
0x12e7   :  { %6375 = vmatprep.subr.msk.mxu1 %vm471_vm2, %v8010_v4 }
0x12ea   :  { %6376 = vmatpush3.xpose.msk.msra.mxu1 %vm471_vm2, %v8010_v4 }
0x12eb   :  { %6377 = vmatprep.subr.msk.mxu1 %vm471_vm2, %v3298_v53 }
0x12ee   :  { %6378 = vmatpush3.xpose.msk.msra.mxu1 %vm471_vm2, %v3298_v53 }
0x12ef   :  { %6379 = vmatprep.subr.msk.mxu1 %vm471_vm2, %v3296_v54 }
0x12f2   :  { %6380 = vmatpush3.xpose.msk.msra.mxu1 %vm471_vm2, %v3296_v54 }
0x12f3   :  { %6381 = vmatprep.subr.msk.mxu1 %vm471_vm2, %v3294_v61 }
0x12f6   :  { %6382 = vmatpush3.xpose.msk.msra.mxu1 %vm471_vm2, %v3294_v61 }
0x12f7   :  { %6383 = vmatprep.subr.msk.mxu1 %vm471_vm2, %v3292_v63 }
0x12fa   :  { %6384 = vmatpush3.xpose.msk.msra.mxu1 %vm471_vm2, %v3292_v63 }
0x12fb   :  { %6426 = vmatprep.subr.mxu1 %v5543_v44 }
0x1306   :  { %v3129_v13 = vpop.xlane.xlu0 %3128 }
0x1307   :  { %6785 = vrcp.f32 %v3129_v13 }
0x1308   :  { %v3126_v0 = vpop.xlane.xlu1 %3125 }
0x1309   :  { %6787 = vrcp.f32 %v3126_v0 }
0x130a   :  { %v3135_v2 = vpop.xlane.xlu0 %3134 }
0x130b   :  { %6789 = vrcp.f32 %v3135_v2 }
0x130c   :  { %v3132_v40 = vpop.xlane.xlu1 %3131 }
0x130d   :  { %6791 = vrcp.f32 %v3132_v40 }
0x130e   :  { %v3280_v10 = vpop.permute.xlu0 %3279 }
0x1310   :  { %v3282_v37 = vpop.permute.xlu1 %3281 }
0x1312   :  { %v3284_v55 = vpop.permute.xlu0 %3283 }
0x1314   :  { %v6786_v3 = vpop.eup %6785  ;;  %v3286_v19 = vpop.permute.xlu1 %3285 }
0x1315   :  { %v3145_v6 = vmul.f32 %v6786_v3, %v6774_v30 }
0x1316   :  { %v6788_v4 = vpop.eup %6787  ;;  %v3288_v48 = vpop.permute.xlu0 %3287 }
0x1317   :  { %v3144_v5 = vmul.f32 %v6788_v4, %v6776_v31 }
0x1318   :  { %v6790_v8 = vpop.eup %6789  ;;  %v3290_v20 = vpop.permute.xlu1 %3289 }
0x1319   :  { %6367 = vmatprep.mubr.msk.f32.mxu1 %vm87_vm0, %v3144_v5  ;;  %v3147_v34 = vmul.f32 %v6790_v8, %v6778_v58 }
0x131a   :  { %v6792_v9 = vpop.eup %6791  ;;  %6368 = vmatmul.mubr.msk.f32.gmra.mxu1 %vm87_vm0, %v3145_v6 }
0x131b   :  { %v3146_v12 = vmul.f32 %v6792_v9, %v6780_v15 }
0x131d   :  { %6370 = vmatprep.mubr.msk.f32.mxu1 %vm87_vm0, %v3146_v12 }
0x131e   :  { %6371 = vmatmul.mubr.msk.f32.gmra.mxu1 %vm87_vm0, %v3147_v34 }
0x131f   :  { %6385 = vmatprep.mubr.msk.f32.mxu1 %vm471_vm2, %v3280_v10 }
0x1322   :  { %6386 = vmatmul.mubr.msk.f32.vlgmr.msra.gmra.mxu1 %vm471_vm2, %v3282_v37 }
0x1323   :  { %6388 = vmatprep.mubr.msk.f32.mxu1 %vm471_vm2, %v3284_v55  ;;  %6427 = vmatpush3.msra.mxu1 %v5543_v44 }
0x1326   :  { %6389 = vmatmul.mubr.msk.f32.gmra.mxu1 %vm471_vm2, %v3286_v19 }
0x1327   :  { %6391 = vmatprep.mubr.msk.f32.mxu1 %vm471_vm2, %v3288_v48 }
0x132a   :  { %6392 = vmatmul.mubr.msk.f32.gmra.mxu1 %vm471_vm2, %v3290_v20 }
0x13a5   :  { %v6366_v49 = vpop.f32.mrf.mxu1 }
0x13a7   :  { %v3250_v50 = vpop.f32.mrf.mxu1 }
0x13a8   :  { %6428 = vmatprep.mubr.msk.f32.mxu1 %vm471_vm2, %v3250_v50 }
0x13a9   :  { %6429 = vmatmul.mubr.msk.f32.vlgmr.msra.gmra.mxu1 %vm471_vm2, %v6366_v49 }
0x13da   :  { %v6369_v11 = vpop.f32.mrf.mxu1 }
0x13dc   :  { %v3260_v24 = vpop.f32.mrf.mxu1 }
0x13dd   :  { %6431 = vmatprep.mubr.msk.f32.mxu1 %vm471_vm2, %v3260_v24 }
0x13de   :  { %v6372_v16 = vpop.f32.mrf.mxu1  ;;  %6432 = vmatmul.mubr.msk.f32.gmra.mxu1 %vm471_vm2, %v6369_v11 }
0x13e0   :  { %v3270_v7 = vpop.f32.mrf.mxu1 }
0x13e1   :  { %6434 = vmatprep.mubr.msk.f32.mxu1 %vm471_vm2, %v3270_v7 }
0x13e2   :  { %v6387_v25 = vpop.f32.mrf.mxu1  ;;  %6435 = vmatmul.mubr.msk.f32.gmra.mxu1 %vm471_vm2, %v6372_v16 }
0x13e3   :  { %v3399_v28 = vadd.f32 %v7967_v39, %v6387_v25 }
0x13e4   :  { %v3393_v14 = vpop.f32.mrf.mxu1 }
0x13e5   :  { %v3394_v30 = vadd.f32 %v7973_v17, %v3393_v14  ;;  %v3425_v31 = vsel %vm87_vm0, %v3399_v28, -inf }
0x13e6   :  { %3426 = vmax.xlane.f32.xlu1 %v3425_v31  ;;  %v6390_v32 = vpop.f32.mrf.mxu1 }
0x13e7   :  { %v3409_v58 = vadd.f32 %v7980_v56, %v6390_v32  ;;  %v3422_v35 = vsel %vm87_vm0, %v3394_v30, -inf }
0x13e8   :  { %3423 = vmax.xlane.f32.xlu0 %v3422_v35  ;;  %v3403_v15 = vpop.f32.mrf.mxu1 }
0x13e9   :  { %v3404_v38 = vadd.f32 %v7987_v33, %v3403_v15  ;;  %v3431_v53 = vsel %vm87_vm0, %v3409_v58, -inf }
0x13ea   :  { %v6393_v51 = vpop.f32.mrf.mxu1 }
0x13eb   :  { %v3419_v26 = vadd.f32 %v8000_v60, %v6393_v51  ;;  %v3428_v59 = vsel %vm87_vm0, %v3404_v38, -inf }
0x13ec   :  { %3432 = vmax.xlane.f32.xlu0 %v3431_v53  ;;  %v3413_v54 = vpop.f32.mrf.mxu1 }
0x13ed   :  { %v3414_v1 = vadd.f32 %v7994_v62, %v3413_v54  ;;  %v3437_v29 = vsel %vm87_vm0, %v3419_v26, -inf }
0x13ef   :  { %v3434_v57 = vsel %vm87_vm0, %v3414_v1, -inf }
0x13f0   :  { %3429 = vmax.xlane.f32.xlu0 %v3428_v59  ;;  %3435 = vmax.xlane.f32.xlu1 %v3434_v57 }
0x13f4   :  { %3438 = vmax.xlane.f32.xlu0 %v3437_v29 }
0x146f   :  { %v3427_v36 = vpop.xlane.xlu1 %3426 }
0x1470   :  { %v3441_v61 = vsub.f32 %v3399_v28, %v3427_v36  ;;  %v5544_v36 = vld [vmem:[%s8583_s9 + $0x28] sm:$0xff] }
0x1471   :  { %v3424_v63 = vpop.xlane.xlu0 %3423 }
0x1472   :  { %v3448_v13 = vmul.f32 1.442695, %v3441_v61  ;;  %v3440_v0 = vsub.f32 %v3394_v30, %v3424_v63 }
0x1474   :  { %6793 = vpow2.f32 %v3448_v13  ;;  %v3446_v2 = vmul.f32 1.442695, %v3440_v0 }
0x1475   :  { %v3433_v40 = vpop.xlane.xlu0 %3432 }
0x1476   :  { %6795 = vpow2.f32 %v3446_v2  ;;  %v3443_v3 = vsub.f32 %v3409_v58, %v3433_v40 }
0x1478   :  { %v3452_v4 = vmul.f32 1.442695, %v3443_v3 }
0x1479   :  { %v3430_v5 = vpop.xlane.xlu0 %3429  ;;  %v3436_v49 = vpop.xlane.xlu1 %3435 }
0x147a   :  { %6797 = vpow2.f32 %v3452_v4  ;;  %v3442_v6 = vsub.f32 %v3404_v38, %v3430_v5  ;;  %v3444_v11 = vsub.f32 %v3414_v1, %v3436_v49 }
0x147c   :  { %v3450_v8 = vmul.f32 1.442695, %v3442_v6  ;;  %v3454_v24 = vmul.f32 1.442695, %v3444_v11 }
0x147d   :  { %v3439_v44 = vpop.xlane.xlu0 %3438 }
0x147e   :  { %6799 = vpow2.f32 %v3450_v8  ;;  %v3445_v20 = vsub.f32 %v3419_v26, %v3439_v44 }
0x1480   :  { %v3456_v50 = vmul.f32 1.442695, %v3445_v20 }
0x1481   :  { %v8081_v9 = vpop.eup %6793 }
0x1482   :  { %v3461_v10 = vsel %vm87_vm0, %v8081_v9, 0.0  ;;  %6801 = vpow2.f32 %v3456_v50 }
0x1483   :  { %v8085_v12 = vpop.eup %6795  ;;  %3462 = vadd.xlane.f32.xlu0 %v3461_v10  ;;  %6803 = vpow2.f32 %v3454_v24 }
0x1484   :  { %v3458_v34 = vsel %vm87_vm0, %v8085_v12, 0.0 }
0x1485   :  { %3459 = vadd.xlane.f32.xlu1 %v3458_v34 }
0x1487   :  { %v8089_v37 = vpop.eup %6797 }
0x1488   :  { %v3467_v55 = vsel %vm87_vm0, %v8089_v37, 0.0 }
0x1489   :  { %3468 = vadd.xlane.f32.xlu0 %v3467_v55 }
0x148b   :  { %v8093_v19 = vpop.eup %6799 }
0x148c   :  { %v3464_v48 = vsel %vm87_vm0, %v8093_v19, 0.0 }
0x148d   :  { %3465 = vadd.xlane.f32.xlu1 %v3464_v48 }
0x148f   :  { %v8107_v16 = vpop.eup %6801 }
0x1490   :  { %v3473_v7 = vsel %vm87_vm0, %v8107_v16, 0.0  ;;  %v8111_v25 = vpop.eup %6803 }
0x1491   :  { %v3470_v28 = vsel %vm87_vm0, %v8111_v25, 0.0 }
0x149e   :  { %3498 = vrot.lane.b32.xlu1 %v7900_v41, %s6923_s3 }
0x149f   :  { %3496 = vrot.lane.b32.xlu0 %v7902_v21, %s6923_s3 }
0x14a3   :  { %3494 = vrot.lane.b32.xlu0 %v7906_v45, %s6923_s3 }
0x14a7   :  { %3492 = vrot.lane.b32.xlu0 %v7914_v47, %s6923_s3 }
0x14ab   :  { %3490 = vrot.lane.b32.xlu0 %v7910_v46, %s6923_s3 }
0x14c2   :  { %3474 = vadd.xlane.f32.xlu1 %v3473_v7 }
0x14ca   :  { %3471 = vadd.xlane.f32.xlu0 %v3470_v28 }
0x14d3   :  { %3861 = vrot.lane.b32.xlu1 %v7914_v47, %s8624_s25 }
0x14d7   :  { %3849 = vrot.lane.b32.xlu1 %v7914_v47, %s8625_s6 }
0x14db   :  { %3853 = vrot.lane.b32.xlu1 %v7902_v21, %s8625_s6 }
0x14df   :  { %4326 = vrot.lane.b32.xlu1 %v7900_v41, %s8626_s28 }
0x14e0   :  { %3488 = vrot.lane.b32.xlu0 %v7896_v43, %s6923_s3 }
0x14e3   :  { %4322 = vrot.lane.b32.xlu1 %v7906_v45, %s8626_s28 }
0x14e4   :  { %3867 = vrot.lane.b32.xlu0 %v7900_v41, %s8624_s25 }
0x14e7   :  { %4318 = vrot.lane.b32.xlu1 %v7910_v46, %s8626_s28 }
0x14e8   :  { %3865 = vrot.lane.b32.xlu0 %v7902_v21, %s8624_s25 }
0x14eb   :  { %4304 = vrot.lane.b32.xlu1 %v7896_v43, %s8627_s8 }
0x14ec   :  { %3863 = vrot.lane.b32.xlu0 %v7906_v45, %s8624_s25 }
0x14ef   :  { %4308 = vrot.lane.b32.xlu1 %v7914_v47, %s8627_s8 }
0x14f0   :  { %3859 = vrot.lane.b32.xlu0 %v7910_v46, %s8624_s25 }
0x14f3   :  { %4312 = vrot.lane.b32.xlu1 %v7902_v21, %s8627_s8 }
0x14f4   :  { %3857 = vrot.lane.b32.xlu0 %v7896_v43, %s8624_s25 }
0x14f8   :  { %3845 = vrot.lane.b32.xlu0 %v7896_v43, %s8625_s6 }
0x14fc   :  { %3847 = vrot.lane.b32.xlu0 %v7910_v46, %s8625_s6 }
0x1500   :  { %3851 = vrot.lane.b32.xlu0 %v7906_v45, %s8625_s6 }
0x1504   :  { %3855 = vrot.lane.b32.xlu0 %v7900_v41, %s8625_s6 }
0x1508   :  { %4324 = vrot.lane.b32.xlu0 %v7902_v21, %s8626_s28 }
0x150c   :  { %4320 = vrot.lane.b32.xlu0 %v7914_v47, %s8626_s28  ;;  %v3463_v14 = vpop.xlane.xlu0 %3462 }
0x150e   :  { %v3460_v30 = vpop.xlane.xlu1 %3459 }
0x150f   :  { %6805 = vrcp.f32 %v3460_v30 }
0x1510   :  { %4316 = vrot.lane.b32.xlu0 %v7896_v43, %s8626_s28  ;;  %6807 = vrcp.f32 %v3463_v14 }
0x1512   :  { %v3469_v31 = vpop.xlane.xlu0 %3468 }
0x1514   :  { %4306 = vrot.lane.b32.xlu0 %v7910_v46, %s8627_s8 }
0x1516   :  { %v3497_v32 = vpop.permute.xlu0 %3496  ;;  %v3466_v58 = vpop.xlane.xlu1 %3465 }
0x1517   :  { %6809 = vrcp.f32 %v3466_v58 }
0x1518   :  { %4310 = vrot.lane.b32.xlu0 %v7906_v45, %s8627_s8  ;;  %6811 = vrcp.f32 %v3469_v31 }
0x151a   :  { %v3495_v35 = vpop.permute.xlu0 %3494  ;;  %v3499_v15 = vpop.permute.xlu1 %3498 }
0x151b   :  { %6394 = vmatprep.subr.mxu0 %v3499_v15 }
0x151c   :  { %v6806_v51 = vpop.eup %6805  ;;  %4314 = vrot.lane.b32.xlu0 %v7900_v41, %s8627_s8  ;;  %6395 = vmatpush3.msra.mxu0 %v3499_v15 }
0x151d   :  { %v3482_v38 = vmul.f32 %v6806_v51, %v8085_v12  ;;  %6396 = vmatprep.subr.mxu0 %v3497_v32  ;;  %v6808_v59 = vpop.eup %6807 }
0x151e   :  { %v3493_v53 = vpop.permute.xlu0 %3492  ;;  %6397 = vmatpush3.msra.mxu0 %v3497_v32  ;;  %v3483_v61 = vmul.f32 %v6808_v59, %v8081_v9 }
0x151f   :  { %6406 = vmatprep.mubr.msk.f32.mxu0 %vm87_vm0, %v3482_v38  ;;  %6398 = vmatprep.subr.mxu0 %v3495_v35 }
0x1520   :  { %6399 = vmatpush3.msra.mxu0 %v3495_v35 }
0x1521   :  { %6400 = vmatprep.subr.mxu0 %v3493_v53 }
0x1522   :  { %v3491_v54 = vpop.permute.xlu0 %3490  ;;  %6401 = vmatpush3.msra.mxu0 %v3493_v53 }
0x1523   :  { %6402 = vmatprep.subr.mxu0 %v3491_v54 }
0x1524   :  { %6403 = vmatpush3.msra.mxu0 %v3491_v54  ;;  %v6810_v57 = vpop.eup %6809 }
0x1525   :  { %v6812_v63 = vpop.eup %6811  ;;  %v3484_v13 = vmul.f32 %v6810_v57, %v8093_v19 }
0x1526   :  { %v3485_v2 = vmul.f32 %v6812_v63, %v8089_v37 }
0x154b   :  { %v3475_v1 = vpop.xlane.xlu1 %3474 }
0x154c   :  { %6813 = vrcp.f32 %v3475_v1 }
0x154f   :  { %v3862_v12 = vpop.permute.xlu1 %3861 }
0x1553   :  { %v3472_v26 = vpop.xlane.xlu0 %3471  ;;  %v3850_v48 = vpop.permute.xlu1 %3849 }
0x1554   :  { %6815 = vrcp.f32 %v3472_v26 }
0x1557   :  { %v3489_v29 = vpop.permute.xlu0 %3488  ;;  %v3854_v50 = vpop.permute.xlu1 %3853 }
0x1558   :  { %6404 = vmatprep.subr.mxu0 %v3489_v29 }
0x1559   :  { %6405 = vmatpush3.msra.mxu0 %v3489_v29  ;;  %v6814_v40 = vpop.eup %6813 }
0x155a   :  { %6407 = vmatmul.mubr.msk.f32.vlgmr.msra.gmra.mxu0 %vm87_vm0, %v3483_v61  ;;  %6415 = vmatprep.subr.mxu0 %v5544_v36  ;;  %v3487_v5 = vmul.f32 %v6814_v40, %v8107_v16 }
0x155b   :  { %6409 = vmatprep.mubr.msk.f32.mxu0 %vm87_vm0, %v3484_v13  ;;  %6416 = vmatpush3.msra.mxu0 %v5544_v36  ;;  %v3868_v0 = vpop.permute.xlu0 %3867  ;;  %v4327_v16 = vpop.permute.xlu1 %4326 }
0x155c   :  { %6437 = vmatprep.subr.msk.mxu0 %vm471_vm2, %v3868_v0 }
0x155e   :  { %6410 = vmatmul.mubr.msk.f32.gmra.mxu0 %vm87_vm0, %v3485_v2 }
0x155f   :  { %v3866_v6 = vpop.permute.xlu0 %3865 }
0x1561   :  { %v6816_v3 = vpop.eup %6815 }
0x1562   :  { %v3486_v4 = vmul.f32 %v6816_v3, %v8111_v25  ;;  %v4323_v25 = vpop.permute.xlu1 %4322 }
0x1563   :  { %v3864_v8 = vpop.permute.xlu0 %3863 }
0x1564   :  { %6412 = vmatprep.mubr.msk.f32.mxu0 %vm87_vm0, %v3486_v4 }
0x1565   :  { %6413 = vmatmul.mubr.msk.f32.gmra.mxu0 %vm87_vm0, %v3487_v5 }
0x1566   :  { %v4319_v14 = vpop.permute.xlu1 %4318 }
0x1567   :  { %v3860_v9 = vpop.permute.xlu0 %3859 }
0x156a   :  { %v4305_v31 = vpop.permute.xlu1 %4304 }
0x156b   :  { %v3858_v10 = vpop.permute.xlu0 %3857 }
0x156e   :  { %v4309_v35 = vpop.permute.xlu1 %4308 }
0x156f   :  { %v3846_v19 = vpop.permute.xlu0 %3845 }
0x1572   :  { %v4313_v51 = vpop.permute.xlu1 %4312 }
0x1573   :  { %v3848_v20 = vpop.permute.xlu0 %3847 }
0x1577   :  { %v3852_v24 = vpop.permute.xlu0 %3851 }
0x157b   :  { %v3856_v7 = vpop.permute.xlu0 %3855 }
0x157f   :  { %v4325_v28 = vpop.permute.xlu0 %4324 }
0x1583   :  { %v4321_v30 = vpop.permute.xlu0 %4320 }
0x1587   :  { %v4317_v32 = vpop.permute.xlu0 %4316 }
0x158b   :  { %v4307_v58 = vpop.permute.xlu0 %4306 }
0x158f   :  { %v4311_v15 = vpop.permute.xlu0 %4310 }
0x1593   :  { %v4315_v38 = vpop.permute.xlu0 %4314 }
0x161a   :  { %v6408_v34 = vpop.f32.mrf.mxu0 }
0x161c   :  { %v3590_v55 = vpop.f32.mrf.mxu0 }
0x161d   :  { %6417 = vmatprep.mubr.msk.f32.mxu0 %vm471_vm2, %v3590_v55 }
0x161e   :  { %v6411_v37 = vpop.f32.mrf.mxu0  ;;  %6418 = vmatmul.mubr.msk.f32.vlgmr.msra.gmra.mxu0 %vm471_vm2, %v6408_v34 }
0x161f   :  { %6438 = vmatpush3.xpose.msk.msra.mxu0 %vm471_vm2, %v3868_v0 }
0x1620   :  { %6439 = vmatprep.subr.msk.mxu0 %vm471_vm2, %v3866_v6  ;;  %v3600_v44 = vpop.f32.mrf.mxu0 }
0x1621   :  { %6420 = vmatprep.mubr.msk.f32.mxu0 %vm471_vm2, %v3600_v44 }
0x1622   :  { %6421 = vmatmul.mubr.msk.f32.gmra.mxu0 %vm471_vm2, %v6411_v37 }
0x1623   :  { %6440 = vmatpush3.xpose.msk.msra.mxu0 %vm471_vm2, %v3866_v6 }
0x1624   :  { %6441 = vmatprep.subr.msk.mxu0 %vm471_vm2, %v3864_v8 }
0x1625   :  { %v6414_v49 = vpop.f32.mrf.mxu0 }
0x1627   :  { %6442 = vmatpush3.xpose.msk.msra.mxu0 %vm471_vm2, %v3864_v8  ;;  %v3610_v11 = vpop.f32.mrf.mxu0 }
0x1628   :  { %6443 = vmatprep.subr.msk.mxu0 %vm471_vm2, %v3862_v12  ;;  %6423 = vmatprep.mubr.msk.f32.mxu0 %vm471_vm2, %v3610_v11 }
0x1629   :  { %6424 = vmatmul.mubr.msk.f32.gmra.mxu0 %vm471_vm2, %v6414_v49 }
0x162a   :  { %6449 = vmatprep.mubr.msk.f32.mxu0 %vm471_vm2, %v3846_v19 }
0x162b   :  { %6444 = vmatpush3.xpose.msk.msra.mxu0 %vm471_vm2, %v3862_v12 }
0x162c   :  { %6445 = vmatprep.subr.msk.mxu0 %vm471_vm2, %v3860_v9 }
0x162f   :  { %6446 = vmatpush3.xpose.msk.msra.mxu0 %vm471_vm2, %v3860_v9 }
0x1630   :  { %6447 = vmatprep.subr.msk.mxu0 %vm471_vm2, %v3858_v10 }
0x1633   :  { %6448 = vmatpush3.xpose.msk.msra.mxu0 %vm471_vm2, %v3858_v10 }
0x1634   :  { %6490 = vmatprep.subr.msk.mxu0 %vm471_vm2, %v4327_v16 }
0x1636   :  { %6450 = vmatmul.mubr.msk.f32.vlgmr.msra.gmra.mxu0 %vm471_vm2, %v3848_v20 }
0x1637   :  { %6452 = vmatprep.mubr.msk.f32.mxu0 %vm471_vm2, %v3850_v48  ;;  %6491 = vmatpush3.xpose.msk.msra.mxu0 %vm471_vm2, %v4327_v16 }
0x1638   :  { %6492 = vmatprep.subr.msk.mxu0 %vm471_vm2, %v4325_v28 }
0x163a   :  { %6453 = vmatmul.mubr.msk.f32.gmra.mxu0 %vm471_vm2, %v3852_v24 }
0x163b   :  { %6455 = vmatprep.mubr.msk.f32.mxu0 %vm471_vm2, %v3854_v50  ;;  %6493 = vmatpush3.xpose.msk.msra.mxu0 %vm471_vm2, %v4325_v28 }
0x163c   :  { %6494 = vmatprep.subr.msk.mxu0 %vm471_vm2, %v4323_v25 }
0x163e   :  { %6456 = vmatmul.mubr.msk.f32.gmra.mxu0 %vm471_vm2, %v3856_v7 }
0x163f   :  { %6495 = vmatpush3.xpose.msk.msra.mxu0 %vm471_vm2, %v4323_v25  ;;  %6502 = vmatprep.mubr.msk.f32.mxu0 %vm471_vm2, %v4305_v31 }
0x1640   :  { %6496 = vmatprep.subr.msk.mxu0 %vm471_vm2, %v4321_v30 }
0x1643   :  { %6497 = vmatpush3.xpose.msk.msra.mxu0 %vm471_vm2, %v4321_v30 }
0x1644   :  { %6498 = vmatprep.subr.msk.mxu0 %vm471_vm2, %v4319_v14 }
0x1647   :  { %6499 = vmatpush3.xpose.msk.msra.mxu0 %vm471_vm2, %v4319_v14 }
0x1648   :  { %6500 = vmatprep.subr.msk.mxu0 %vm471_vm2, %v4317_v32 }
0x164b   :  { %6501 = vmatpush3.xpose.msk.msra.mxu0 %vm471_vm2, %v4317_v32 }
0x164e   :  { %6503 = vmatmul.mubr.msk.f32.vlgmr.msra.gmra.mxu0 %vm471_vm2, %v4307_v58 }
0x164f   :  { %6505 = vmatprep.mubr.msk.f32.mxu0 %vm471_vm2, %v4309_v35 }
0x1652   :  { %6506 = vmatmul.mubr.msk.f32.gmra.mxu0 %vm471_vm2, %v4311_v15 }
0x1653   :  { %6508 = vmatprep.mubr.msk.f32.mxu0 %vm471_vm2, %v4313_v51 }
0x1656   :  { %6509 = vmatmul.mubr.msk.f32.gmra.mxu0 %vm471_vm2, %v4315_v38 }
0x16de   :  { %v8222_v53 = vpop.f32.mrf.mxu0 }
0x16e0   :  { %v8224_v54 = vpop.f32.mrf.mxu0 }
0x16e2   :  { %v8226_v1 = vpop.f32.mrf.mxu0 }
0x16e4   :  { %v8228_v26 = vpop.f32.mrf.mxu0 }
0x16e9   :  { %v8230_v59 = vpop.f32.mrf.mxu0 }
0x16eb   :  { %v8232_v57 = vpop.f32.mrf.mxu0 }
0x16f6   :  { %v6451_v29 = vpop.f32.mrf.mxu0 }
0x16f7   :  { %v3965_v36 = vadd.f32 %v7967_v39, %v6451_v29 }
0x16f8   :  { %v3959_v61 = vpop.f32.mrf.mxu0 }
0x16f9   :  { %v3960_v63 = vadd.f32 %v7973_v17, %v3959_v61  ;;  %v3991_v13 = vsel %vm87_vm0, %v3965_v36, -inf }
0x16fa   :  { %3992 = vmax.xlane.f32.xlu0 %v3991_v13  ;;  %v6454_v0 = vpop.f32.mrf.mxu0 }
0x16fb   :  { %v3975_v2 = vadd.f32 %v7980_v56, %v6454_v0  ;;  %v3988_v40 = vsel %vm87_vm0, %v3960_v63, -inf }
0x16fc   :  { %3989 = vmax.xlane.f32.xlu1 %v3988_v40  ;;  %v3969_v3 = vpop.f32.mrf.mxu0 }
0x16fd   :  { %v3970_v4 = vadd.f32 %v7987_v33, %v3969_v3  ;;  %v3997_v8 = vsel %vm87_vm0, %v3975_v2, -inf }
0x16fe   :  { %v6457_v5 = vpop.f32.mrf.mxu0 }
0x16ff   :  { %v3985_v6 = vadd.f32 %v8000_v60, %v6457_v5  ;;  %v3994_v9 = vsel %vm87_vm0, %v3970_v4, -inf }
0x1700   :  { %3998 = vmax.xlane.f32.xlu1 %v3997_v8  ;;  %3995 = vmax.xlane.f32.xlu0 %v3994_v9  ;;  %v3979_v10 = vpop.f32.mrf.mxu0 }
0x1701   :  { %v3980_v12 = vadd.f32 %v7994_v62, %v3979_v10  ;;  %v4003_v34 = vsel %vm87_vm0, %v3985_v6, -inf }
0x1703   :  { %v4000_v55 = vsel %vm87_vm0, %v3980_v12, -inf }
0x1704   :  { %4004 = vmax.xlane.f32.xlu1 %v4003_v34  ;;  %4001 = vmax.xlane.f32.xlu0 %v4000_v55 }
0x170e   :  { %v6504_v8 = vpop.f32.mrf.mxu0 }
0x170f   :  { %v8286_v55 = vadd.f32 %v7967_v39, %v6504_v8 }
0x1710   :  { %v4418_v9 = vpop.f32.mrf.mxu0 }
0x1711   :  { %v8283_v34 = vadd.f32 %v7973_v17, %v4418_v9 }
0x1712   :  { %v6507_v10 = vpop.f32.mrf.mxu0 }
0x1715   :  { %4062 = vrot.lane.b32.xlu1 %v7902_v21, %s8628_s22 }
0x1719   :  { %4060 = vrot.lane.b32.xlu1 %v7906_v45, %s8628_s22 }
0x171a   :  { %4064 = vrot.lane.b32.xlu0 %v7900_v41, %s8628_s22 }
0x171e   :  { %4058 = vrot.lane.b32.xlu0 %v7914_v47, %s8628_s22 }
0x1783   :  { %v3993_v37 = vpop.xlane.xlu0 %3992 }
0x1784   :  { %v4007_v19 = vsub.f32 %v3965_v36, %v3993_v37 }
0x1785   :  { %v3990_v48 = vpop.xlane.xlu1 %3989 }
0x1786   :  { %v4014_v44 = vmul.f32 1.442695, %v4007_v19  ;;  %v4006_v20 = vsub.f32 %v3960_v63, %v3990_v48  ;;  %v8289_v19 = vadd.f32 %v7980_v56, %v6507_v10  ;;  %v4447_v48 = vsel %vm87_vm0, %v8283_v34, -inf }
0x1788   :  { %6817 = vpow2.f32 %v4014_v44  ;;  %v4012_v49 = vmul.f32 1.442695, %v4006_v20  ;;  %v4450_v20 = vsel %vm87_vm0, %v8286_v55, -inf  ;;  %v4456_v39 = vsel %vm87_vm0, %v8289_v19, -inf }
0x1789   :  { %v3999_v50 = vpop.xlane.xlu1 %3998  ;;  %v3996_v11 = vpop.xlane.xlu0 %3995 }
0x178a   :  { %6819 = vpow2.f32 %v4012_v49  ;;  %v4009_v24 = vsub.f32 %v3975_v2, %v3999_v50  ;;  %v4008_v16 = vsub.f32 %v3970_v4, %v3996_v11 }
0x178c   :  { %v4018_v7 = vmul.f32 1.442695, %v4009_v24  ;;  %v4016_v25 = vmul.f32 1.442695, %v4008_v16 }
0x178d   :  { %v4005_v28 = vpop.xlane.xlu1 %4004  ;;  %v4002_v14 = vpop.xlane.xlu0 %4001 }
0x178e   :  { %6821 = vpow2.f32 %v4018_v7  ;;  %v4011_v30 = vsub.f32 %v3985_v6, %v4005_v28  ;;  %v4010_v31 = vsub.f32 %v3980_v12, %v4002_v14  ;;  %v4428_v12 = vpop.f32.mrf.mxu0 }
0x178f   :  { %6823 = vpow2.f32 %v4016_v25  ;;  %v8294_v44 = vadd.f32 %v7987_v33, %v4428_v12 }
0x1790   :  { %v4022_v32 = vmul.f32 1.442695, %v4011_v30  ;;  %v4020_v58 = vmul.f32 1.442695, %v4010_v31  ;;  %v6510_v37 = vpop.f32.mrf.mxu0 }
0x1791   :  { %v4063_v35 = vpop.permute.xlu1 %4062  ;;  %v4065_v15 = vpop.permute.xlu0 %4064  ;;  %v8299_v17 = vadd.f32 %v8000_v60, %v6510_v37  ;;  %v4453_v33 = vsel %vm87_vm0, %v8294_v44, -inf }
0x1792   :  { %6825 = vpow2.f32 %v4022_v32  ;;  %6458 = vmatprep.subr.mxu1 %v4065_v15  ;;  %v4438_v49 = vpop.f32.mrf.mxu0 }
0x1793   :  { %6827 = vpow2.f32 %v4020_v58  ;;  %6459 = vmatpush3.msra.mxu1 %v4065_v15  ;;  %v8304_v56 = vadd.f32 %v7994_v62, %v4438_v49  ;;  %v4462_v50 = vsel %vm87_vm0, %v8299_v17, -inf }
0x1794   :  { %6460 = vmatprep.subr.mxu1 %v4063_v35 }
0x1795   :  { %v8254_v51 = vpop.eup %6817  ;;  %v4061_v38 = vpop.permute.xlu1 %4060  ;;  %6461 = vmatpush3.msra.mxu1 %v4063_v35  ;;  %v4459_v11 = vsel %vm87_vm0, %v8304_v56, -inf }
0x1796   :  { %6462 = vmatprep.subr.mxu1 %v4061_v38  ;;  %v4027_v29 = vsel %vm87_vm0, %v8254_v51, 0.0  ;;  %v4059_v61 = vpop.permute.xlu0 %4058 }
0x1797   :  { %v8258_v36 = vpop.eup %6819  ;;  %4028 = vadd.xlane.f32.xlu1 %v4027_v29  ;;  %6463 = vmatpush3.msra.mxu1 %v4061_v38 }
0x1798   :  { %6464 = vmatprep.subr.mxu1 %v4059_v61  ;;  %v4024_v63 = vsel %vm87_vm0, %v8258_v36, 0.0 }
0x1799   :  { %4025 = vadd.xlane.f32.xlu0 %v4024_v63  ;;  %6465 = vmatpush3.msra.mxu1 %v4059_v61 }
0x179b   :  { %v8262_v13 = vpop.eup %6821 }
0x179c   :  { %v8264_v0 = vpop.eup %6823  ;;  %v4033_v2 = vsel %vm87_vm0, %v8262_v13, 0.0 }
0x179d   :  { %4034 = vadd.xlane.f32.xlu1 %v4033_v2  ;;  %v4030_v40 = vsel %vm87_vm0, %v8264_v0, 0.0 }
0x179e   :  { %4031 = vadd.xlane.f32.xlu0 %v4030_v40 }
0x179f   :  { %v8270_v3 = vpop.eup %6825 }
0x17a0   :  { %v8272_v4 = vpop.eup %6827  ;;  %v4039_v5 = vsel %vm87_vm0, %v8270_v3, 0.0 }
0x17a1   :  { %4040 = vadd.xlane.f32.xlu1 %v4039_v5  ;;  %v4036_v6 = vsel %vm87_vm0, %v8272_v4, 0.0 }
0x17a2   :  { %4037 = vadd.xlane.f32.xlu0 %v4036_v6 }
0x17b2   :  { %4056 = vrot.lane.b32.xlu1 %v7910_v46, %s8628_s22 }
0x17b8   :  { %4054 = vrot.lane.b32.xlu0 %v7896_v43, %s8628_s22 }
0x17d6   :  { %4448 = vmax.xlane.f32.xlu1 %v4447_v48 }
0x17d7   :  { %4451 = vmax.xlane.f32.xlu0 %v4450_v20 }
0x17da   :  { %4457 = vmax.xlane.f32.xlu1 %v4456_v39 }
0x17db   :  { %4454 = vmax.xlane.f32.xlu0 %v4453_v33 }
0x17de   :  { %4463 = vmax.xlane.f32.xlu1 %v4462_v50 }
0x17df   :  { %4460 = vmax.xlane.f32.xlu0 %v4459_v11 }
0x17ef   :  { %4521 = vrot.lane.b32.xlu1 %v7902_v21, %s8629_s4 }
0x17f3   :  { %4519 = vrot.lane.b32.xlu1 %v7906_v45, %s8629_s4 }
0x17f5   :  { %4523 = vrot.lane.b32.xlu0 %v7900_v41, %s8629_s4 }
0x17f9   :  { %4517 = vrot.lane.b32.xlu0 %v7914_v47, %s8629_s4  ;;  %v5545_v47 = vld [vmem:[%s8583_s9 + $0x30] sm:$0xff] }
0x1820   :  { %v4029_v62 = vpop.xlane.xlu1 %4028 }
0x1821   :  { %6829 = vrcp.f32 %v4029_v62 }
0x1822   :  { %v4026_v60 = vpop.xlane.xlu0 %4025 }
0x1823   :  { %6831 = vrcp.f32 %v4026_v60 }
0x1826   :  { %v4035_v24 = vpop.xlane.xlu1 %4034 }
0x1827   :  { %6833 = vrcp.f32 %v4035_v24  ;;  %v4032_v16 = vpop.xlane.xlu0 %4031  ;;  %v8369_v24 = vpop.f32.mrf.mxu1 }
0x1828   :  { %6835 = vrcp.f32 %v4032_v16 }
0x1829   :  { %v8371_v16 = vpop.f32.mrf.mxu1 }
0x182a   :  { %v4041_v7 = vpop.xlane.xlu1 %4040 }
0x182b   :  { %6837 = vrcp.f32 %v4041_v7  ;;  %v4038_v21 = vpop.xlane.xlu0 %4037  ;;  %v8373_v7 = vpop.f32.mrf.mxu1 }
0x182c   :  { %6839 = vrcp.f32 %v4038_v21 }
0x182d   :  { %v8375_v21 = vpop.f32.mrf.mxu1 }
0x182e   :  { %v4057_v25 = vpop.permute.xlu1 %4056  ;;  %v6830_v45 = vpop.eup %6829 }
0x182f   :  { %6466 = vmatprep.subr.mxu1 %v4057_v25  ;;  %v4055_v41 = vpop.permute.xlu0 %4054  ;;  %v4049_v30 = vmul.f32 %v6830_v45, %v8254_v51 }
0x1830   :  { %v6832_v28 = vpop.eup %6831  ;;  %6467 = vmatpush3.msra.mxu1 %v4057_v25  ;;  %v8377_v25 = vpop.f32.mrf.mxu1 }
0x1831   :  { %6468 = vmatprep.subr.mxu1 %v4055_v41  ;;  %v4048_v14 = vmul.f32 %v6832_v28, %v8258_v36 }
0x1832   :  { %6469 = vmatpush3.msra.mxu1 %v4055_v41  ;;  %v8379_v45 = vpop.f32.mrf.mxu1 }
0x1833   :  { %6470 = vmatprep.mubr.msk.f32.mxu1 %vm87_vm0, %v4048_v14  ;;  %6479 = vmatprep.subr.mxu1 %v5545_v47 }
0x1834   :  { %v6834_v31 = vpop.eup %6833  ;;  %6471 = vmatmul.mubr.msk.f32.vlgmr.msra.gmra.mxu1 %vm87_vm0, %v4049_v30 }
0x1835   :  { %v6836_v32 = vpop.eup %6835  ;;  %v4051_v58 = vmul.f32 %v6834_v31, %v8262_v13  ;;  %6480 = vmatpush3.msra.mxu1 %v5545_v47 }
0x1836   :  { %v4050_v35 = vmul.f32 %v6836_v32, %v8264_v0 }
0x1838   :  { %v6838_v15 = vpop.eup %6837  ;;  %6473 = vmatprep.mubr.msk.f32.mxu1 %vm87_vm0, %v4050_v35 }
0x1839   :  { %v6840_v38 = vpop.eup %6839  ;;  %6474 = vmatmul.mubr.msk.f32.gmra.mxu1 %vm87_vm0, %v4051_v58  ;;  %v4053_v51 = vmul.f32 %v6838_v15, %v8270_v3 }
0x183a   :  { %v4052_v29 = vmul.f32 %v6840_v38, %v8272_v4 }
0x183c   :  { %6476 = vmatprep.mubr.msk.f32.mxu1 %vm87_vm0, %v4052_v29 }
0x183d   :  { %6477 = vmatmul.mubr.msk.f32.gmra.mxu1 %vm87_vm0, %v4053_v51 }
0x185f   :  { %v4449_v36 = vpop.xlane.xlu1 %4448 }
0x1860   :  { %v4465_v61 = vsub.f32 %v8283_v34, %v4449_v36  ;;  %v4452_v63 = vpop.xlane.xlu0 %4451 }
0x1861   :  { %v4466_v13 = vsub.f32 %v8286_v55, %v4452_v63 }
0x1862   :  { %v4471_v0 = vmul.f32 1.442695, %v4465_v61 }
0x1863   :  { %v4473_v2 = vmul.f32 1.442695, %v4466_v13  ;;  %v4458_v40 = vpop.xlane.xlu1 %4457 }
0x1864   :  { %6841 = vpow2.f32 %v4471_v0  ;;  %v4468_v5 = vsub.f32 %v8289_v19, %v4458_v40  ;;  %v4455_v6 = vpop.xlane.xlu0 %4454 }
0x1865   :  { %6843 = vpow2.f32 %v4473_v2  ;;  %v4467_v3 = vsub.f32 %v8294_v44, %v4455_v6 }
0x1866   :  { %v4477_v4 = vmul.f32 1.442695, %v4468_v5 }
0x1867   :  { %v4475_v8 = vmul.f32 1.442695, %v4467_v3  ;;  %v4464_v9 = vpop.xlane.xlu1 %4463 }
0x1868   :  { %6845 = vpow2.f32 %v4477_v4  ;;  %v4470_v10 = vsub.f32 %v8299_v17, %v4464_v9  ;;  %v4461_v12 = vpop.xlane.xlu0 %4460 }
0x1869   :  { %6847 = vpow2.f32 %v4475_v8  ;;  %v4469_v34 = vsub.f32 %v8304_v56, %v4461_v12  ;;  %v5546_v12 = vld [vmem:[%s8583_s9 + $0x38] sm:$0xff] }
0x186a   :  { %v4481_v55 = vmul.f32 1.442695, %v4470_v10 }
0x186b   :  { %v4479_v37 = vmul.f32 1.442695, %v4469_v34  ;;  %v4522_v28 = vpop.permute.xlu1 %4521  ;;  %v3822_v34 = vadd.f32 %v8369_v24, %v8222_v53 }
0x186c   :  { %6849 = vpow2.f32 %v4481_v55  ;;  %v4524_v48 = vpop.permute.xlu0 %4523 }
0x186d   :  { %6851 = vpow2.f32 %v4479_v37  ;;  %6511 = vmatprep.subr.mxu1 %v4524_v48  ;;  %v3817_v37 = vadd.f32 %v8371_v16, %v8224_v54  ;;  %v3837_v54 = vadd.f32 %v8379_v45, %v8232_v57 }
0x1871   :  { %v8341_v19 = vpop.eup %6841 }
0x1872   :  { %v8343_v20 = vpop.eup %6843  ;;  %v4483_v44 = vsel %vm87_vm0, %v8341_v19, 0.0 }
0x1873   :  { %4484 = vadd.xlane.f32.xlu0 %v4483_v44  ;;  %v4486_v49 = vsel %vm87_vm0, %v8343_v20, 0.0  ;;  %v3832_v44 = vadd.f32 %v8373_v7, %v8226_v1 }
0x1874   :  { %4487 = vadd.xlane.f32.xlu1 %v4486_v49 }
0x1875   :  { %v8349_v17 = vpop.eup %6845 }
0x1876   :  { %v8351_v39 = vpop.eup %6847  ;;  %v4492_v56 = vsel %vm87_vm0, %v8349_v17, 0.0 }
0x1877   :  { %v4489_v33 = vsel %vm87_vm0, %v8351_v39, 0.0 }
0x1878   :  { %4493 = vadd.xlane.f32.xlu1 %v4492_v56  ;;  %4490 = vadd.xlane.f32.xlu0 %v4489_v33  ;;  %v3842_v33 = vadd.f32 %v8377_v25, %v8230_v59  ;;  %v5644_v25 = vld [vmem:[%s8584_s10 + $0x1] ss:$0 sm:$0xff]  ;;  %s5391_s10 = sshll.u32 %s6932_s7, 4  ;;  %s5392_s10 = int_to_ptr.vmem [resolvable:$true] %s5391_s10 }
0x1879   :  { %v8357_v50 = vpop.eup %6849  ;;  %p6902_p1 = scmp.lt.s32.totalorder %s5392_s10, %s5392_s10 }
0x187a   :  { %v8359_v11 = vpop.eup %6851  ;;  %v4498_v62 = vsel %vm87_vm0, %v8357_v50, 0.0 }
0x187b   :  { %v4495_v60 = vsel %vm87_vm0, %v8359_v11, 0.0 }
0x187c   :  { %4499 = vadd.xlane.f32.xlu1 %v4498_v62  ;;  %4496 = vadd.xlane.f32.xlu0 %v4495_v60 }
0x188d   :  { %4515 = vrot.lane.b32.xlu1 %v7910_v46, %s8629_s4  ;;  %v4518_v46 = vpop.permute.xlu0 %4517 }
0x1892   :  { %4513 = vrot.lane.b32.xlu0 %v7896_v43, %s8629_s4  ;;  %v4520_v43 = vpop.permute.xlu1 %4519 }
0x18f4   :  { %v6472_v41 = vpop.f32.mrf.mxu1 }
0x18f6   :  { %v4156_v47 = vpop.f32.mrf.mxu1 }
0x18f7   :  { %6481 = vmatprep.mubr.msk.f32.mxu1 %vm471_vm2, %v4156_v47 }
0x18f8   :  { %6482 = vmatmul.mubr.msk.f32.vlgmr.msra.gmra.mxu1 %vm471_vm2, %v6472_v41 }
0x18f9   :  { %v6475_v14 = vpop.f32.mrf.mxu1  ;;  %6512 = vmatpush3.msra.mxu1 %v4524_v48 }
0x18fa   :  { %6513 = vmatprep.subr.mxu1 %v4522_v28 }
0x18fb   :  { %v4166_v30 = vpop.f32.mrf.mxu1  ;;  %6514 = vmatpush3.msra.mxu1 %v4522_v28 }
0x18fc   :  { %6484 = vmatprep.mubr.msk.f32.mxu1 %vm471_vm2, %v4166_v30  ;;  %6515 = vmatprep.subr.mxu1 %v4520_v43  ;;  %v4485_v31 = vpop.xlane.xlu0 %4484 }
0x18fd   :  { %v6478_v32 = vpop.f32.mrf.mxu1  ;;  %6485 = vmatmul.mubr.msk.f32.gmra.mxu1 %vm471_vm2, %v6475_v14  ;;  %v4488_v58 = vpop.xlane.xlu1 %4487  ;;  %6853 = vrcp.f32 %v4485_v31 }
0x18fe   :  { %6855 = vrcp.f32 %v4488_v58  ;;  %6516 = vmatpush3.msra.mxu1 %v4520_v43 }
0x18ff   :  { %6517 = vmatprep.subr.mxu1 %v4518_v46  ;;  %v4176_v35 = vpop.f32.mrf.mxu1 }
0x1900   :  { %6518 = vmatpush3.msra.mxu1 %v4518_v46  ;;  %6487 = vmatprep.mubr.msk.f32.mxu1 %vm471_vm2, %v4176_v35 }
0x1901   :  { %6488 = vmatmul.mubr.msk.f32.gmra.mxu1 %vm471_vm2, %v6478_v32  ;;  %v4494_v15 = vpop.xlane.xlu1 %4493  ;;  %v4491_v38 = vpop.xlane.xlu0 %4490 }
0x1902   :  { %6857 = vrcp.f32 %v4494_v15 }
0x1903   :  { %6859 = vrcp.f32 %v4491_v38 }
0x1905   :  { %v4500_v51 = vpop.xlane.xlu1 %4499  ;;  %v4497_v29 = vpop.xlane.xlu0 %4496 }
0x1906   :  { %6861 = vrcp.f32 %v4500_v51 }
0x1907   :  { %6863 = vrcp.f32 %v4497_v29 }
0x1909   :  { %v4516_v36 = vpop.permute.xlu1 %4515  ;;  %v4514_v13 = vpop.permute.xlu0 %4513 }
0x190a   :  { %v6854_v61 = vpop.eup %6853  ;;  %6519 = vmatprep.subr.mxu1 %v4516_v36 }
0x190b   :  { %v6856_v63 = vpop.eup %6855  ;;  %6520 = vmatpush3.msra.mxu1 %v4516_v36  ;;  %v4507_v0 = vmul.f32 %v6854_v61, %v8341_v19 }
0x190c   :  { %v4508_v2 = vmul.f32 %v6856_v63, %v8343_v20  ;;  %6521 = vmatprep.subr.mxu1 %v4514_v13 }
0x190d   :  { %6522 = vmatpush3.msra.mxu1 %v4514_v13  ;;  %6523 = vmatprep.mubr.msk.f32.mxu1 %vm87_vm0, %v4507_v0 }
0x190e   :  { %6524 = vmatmul.mubr.msk.f32.vlgmr.msra.gmra.mxu1 %vm87_vm0, %v4508_v2  ;;  %6532 = vmatprep.subr.mxu1 %v5546_v12 }
0x190f   :  { %v6858_v40 = vpop.eup %6857  ;;  %6533 = vmatpush3.msra.mxu1 %v5546_v12 }
0x1910   :  { %v6860_v5 = vpop.eup %6859  ;;  %v4510_v6 = vmul.f32 %v6858_v40, %v8349_v17  ;;  %v3827_v17 = vadd.f32 %v8375_v21, %v8228_v26 }
0x1911   :  { %v4509_v3 = vmul.f32 %v6860_v5, %v8351_v39 }
0x1913   :  { %v6862_v4 = vpop.eup %6861  ;;  %6526 = vmatprep.mubr.msk.f32.mxu1 %vm87_vm0, %v4509_v3 }
0x1914   :  { %v6864_v8 = vpop.eup %6863  ;;  %6527 = vmatmul.mubr.msk.f32.gmra.mxu1 %vm87_vm0, %v4510_v6  ;;  %v4512_v9 = vmul.f32 %v6862_v4, %v8357_v50 }
0x1915   :  { %v4511_v10 = vmul.f32 %v6864_v8, %v8359_v11 }
0x1917   :  { %6529 = vmatprep.mubr.msk.f32.mxu1 %vm87_vm0, %v4511_v10 }
0x1918   :  { %6530 = vmatmul.mubr.msk.f32.gmra.mxu1 %vm87_vm0, %v4512_v9 }
0x19b8   :  { %v6483_v55 = vpop.f32.mrf.mxu1 }
0x19b9   :  { %v4299_v48 = vadd.f32 %v6483_v55, %v3822_v34 }
0x19ba   :  { %v4269_v19 = vpop.f32.mrf.mxu1 }
0x19bb   :  { %v4298_v20 = vadd.f32 %v4269_v19, %v3817_v37  ;;  %v5651_v19 = vld [vmem:[%s8587_s13 + $0x30] sm:$0xff] }
0x19bd   :  { %v6486_v49 = vpop.f32.mrf.mxu1 }
0x19be   :  { %v4301_v39 = vadd.f32 %v6486_v49, %v3832_v44  ;;  %v5649_v44 = vld [vmem:[%s8587_s13 + $0x20] sm:$0xff] }
0x19bf   :  { %v4279_v56 = vpop.f32.mrf.mxu1 }
0x19c0   :  { %v4300_v53 = vadd.f32 %v4279_v56, %v3827_v17 }
0x19c1   :  { %v6489_v50 = vpop.f32.mrf.mxu1 }
0x19c2   :  { %v4303_v11 = vadd.f32 %v6489_v50, %v3842_v33 }
0x19c3   :  { %v4289_v62 = vpop.f32.mrf.mxu1 }
0x19c4   :  { %v4302_v60 = vadd.f32 %v4289_v62, %v3837_v54 }
0x19ce   :  { %v6525_v24 = vpop.f32.mrf.mxu1 }
0x19d0   :  { %v4615_v16 = vpop.f32.mrf.mxu1 }
0x19d1   :  { %6534 = vmatprep.mubr.msk.f32.mxu1 %vm471_vm2, %v4615_v16 }
0x19d2   :  { %6535 = vmatmul.mubr.msk.f32.vlgmr.msra.gmra.mxu1 %vm471_vm2, %v6525_v24 }
0x19d4   :  { %v6528_v1 = vpop.f32.mrf.mxu1 }
0x19d6   :  { %v4625_v26 = vpop.f32.mrf.mxu1 }
0x19d7   :  { %6537 = vmatprep.mubr.msk.f32.mxu1 %vm471_vm2, %v4625_v26 }
0x19d8   :  { %v6531_v7 = vpop.f32.mrf.mxu1  ;;  %6538 = vmatmul.mubr.msk.f32.gmra.mxu1 %vm471_vm2, %v6528_v1 }
0x19da   :  { %v4635_v59 = vpop.f32.mrf.mxu1 }
0x19db   :  { %6540 = vmatprep.mubr.msk.f32.mxu1 %vm471_vm2, %v4635_v59 }
0x19dc   :  { %6541 = vmatmul.mubr.msk.f32.gmra.mxu1 %vm471_vm2, %v6531_v7 }
0x1a92   :  { %v6536_v57 = vpop.f32.mrf.mxu1 }
0x1a93   :  { %v4758_v21 = vadd.f32 %v6536_v57, %v4299_v48  ;;  %v5652_v48 = vld [vmem:[%s8587_s13 + $0x38] sm:$0xff] }
0x1a94   :  { %v4728_v45 = vpop.f32.mrf.mxu1  ;;  %6543 = vmatprep.subr.mxu0 %v5652_v48 }
0x1a95   :  { %v4764_v28 = vadd.f32 %v4758_v21, %v7816_v22  ;;  %v4757_v41 = vadd.f32 %v4728_v45, %v4298_v20  ;;  %6544 = vmatpush3.msra.mxu0 %v5652_v48  ;;  %v5650_v20 = vld [vmem:[%s8587_s13 + $0x28] sm:$0xff]  ;;  %s8630_s13 = sld [smem:[#allocation8_spill]] }
0x1a96   :  { %6545 = vmatprep.subr.mxu0 %v5651_v19 }
0x1a97   :  { %v8424_v47 = vadd.f32 %v5644_v25, %v4764_v28  ;;  %v4763_v46 = vadd.f32 %v4757_v41, %v7819_v23  ;;  %6546 = vmatpush3.msra.mxu0 %v5651_v19 }
0x1a98   :  { %v6539_v43 = vpop.f32.mrf.mxu1  ;;  %6547 = vmatprep.subr.mxu0 %v5650_v20 }
0x1a99   :  { %v8427_v14 = vadd.f32 %v5644_v25, %v4763_v46  ;;  %v4760_v30 = vadd.f32 %v6539_v43, %v4301_v39  ;;  %v4790_v31 = vsel %vm209_vm1, %v8424_v47, 0.0  ;;  %v4812_v58 = vmul.f32 %v8424_v47, %v8424_v47  ;;  %6548 = vmatpush3.msra.mxu0 %v5650_v20 }
0x1a9a   :  { %v4738_v32 = vpop.f32.mrf.mxu1  ;;  %4791 = vadd.xlane.f32.xlu0 %v4790_v31  ;;  %6549 = vmatprep.subr.mxu0 %v5649_v44 }
0x1a9b   :  { %v4766_v35 = vadd.f32 %v4760_v30, %v7831_v18  ;;  %v4759_v22 = vadd.f32 %v4738_v32, %v4300_v53  ;;  %v4787_v15 = vsel %vm209_vm1, %v8427_v14, 0.0  ;;  %v4811_v23 = vmul.f32 %v8427_v14, %v8427_v14  ;;  %6550 = vmatpush3.msra.mxu0 %v5649_v44 }
0x1a9c   :  { %v6542_v38 = vpop.f32.mrf.mxu1  ;;  %4788 = vadd.xlane.f32.xlu1 %v4787_v15  ;;  %v4820_v61 = vsel %vm209_vm1, %v4812_v58, 0.0 }
0x1a9d   :  { %v4765_v51 = vadd.f32 %v4759_v22, %v7835_v27  ;;  %v4817_v29 = vsel %vm209_vm1, %v4811_v23, 0.0  ;;  %v8441_v63 = vadd.f32 %v5644_v25, %v4766_v35  ;;  %v4762_v13 = vadd.f32 %v6542_v38, %v4303_v11 }
0x1a9e   :  { %v4748_v36 = vpop.f32.mrf.mxu1  ;;  %4818 = vadd.xlane.f32.xlu0 %v4817_v29 }
0x1a9f   :  { %v8443_v18 = vadd.f32 %v5644_v25, %v4765_v51  ;;  %v4761_v0 = vadd.f32 %v4748_v36, %v4302_v60  ;;  %v4768_v5 = vadd.f32 %v4762_v13, %v7847_v42  ;;  %v4796_v6 = vsel %vm209_vm1, %v8441_v63, 0.0 }
0x1aa0   :  { %4821 = vadd.xlane.f32.xlu1 %v4820_v61  ;;  %v4814_v3 = vmul.f32 %v8441_v63, %v8441_v63 }
0x1aa1   :  { %v4767_v2 = vadd.f32 %v4761_v0, %v7851_v52  ;;  %v4793_v40 = vsel %vm209_vm1, %v8443_v18, 0.0  ;;  %v4813_v27 = vmul.f32 %v8443_v18, %v8443_v18  ;;  %v8458_v8 = vadd.f32 %v5644_v25, %v4768_v5 }
0x1aa2   :  { %4794 = vadd.xlane.f32.xlu0 %v4793_v40  ;;  %v4826_v9 = vsel %vm209_vm1, %v4814_v3, 0.0  ;;  %v5647_v40 = vld [vmem:[%s8585_s11 + $0x1] ss:$0 sm:$0xff] }
0x1aa3   :  { %v8455_v4 = vadd.f32 %v5644_v25, %v4767_v2  ;;  %v4823_v52 = vsel %vm209_vm1, %v4813_v27, 0.0  ;;  %v4802_v12 = vsel %vm209_vm1, %v8458_v8, 0.0  ;;  %v4816_v34 = vmul.f32 %v8458_v8, %v8458_v8 }
0x1aa4   :  { %4797 = vadd.xlane.f32.xlu1 %v4796_v6 }
0x1aa5   :  { %v4799_v42 = vsel %vm209_vm1, %v8455_v4, 0.0  ;;  %v4815_v10 = vmul.f32 %v8455_v4, %v8455_v4  ;;  %v4832_v37 = vsel %vm209_vm1, %v4816_v34, 0.0 }
0x1aa6   :  { %4824 = vadd.xlane.f32.xlu0 %v4823_v52 }
0x1aa7   :  { %v4829_v55 = vsel %vm209_vm1, %v4815_v10, 0.0 }
0x1aa8   :  { %4827 = vadd.xlane.f32.xlu1 %v4826_v9  ;;  %v5648_v9 = vld [vmem:[%s8586_s12 + $0x1] ss:$0 sm:$0xff] }
0x1aaa   :  { %4800 = vadd.xlane.f32.xlu0 %v4799_v42 }
0x1aac   :  { %4803 = vadd.xlane.f32.xlu1 %v4802_v12 }
0x1aae   :  { %4830 = vadd.xlane.f32.xlu0 %v4829_v55 }
0x1ab0   :  { %4833 = vadd.xlane.f32.xlu1 %v4832_v37 }
0x1b23   :  { %v4792_v49 = vpop.xlane.xlu0 %4791 }
0x1b24   :  { %v4806_v39 = vmul.f32 0.03125, %v4792_v49 }
0x1b25   :  { %v4789_v17 = vpop.xlane.xlu1 %4788 }
0x1b26   :  { %v4805_v56 = vmul.f32 0.03125, %v4789_v17  ;;  %v4842_v11 = vmul.f32 %v4806_v39, %v4806_v39  ;;  %v4854_v27 = vsub.f32 %v8424_v47, %v4806_v39 }
0x1b27   :  { %v4819_v33 = vpop.xlane.xlu0 %4818 }
0x1b28   :  { %v4841_v53 = vmul.f32 %v4805_v56, %v4805_v56  ;;  %v4835_v50 = vmul.f32 0.03125, %v4819_v33  ;;  %v4853_v36 = vsub.f32 %v8427_v14, %v4805_v56 }
0x1b29   :  { %v4822_v54 = vpop.xlane.xlu1 %4821 }
0x1b2a   :  { %v4847_v62 = vsub.f32 %v4835_v50, %v4841_v53  ;;  %v4836_v60 = vmul.f32 0.03125, %v4822_v54 }
0x1b2b   :  { %v4795_v24 = vpop.xlane.xlu0 %4794 }
0x1b2c   :  { %v4859_v16 = vadd.f32 1e-06, %v4847_v62  ;;  %v4848_v1 = vsub.f32 %v4836_v60, %v4842_v11  ;;  %v4807_v26 = vmul.f32 0.03125, %v4795_v24 }
0x1b2d   :  { %v4798_v7 = vpop.xlane.xlu1 %4797 }
0x1b2e   :  { %6865 = vrsqrt.f32 %v4859_v16  ;;  %v4860_v59 = vadd.f32 1e-06, %v4848_v1  ;;  %v4808_v57 = vmul.f32 0.03125, %v4798_v7  ;;  %v4843_v25 = vmul.f32 %v4807_v26, %v4807_v26 }
0x1b2f   :  { %v4825_v21 = vpop.xlane.xlu0 %4824  ;;  %v4855_v37 = vsub.f32 %v8443_v18, %v4807_v26 }
0x1b30   :  { %6867 = vrsqrt.f32 %v4860_v59  ;;  %v4837_v45 = vmul.f32 0.03125, %v4825_v21  ;;  %v4844_v41 = vmul.f32 %v4808_v57, %v4808_v57  ;;  %v4856_v20 = vsub.f32 %v8441_v63, %v4808_v57  ;;  %v5668_v59 = vld [vmem:[%s8589_s15 + $0x78] sm:$0xff]  ;;  %v5667_v57 = vld [vmem:[%s8589_s15 + $0x70] sm:$0xff]  ;;  %v5666_v21 = vld [vmem:[%s8589_s15 + $0x68] sm:$0xff] }
0x1b31   :  { %v4828_v28 = vpop.xlane.xlu1 %4827  ;;  %6560 = vmatprep.subr.mxu1 %v5668_v59 }
0x1b32   :  { %v4849_v46 = vsub.f32 %v4837_v45, %v4843_v25  ;;  %v4838_v43 = vmul.f32 0.03125, %v4828_v28  ;;  %6561 = vmatpush3.msra.mxu1 %v5668_v59  ;;  %v5665_v25 = vld [vmem:[%s8589_s15 + $0x60] sm:$0xff]  ;;  %v5664_v45 = vld [vmem:[%s8589_s15 + $0x58] sm:$0xff]  ;;  %v5663_v28 = vld [vmem:[%s8589_s15 + $0x50] sm:$0xff] }
0x1b33   :  { %v4801_v30 = vpop.xlane.xlu0 %4800  ;;  %6562 = vmatprep.subr.mxu1 %v5667_v57 }
0x1b34   :  { %v4861_v31 = vadd.f32 1e-06, %v4849_v46  ;;  %v4850_v32 = vsub.f32 %v4838_v43, %v4844_v41  ;;  %v4809_v58 = vmul.f32 0.03125, %v4801_v30  ;;  %6563 = vmatpush3.msra.mxu1 %v5667_v57  ;;  %v5662_v41 = vld [vmem:[%s8589_s15 + $0x48] sm:$0xff]  ;;  %v5661_v46 = vld [vmem:[%s8589_s15 + $0x40] sm:$0xff] }
0x1b35   :  { %v4804_v35 = vpop.xlane.xlu1 %4803  ;;  %6564 = vmatprep.subr.mxu1 %v5666_v21  ;;  %v5654_v43 = vld [vmem:[%s8588_s14 + $0x1] ss:$0 sm:$0xff] }
0x1b36   :  { %6869 = vrsqrt.f32 %v4861_v31  ;;  %v4862_v22 = vadd.f32 1e-06, %v4850_v32  ;;  %v4810_v15 = vmul.f32 0.03125, %v4804_v35  ;;  %v4845_v38 = vmul.f32 %v4809_v58, %v4809_v58  ;;  %6565 = vmatpush3.msra.mxu1 %v5666_v21 }
0x1b37   :  { %v4831_v23 = vpop.xlane.xlu0 %4830  ;;  %v4857_v53 = vsub.f32 %v8455_v4, %v4809_v58  ;;  %6566 = vmatprep.subr.mxu1 %v5665_v25 }
0x1b38   :  { %6871 = vrsqrt.f32 %v4862_v22  ;;  %v4839_v51 = vmul.f32 0.03125, %v4831_v23  ;;  %v4846_v61 = vmul.f32 %v4810_v15, %v4810_v15  ;;  %v4858_v11 = vsub.f32 %v8458_v8, %v4810_v15  ;;  %6567 = vmatpush3.msra.mxu1 %v5665_v25 }
0x1b39   :  { %v4834_v29 = vpop.xlane.xlu1 %4833  ;;  %6568 = vmatprep.subr.mxu1 %v5664_v45 }
0x1b3a   :  { %v4851_v13 = vsub.f32 %v4839_v51, %v4845_v38  ;;  %v4840_v0 = vmul.f32 0.03125, %v4834_v29  ;;  %6569 = vmatpush3.msra.mxu1 %v5664_v45 }
0x1b3b   :  { %v6866_v2 = vpop.eup %6865  ;;  %6570 = vmatprep.subr.mxu1 %v5663_v28 }
0x1b3c   :  { %v4863_v5 = vadd.f32 1e-06, %v4851_v13  ;;  %v4852_v6 = vsub.f32 %v4840_v0, %v4846_v61  ;;  %v4871_v3 = vmul.f32 %v6866_v2, %v4853_v36  ;;  %6571 = vmatpush3.msra.mxu1 %v5663_v28 }
0x1b3d   :  { %v6868_v52 = vpop.eup %6867  ;;  %6572 = vmatprep.subr.mxu1 %v5662_v41 }
0x1b3e   :  { %v4872_v42 = vmul.f32 %v6868_v52, %v4854_v27  ;;  %6873 = vrsqrt.f32 %v4863_v5  ;;  %v4864_v10 = vadd.f32 1e-06, %v4852_v6  ;;  %v4883_v12 = vmul.f32 %v5647_v40, %v4871_v3  ;;  %6573 = vmatpush3.msra.mxu1 %v5662_v41 }
0x1b3f   :  { %6574 = vmatprep.subr.mxu1 %v5661_v46 }
0x1b40   :  { %6875 = vrsqrt.f32 %v4864_v10  ;;  %v4895_v34 = vadd.f32 %v5648_v9, %v4883_v12  ;;  %v4884_v55 = vmul.f32 %v5647_v40, %v4872_v42  ;;  %6575 = vmatpush3.msra.mxu1 %v5661_v46 }
0x1b42   :  { %6551 = vmatprep.mubr.msk.f32.mxu0 %vm209_vm1, %v4895_v34  ;;  %v4896_v48 = vadd.f32 %v5648_v9, %v4884_v55 }
0x1b43   :  { %v6870_v19 = vpop.eup %6869 }
0x1b44   :  { %6552 = vmatmul.mubr.msk.f32.vlgmr.msra.gmra.mxu0 %vm209_vm1, %v4896_v48  ;;  %v4873_v44 = vmul.f32 %v6870_v19, %v4855_v37 }
0x1b45   :  { %v6872_v49 = vpop.eup %6871 }
0x1b46   :  { %v4885_v17 = vmul.f32 %v5647_v40, %v4873_v44  ;;  %v4874_v39 = vmul.f32 %v6872_v49, %v4856_v20 }
0x1b48   :  { %v4897_v56 = vadd.f32 %v5648_v9, %v4885_v17  ;;  %v4886_v33 = vmul.f32 %v5647_v40, %v4874_v39 }
0x1b4a   :  { %6554 = vmatprep.mubr.msk.f32.mxu0 %vm209_vm1, %v4897_v56  ;;  %v4898_v50 = vadd.f32 %v5648_v9, %v4886_v33 }
0x1b4b   :  { %v6874_v54 = vpop.eup %6873 }
0x1b4c   :  { %6555 = vmatmul.mubr.msk.f32.gmra.mxu0 %vm209_vm1, %v4898_v50  ;;  %v4875_v62 = vmul.f32 %v6874_v54, %v4857_v53 }
0x1b4d   :  { %v6876_v60 = vpop.eup %6875 }
0x1b4e   :  { %v4887_v24 = vmul.f32 %v5647_v40, %v4875_v62  ;;  %v4876_v16 = vmul.f32 %v6876_v60, %v4858_v11  ;;  %v6930_v62 = vmov 0.0  }
0x1b4f   :  { %6585 = vmatprep.subr.mxu0 %v6930_v62 }
0x1b50   :  { %v4899_v1 = vadd.f32 %v5648_v9, %v4887_v24  ;;  %v4888_v26 = vmul.f32 %v5647_v40, %v4876_v16 }
0x1b52   :  { %6557 = vmatprep.mubr.msk.f32.mxu0 %vm209_vm1, %v4899_v1  ;;  %v4900_v7 = vadd.f32 %v5648_v9, %v4888_v26  ;;  %v5670_v26 = vld [vmem:[%s8590_s16 + $0x1] ss:$0 sm:$0xff] }
0x1b54   :  { %6558 = vmatmul.mubr.msk.f32.gmra.mxu0 %vm209_vm1, %v4900_v7 }
0x1b55   :  { %6597 = vmatprep.mubr.msk.f32.mxu0 %vm6931_vm4, %v6930_v62 }
0x1c04   :  { %v6553_v30 = vpop.f32.mrf.mxu0 }
0x1c05   :  { %v5004_v31 = vadd.f32 %v6553_v30, %v5654_v43 }
0x1c06   :  { %v4998_v32 = vpop.f32.mrf.mxu0 }
0x1c07   :  { %v5034_v58 = vmul.f32 0.70710677, %v5004_v31  ;;  %v4999_v35 = vadd.f32 %v5654_v43, %v4998_v32  ;;  %v5028_v9 = vmul.f32 0.5, %v5004_v31 }
0x1c09   :  { %6877 = verf.f32 %v5034_v58  ;;  %v5033_v22 = vmul.f32 0.70710677, %v4999_v35  ;;  %v5027_v3 = vmul.f32 0.5, %v4999_v35 }
0x1c0b   :  { %6879 = verf.f32 %v5033_v22  ;;  %v5301_v22 = vld [vmem:[%s8593_s19 + $0x10] sm:$0xff] }
0x1c0c   :  { %v6556_v15 = vpop.f32.mrf.mxu0 }
0x1c0d   :  { %v5014_v23 = vadd.f32 %v6556_v15, %v5654_v43  ;;  %v5300_v15 = vld [vmem:[%s8593_s19 + $0x8] sm:$0xff] }
0x1c0e   :  { %v5008_v38 = vpop.f32.mrf.mxu0 }
0x1c0f   :  { %v5036_v51 = vmul.f32 0.70710677, %v5014_v23  ;;  %v5009_v29 = vadd.f32 %v5654_v43, %v5008_v38  ;;  %v5030_v20 = vmul.f32 0.5, %v5014_v23  ;;  %v5299_v23 = vld [vmem:[%s8593_s19] sm:$0xff] }
0x1c11   :  { %6881 = verf.f32 %v5036_v51  ;;  %v5035_v36 = vmul.f32 0.70710677, %v5009_v29  ;;  %v5029_v48 = vmul.f32 0.5, %v5009_v29 }
0x1c13   :  { %6883 = verf.f32 %v5035_v36 }
0x1c14   :  { %v6559_v61 = vpop.f32.mrf.mxu0 }
0x1c15   :  { %v5024_v13 = vadd.f32 %v6559_v61, %v5654_v43 }
0x1c16   :  { %v6878_v0 = vpop.eup %6877  ;;  %v5018_v2 = vpop.f32.mrf.mxu0 }
0x1c17   :  { %v5038_v40 = vmul.f32 0.70710677, %v5024_v13  ;;  %v5019_v27 = vadd.f32 %v5654_v43, %v5018_v2  ;;  %v5046_v6 = vadd.f32 1.0, %v6878_v0  ;;  %v5032_v50 = vmul.f32 0.5, %v5024_v13 }
0x1c18   :  { %v6880_v5 = vpop.eup %6879 }
0x1c19   :  { %v5045_v52 = vadd.f32 1.0, %v6880_v5  ;;  %6885 = verf.f32 %v5038_v40  ;;  %v5037_v42 = vmul.f32 0.70710677, %v5019_v27  ;;  %v5052_v12 = vmul.f32 %v5046_v6, %v5028_v9  ;;  %v5679_v6 = vld [vmem:[%s8592_s18] ss:$0 sm:$0xff] }
0x1c1a   :  { %v5031_v33 = vmul.f32 0.5, %v5019_v27  ;;  %v5678_v27 = vld [vmem:[%s8591_s17] ss:$0 sm:$0xff]  ;;  %s6897_s17 = scalar_lea.vmem %s5392_s10, 32 }
0x1c1b   :  { %v5051_v10 = vmul.f32 %v5045_v52, %v5027_v3  ;;  %6887 = verf.f32 %v5037_v42  ;;  %v5680_v9 = vld [vmem:[%s8594_s20] ss:$0 sm:$0xff]  ;;  %p6898_p0 = scmp.ne.s32.totalorder %s5392_s10, %s6897_s17  ;;  %p6903_p2 = scmp.lt.s32.totalorder %s6897_s17, %s6897_s17 }
0x1c1d   :  { %6576 = vmatprep.mubr.msk.f32.mxu1 %vm2576_vm3, %v5051_v10  ;;  %p6904_p3 = por %p6903_p2, %p6902_p1 }
0x1c1e   :  { %v6882_v34 = vpop.eup %6881  ;;  %6577 = vmatmul.mubr.msk.f32.vlgmr.msra.gmra.mxu1 %vm2576_vm3, %v5052_v12 }
0x1c1f   :  { %v5048_v37 = vadd.f32 1.0, %v6882_v34  ;;  %p6905_p4 = pnand %p6904_p3, %p6898_p0 }
0x1c20   :  { %v6884_v55 = vpop.eup %6883 }
0x1c21   :  { %v5047_v19 = vadd.f32 1.0, %v6884_v55  ;;  %v5054_v49 = vmul.f32 %v5048_v37, %v5030_v20 }
0x1c23   :  { %v5053_v44 = vmul.f32 %v5047_v19, %v5029_v48 }
0x1c25   :  { %6579 = vmatprep.mubr.msk.f32.mxu1 %vm2576_vm3, %v5053_v44 }
0x1c26   :  { %v6886_v17 = vpop.eup %6885  ;;  %6580 = vmatmul.mubr.msk.f32.gmra.mxu1 %vm2576_vm3, %v5054_v49 }
0x1c27   :  { %v5050_v56 = vadd.f32 1.0, %v6886_v17 }
0x1c28   :  { %v6888_v39 = vpop.eup %6887 }
0x1c29   :  { %v5049_v53 = vadd.f32 1.0, %v6888_v39  ;;  %v5056_v11 = vmul.f32 %v5050_v56, %v5032_v50 }
0x1c2b   :  { %v5055_v54 = vmul.f32 %v5049_v53, %v5031_v33 }
0x1c2d   :  { %6582 = vmatprep.mubr.msk.f32.mxu1 %vm2576_vm3, %v5055_v54 }
0x1c2e   :  { %6583 = vmatmul.mubr.msk.f32.gmra.mxu1 %vm2576_vm3, %v5056_v11 }
0x1cde   :  { %v6578_v60 = vpop.f32.mrf.mxu1 }
0x1cdf   :  { %v5164_v46 = vadd.f32 %v6578_v60, %v5670_v26 }
0x1ce0   :  { %v5158_v24 = vpop.f32.mrf.mxu1 }
0x1ce1   :  { %v5159_v30 = vadd.f32 %v5670_v26, %v5158_v24  ;;  %v5188_v32 = vadd.f32 %v5164_v46, %v8424_v47 }
0x1ce6   :  { %v6581_v16 = vpop.f32.mrf.mxu1 }
0x1ce7   :  { %v5174_v21 = vadd.f32 %v6581_v16, %v5670_v26 }
0x1ce8   :  { %v5168_v1 = vpop.f32.mrf.mxu1 }
0x1ce9   :  { %v5169_v28 = vadd.f32 %v5670_v26, %v5168_v1  ;;  %v5190_v43 = vadd.f32 %v5174_v21, %v8441_v63 }
0x1ceb   :  { %v5189_v31 = vadd.f32 %v5169_v28, %v8443_v18 }
0x1cee   :  { %v6584_v7 = vpop.f32.mrf.mxu1 }
0x1cef   :  { %v5184_v59 = vadd.f32 %v6584_v7, %v5670_v26 }
0x1cf0   :  { %v5178_v57 = vpop.f32.mrf.mxu1 }
0x1cf1   :  { %v5192_v25 = vadd.f32 %v5184_v59, %v8458_v8  ;;  %v5179_v45 = vadd.f32 %v5670_v26, %v5178_v57  ;;  %v5187_v8 = vadd.f32 %v5159_v30, %v8427_v14  ;;  %v5302_v14 = vld [vmem:[%s8593_s19 + $0x18] sm:$0xff] }
0x1cf3   :  { %v5191_v41 = vadd.f32 %v5179_v45, %v8455_v4  ;;  %6586 = vmatpush3.msra.mxu0 %v5192_v25  ;;  %v5193_v4 = vld [vmem:[%s8630_s13] sm:$0x3] }
0x1cf4   :  { %6587 = vmatprep.subr.mxu0 %v6930_v62 }
0x1cf5   :  { %6588 = vmatpush3.msra.mxu0 %v5191_v41 }
0x1cf6   :  { %6589 = vmatprep.subr.mxu0 %v6930_v62 }
0x1cf7   :  { %6590 = vmatpush3.msra.mxu0 %v5190_v43 }
0x1cf8   :  { %6591 = vmatprep.subr.mxu0 %v6930_v62 }
0x1cf9   :  { %6592 = vmatpush3.msra.mxu0 %v5189_v31 }
0x1cfa   :  { %6593 = vmatprep.subr.mxu0 %v6930_v62 }
0x1cfb   :  { %6594 = vmatpush3.msra.mxu0 %v5188_v32 }
0x1cfc   :  { %6595 = vmatprep.subr.mxu0 %v6930_v62 }
0x1cfd   :  { %6596 = vmatpush3.msra.mxu0 %v5187_v8 }
0x1cfe   :  { %6598 = vmatmul.mubr.msk.f32.vlgmr.msra.gmra.mxu0 %vm87_vm0, %v5193_v4  ;;  %6600 = vmatprep.subr.mxu0 %v6930_v62 }
0x1cff   :  { %6608 = vmatprep.mubr.msk.f32.mxu0 %vm6931_vm4, %v6930_v62  ;;  %6601 = vmatpush3.msra.mxu0 %v5302_v14 }
0x1d00   :  { %6602 = vmatprep.subr.mxu0 %v6930_v62 }
0x1d01   :  { %6603 = vmatpush3.msra.mxu0 %v5301_v22 }
0x1d02   :  { %6604 = vmatprep.subr.mxu0 %v6930_v62 }
0x1d03   :  { %6605 = vmatpush3.msra.mxu0 %v5300_v15 }
0x1d04   :  { %6606 = vmatprep.subr.mxu0 %v6930_v62 }
0x1d05   :  { %6607 = vmatpush3.msra.mxu0 %v5299_v23 }
0x1dbe   :  { %v5263_v63 = vpop.f32.mrf.mxu0 }
0x1dbf   :  { %v5274_v18 = vmul.f32 %v5263_v63, %v5263_v63  ;;  %v5270_v47 = vsel %vm5269_vm5, %v5263_v63, 0.0 }
0x1dc0   :  { %5271 = vadd.xlane.f32.xlu0 %v5270_v47  ;;  %v6599_v58 = vpop.f32.mrf.mxu0 }
0x1dc1   :  { %v5275_v35 = vsel %vm5269_vm5, %v5274_v18, 0.0 }
0x1dc2   :  { %5276 = vadd.xlane.f32.xlu1 %v5275_v35 }
0x1e49   :  { %v5272_v38 = vpop.xlane.xlu0 %5271 }
0x1e4a   :  { %v5273_v51 = vmul.f32 0.03125, %v5272_v38 }
0x1e4b   :  { %v5277_v29 = vpop.xlane.xlu1 %5276 }
0x1e4c   :  { %v5279_v36 = vmul.f32 %v5273_v51, %v5273_v51  ;;  %v5278_v61 = vmul.f32 0.03125, %v5277_v29  ;;  %v5281_v2 = vsub.f32 %v5263_v63, %v5273_v51 }
0x1e4e   :  { %v5280_v13 = vsub.f32 %v5278_v61, %v5279_v36 }
0x1e50   :  { %v5282_v0 = vadd.f32 1e-06, %v5280_v13 }
0x1e52   :  { %6889 = vrsqrt.f32 %v5282_v0 }
0x1e5f   :  { %v6890_v40 = vpop.eup %6889 }
0x1e60   :  { %v5284_v5 = vmul.f32 %v6890_v40, %v5281_v2 }
0x1e62   :  { %v5291_v3 = vmul.f32 %v5678_v27, %v5284_v5 }
0x1e64   :  { %v5298_v52 = vadd.f32 %v5679_v6, %v5291_v3 }
0x1e66   :  { %6609 = vmatmul.mubr.msk.f32.vlgmr.msra.gmra.mxu0 %vm209_vm1, %v5298_v52 }
0x1f26   :  { %v5379_v42 = vpop.f32.mrf.mxu0 }
0x1f27   :  { %v5380_v10 = vadd.f32 %v5680_v9, %v5379_v42 }
0x1f28   :  { %v6610_v12 = vpop.f32.mrf.mxu0 }
0x1f29   :  { %5384 = vst.msk [vmem:[#allocation2] sm:$0x3] %vm5383_vm6, %v5380_v10 }
0x1f2a   :  { %6908 = shalt.err (!%p6905_p4)
}
0x1f2b   :  { %5394 = dma.vmem_to_hbm [thread:$0]  %s5392_s10, 32, %s8595_s21, [#allocation3]  }
0x1f2c   :  { %6917 = dma.done.wait [#allocation3], 32  }
0x1f2d   :  { %6918 = vsyncadd [#allocation3], 4294967264 }
0x1f2e   :  { %5398 = vsyncpa [#allocation3], 1 }

</bundles_post_ra>
